<compile_context>
chip_gen: v7x
topology: tpu7x:2x2x1
jax: 0.10.0
libtpu: 0.0.40
codegen_flags: <defaults>
</compile_context>

<pallas_src>
import math

import jax
import jax.numpy as jnp
from jax.experimental import pallas as pl
from jax.experimental.pallas import tpu as pltpu

FINAL_MLP = 512  # self.FinalMLPSize in the PyTorch module


def _round_up(x, m):
    return (x + m - 1) // m * m


def net_kernel(
    # activations (batch-tiled)
    G_ref, eM_ref, iM_ref, tM_ref,
    # fused query projection (all three heads concatenated along output dim) + bias
    Wq_ref, bq_ref,
    # extract/image/text Linear -> FinalMLPSize
    WeL_ref, beL_ref, WiL_ref, biL_ref, WtL_ref, btL_ref,
    # MLP (512 -> 256) and FC row (1 x 256)
    Wmlp_ref, bmlp_ref, wfc_ref, bfc_ref,
    out_ref,
):
    f32 = jnp.float32
    bf16 = jnp.bfloat16
    relu = lambda x: jnp.maximum(x, 0.0)

    De = eM_ref.shape[-1]
    Di = iM_ref.shape[-1]
    Dt = tM_ref.shape[-1]

    # One fused MXU pass for all three heads' query projections (bf16 operands, f32 accumulate).
    q_all = jnp.dot(G_ref[...], Wq_ref[...], preferred_element_type=f32) + bq_ref[...]  # (BT, Dg)

    def mma(q, keys_ref):
        # MultiModalAttention: scaled dot-product attention over L keys (values == keys),
        # statically unrolled over L so everything is 2-D / lane-dense on VPU/XLU/EUP —
        # avoids Mosaic serializing a batched (1,K)x(K,L) matmul per batch row on the MXU.
        L = keys_ref.shape[1]
        K = keys_ref.shape[2]
        scale = 1.0 / float(K) ** 0.5
        keys_all = keys_ref[...].astype(f32)                          # (BT, L, K)
        keys = [keys_all[:, l, :] for l in range(L)]                  # L x (BT, K)
        scores = [jnp.sum(q * k, axis=-1, keepdims=True) * scale for k in keys]  # XLU reduces
        m = scores[0]
        for s in scores[1:]:
            m = jnp.maximum(m, s)
        es = [jnp.exp(s - m) for s in scores]                         # EUP
        denom = es[0]
        for e in es[1:]:
            denom = denom + e
        inv = pl.reciprocal(denom, approx=True)                       # EUP slot (free-ish)
        ctx = (es[0] * inv) * keys[0]
        for l in range(1, L):
            ctx = ctx + (es[l] * inv) * keys[l]                       # VPU broadcast-FMA
        return ctx                                                    # (BT, K) f32

    # 128-lane-aligned slices of the fused query output (De=128, Di=256, Dt=128).
    eCtx = mma(q_all[:, :De], eM_ref)
    iCtx = mma(q_all[:, De:De + Di], iM_ref)
    tCtx = mma(q_all[:, De + Di:], tM_ref)

    eV = relu(jnp.dot(eCtx.astype(bf16), WeL_ref[...], preferred_element_type=f32) + beL_ref[...])
    iV = relu(jnp.dot(iCtx.astype(bf16), WiL_ref[...], preferred_element_type=f32) + biL_ref[...])
    tV = relu(jnp.dot(tCtx.astype(bf16), WtL_ref[...], preferred_element_type=f32) + btL_ref[...])

    # DotProductAttention over the 3 stacked modalities + mean over dim=1, kept 2-D/lane-dense:
    #   finalVec = sum_j ( (sum_i softmax_row_i[j]) / 3 ) * V_j
    d_scale = 1.0 / float(FINAL_MLP) ** 0.5

    def rdot(a, b):
        return jnp.sum(a * b, axis=-1, keepdims=True) * d_scale       # (BT, 1)

    s_ee, s_ei, s_et = rdot(eV, eV), rdot(eV, iV), rdot(eV, tV)
    s_ii, s_it, s_tt = rdot(iV, iV), rdot(iV, tV), rdot(tV, tV)

    c_e = jnp.zeros_like(s_ee)
    c_i = jnp.zeros_like(s_ee)
    c_t = jnp.zeros_like(s_ee)
    for sa, sb, sc in ((s_ee, s_ei, s_et), (s_ei, s_ii, s_it), (s_et, s_it, s_tt)):
        m = jnp.maximum(jnp.maximum(sa, sb), sc)
        ea, eb, ec = jnp.exp(sa - m), jnp.exp(sb - m), jnp.exp(sc - m)
        inv = pl.reciprocal(ea + eb + ec, approx=True)
        c_e = c_e + ea * inv
        c_i = c_i + eb * inv
        c_t = c_t + ec * inv

    finalVec = (c_e * eV + c_i * iV + c_t * tV) * (1.0 / 3.0)          # (BT, 512) f32

    fcIn = relu(jnp.dot(finalVec.astype(bf16), Wmlp_ref[...], preferred_element_type=f32)
                + bmlp_ref[...])                                       # (BT, 256)
    # N=1 FC as VPU broadcast-multiply + cross-lane reduce (MXU would waste 255/256 columns).
    logits = jnp.sum(fcIn * wfc_ref[...], axis=-1, keepdims=True) + bfc_ref[...]
    out_ref[...] = 1.0 / (1.0 + jnp.exp(-logits))                      # (BT, 1)


def _batch_index_map(ndim):
    trailing = (0,) * (ndim - 1)

    def imap(i):
        return (i,) + trailing

    return imap


def _const_index_map(ndim):
    zeros = (0,) * ndim

    def imap(i):
        return zeros

    return imap


def _pick_batch_tile(B, batch_tile):
    if B <= 8:
        return B  # single full-extent tile, grid of 1
    # keep >= 2 grid steps so both v7x TensorCores get work; keep the tile sublane-aligned
    cap = min(_round_up(batch_tile, 8), _round_up((B + 1) // 2, 8))
    cap = max(cap, 8)
    # prefer a tile that divides B exactly (skips the wrapper-side jnp.pad HBM copy)
    for bt in range(cap, 7, -8):
        if B % bt == 0:
            return bt
    return cap  # fall back to padding the batch


def _vmem_bytes_estimate(acts, params, BT):
    w = sum(math.prod(p.shape) * p.dtype.itemsize for p in params)
    a = sum(BT * math.prod(x.shape[1:]) * x.dtype.itemsize for x in acts)
    # f32 key upcasts + q_all/eV/iV/tV/finalVec/fcIn temporaries + double-buffered acts/weights
    est = 2 * w + 2 * a + 6 * a + BT * 4096 * 4 + (4 << 20)
    return int(min(max(est, 32 << 20), 64 << 20))  # floor for pipelining, cap for v7x (64 MiB)


def net_forward(features, params, *, batch_tile=256):
    eM, eG, iM, iG, tM, tG = features
    B = eM.shape[0]

    bf16 = jnp.bfloat16
    # Fuse the three guide vectors once (weights pre-fused to match); cast activations to
    # bf16 for the MXU-native matmuls / halved activation DMA.  Accumulation stays f32.
    G = jnp.concatenate([eG, iG, tG], axis=-1).astype(bf16)            # (B, De+Di+Dt)
    eMb, iMb, tMb = eM.astype(bf16), iM.astype(bf16), tM.astype(bf16)

    BT = _pick_batch_tile(B, batch_tile)
    B_pad = _round_up(B, BT)

    def pad_b(x):
        if B_pad == B:
            return x
        return jnp.pad(x, ((0, B_pad - B),) + ((0, 0),) * (x.ndim - 1))

    acts = tuple(pad_b(x) for x in (G, eMb, iMb, tMb))

    def batch_spec(x):
        return pl.BlockSpec((BT,) + x.shape[1:], _batch_index_map(x.ndim))

    def const_spec(x):
        # constant block index -> weights stay VMEM-resident across the grid
        # TODO(synk): if these get double-buffered on v7x, add pipeline_mode=pl.Buffered(1).
        return pl.BlockSpec(x.shape, _const_index_map(x.ndim))

    out = pl.pallas_call(
        net_kernel,
        out_shape=jax.ShapeDtypeStruct((B_pad, 1), jnp.float32),
        grid=(B_pad // BT,),
        in_specs=[batch_spec(a) for a in acts] + [const_spec(p) for p in params],
        out_specs=pl.BlockSpec((BT, 1), lambda i: (i, 0)),
        compiler_params=pltpu.CompilerParams(
            dimension_semantics=("parallel",),
            vmem_limit_bytes=_vmem_bytes_estimate(acts, params, BT)),
    )(*acts, *params)
    return out[:B]


def init_params(key, De, Di, Dt):
    Dg = De + Di + Dt
    bf16 = jnp.bfloat16

    def kaiming(k, shape):
        fan_in = shape[0]
        return jax.random.normal(k, shape, jnp.float32) * jnp.sqrt(2.0 / fan_in)

    ks = iter(jax.random.split(key, 16))
    zf = lambda n: jnp.zeros((1, n), jnp.float32)

    def fused_query(K):
        # Concatenation of the three per-modality query-projection matrices; applying it to
        # [eG|iG|tG] is identical to summing the three separate nn.Linear projections.
        We = kaiming(next(ks), (De, K))
        Wi = kaiming(next(ks), (Di, K))
        Wt = kaiming(next(ks), (Dt, K))
        return jnp.concatenate([We, Wi, Wt], axis=0)  # (Dg, K)

    # All three heads' fused query weights concatenated along the output dim -> one MXU pass.
    Wq_all = jnp.concatenate([fused_query(De), fused_query(Di), fused_query(Dt)], axis=1)  # (Dg,Dg)

    params = (
        Wq_all.astype(bf16), zf(Dg),
        # extractLinear / imageLinear / textLinear -> FinalMLPSize
        kaiming(next(ks), (De, FINAL_MLP)).astype(bf16), zf(FINAL_MLP),
        kaiming(next(ks), (Di, FINAL_MLP)).astype(bf16), zf(FINAL_MLP),
        kaiming(next(ks), (Dt, FINAL_MLP)).astype(bf16), zf(FINAL_MLP),
        # MLP (512 -> 256)
        kaiming(next(ks), (FINAL_MLP, FINAL_MLP // 2)).astype(bf16), zf(FINAL_MLP // 2),
        # FC (256 -> 1) stored as an f32 row vector (used on the VPU, not the MXU)
        kaiming(next(ks), (FINAL_MLP // 2, 1)).reshape(1, FINAL_MLP // 2),
        jnp.zeros((1, 1), jnp.float32),
    )
    return params


if __name__ == "__main__":
    key = jax.random.PRNGKey(0)
    B = 2
    Le, Li, Lt = 8, 8, 8          # extracted-word count, image regions, seqLen
    De = 128                      # extractFeature.embSize
    Di = 256                      # imageFeature.defaultFeatureSize
    nHidden = 64                  # textFeature hidden -> 2*nHidden features
    Dt = 2 * nHidden

    k_in, k_p = jax.random.split(key)
    ks = jax.random.split(k_in, 6)
    eM = jax.random.normal(ks[0], (B, Le, De), jnp.float32)   # extractMatrix
    eG = jax.random.normal(ks[1], (B, De), jnp.float32)       # extractGuidVec
    iM = jax.random.normal(ks[2], (B, Li, Di), jnp.float32)   # imageMatrix
    iG = jax.random.normal(ks[3], (B, Di), jnp.float32)       # imageGuidVec
    tM = jax.random.normal(ks[4], (B, Lt, Dt), jnp.float32)   # textHMatrix
    tG = jax.random.normal(ks[5], (B, Dt), jnp.float32)       # textGuidVec

    params = init_params(k_p, De, Di, Dt)
    out = net_forward((eM, eG, iM, iG, tM, tG), params)
    jax.block_until_ready(out)
    assert out.shape == (B, 1) and out.dtype == jnp.float32
    assert bool(jnp.all((out >= 0.0) & (out <= 1.0)))
    assert bool(jnp.all(jnp.isfinite(out)))
    print("KERNEL_OK")
</pallas_src>

<mosaic_0001>
module attributes {stable_mosaic.version = 11 : i64} {
  func.func @net_kernel(%arg0: i32, %arg1: memref<2x512xbf16, #tpu.memory_space<vmem>>, %arg2: memref<2x8x128xbf16, #tpu.memory_space<vmem>>, %arg3: memref<2x8x256xbf16, #tpu.memory_space<vmem>>, %arg4: memref<2x8x128xbf16, #tpu.memory_space<vmem>>, %arg5: memref<512x512xbf16, #tpu.memory_space<vmem>>, %arg6: memref<1x512xf32, #tpu.memory_space<vmem>>, %arg7: memref<128x512xbf16, #tpu.memory_space<vmem>>, %arg8: memref<1x512xf32, #tpu.memory_space<vmem>>, %arg9: memref<256x512xbf16, #tpu.memory_space<vmem>>, %arg10: memref<1x512xf32, #tpu.memory_space<vmem>>, %arg11: memref<128x512xbf16, #tpu.memory_space<vmem>>, %arg12: memref<1x512xf32, #tpu.memory_space<vmem>>, %arg13: memref<512x256xbf16, #tpu.memory_space<vmem>>, %arg14: memref<1x256xf32, #tpu.memory_space<vmem>>, %arg15: memref<1x256xf32, #tpu.memory_space<vmem>>, %arg16: memref<1x1xf32, #tpu.memory_space<vmem>>, %arg17: memref<2x1xf32, #tpu.memory_space<vmem>>) attributes {dimension_semantics = [#tpu.dimension_semantics<parallel>], iteration_bounds = array<i64: 1>, scalar_prefetch = 0 : i64, scratch_operands = 0 : i64, tpu.core_type = #tpu.core_type<tc>, window_params = [{transform_indices = @transform_0, window_bounds = array<i64: 2, 512>}, {transform_indices = @transform_1, window_bounds = array<i64: 2, 8, 128>}, {transform_indices = @transform_2, window_bounds = array<i64: 2, 8, 256>}, {transform_indices = @transform_3, window_bounds = array<i64: 2, 8, 128>}, {pipeline_mode = #tpu.pipeline_mode<synchronous>, transform_indices = @transform_4, window_bounds = array<i64: 512, 512>}, {pipeline_mode = #tpu.pipeline_mode<synchronous>, transform_indices = @transform_5, window_bounds = array<i64: 1, 512>}, {pipeline_mode = #tpu.pipeline_mode<synchronous>, transform_indices = @transform_6, window_bounds = array<i64: 128, 512>}, {pipeline_mode = #tpu.pipeline_mode<synchronous>, transform_indices = @transform_7, window_bounds = array<i64: 1, 512>}, {pipeline_mode = #tpu.pipeline_mode<synchronous>, transform_indices = @transform_8, window_bounds = array<i64: 256, 512>}, {pipeline_mode = #tpu.pipeline_mode<synchronous>, transform_indices = @transform_9, window_bounds = array<i64: 1, 512>}, {pipeline_mode = #tpu.pipeline_mode<synchronous>, transform_indices = @transform_10, window_bounds = array<i64: 128, 512>}, {pipeline_mode = #tpu.pipeline_mode<synchronous>, transform_indices = @transform_11, window_bounds = array<i64: 1, 512>}, {pipeline_mode = #tpu.pipeline_mode<synchronous>, transform_indices = @transform_12, window_bounds = array<i64: 512, 256>}, {pipeline_mode = #tpu.pipeline_mode<synchronous>, transform_indices = @transform_13, window_bounds = array<i64: 1, 256>}, {pipeline_mode = #tpu.pipeline_mode<synchronous>, transform_indices = @transform_14, window_bounds = array<i64: 1, 256>}, {pipeline_mode = #tpu.pipeline_mode<synchronous>, transform_indices = @transform_15, window_bounds = array<i64: 1, 1>}, {transform_indices = @transform_16, window_bounds = array<i64: 2, 1>}]} {
    %c0 = arith.constant 0 : index
    %c0_0 = arith.constant 0 : index
    %0 = vector.load %arg1[%c0, %c0_0] : memref<2x512xbf16, #tpu.memory_space<vmem>>, vector<2x512xbf16>
    %c0_1 = arith.constant 0 : index
    %c0_2 = arith.constant 0 : index
    %1 = vector.load %arg5[%c0_1, %c0_2] : memref<512x512xbf16, #tpu.memory_space<vmem>>, vector<512x512xbf16>
    %cst = arith.constant dense<0.000000e+00> : vector<2x512xf32>
    %2 = tpu.matmul %0, %1, %cst {dimension_numbers = #tpu.dot_dimension_numbers<[1], [0], [0], [1], [0, 0, 1, 1], [], []>} : vector<2x512xbf16>, vector<512x512xbf16>, vector<2x512xf32> -> vector<2x512xf32>
    %c0_3 = arith.constant 0 : index
    %c0_4 = arith.constant 0 : index
    %3 = vector.load %arg6[%c0_3, %c0_4] : memref<1x512xf32, #tpu.memory_space<vmem>>, vector<1x512xf32>
    %4 = vector.broadcast %3 : vector<1x512xf32> to vector<2x512xf32>
    %5 = arith.addf %2, %4 : vector<2x512xf32>
    %6 = vector.extract_strided_slice %5 {offsets = [0, 0], sizes = [2, 128], strides = [1, 1]} : vector<2x512xf32> to vector<2x128xf32>
    %c0_5 = arith.constant 0 : index
    %c0_6 = arith.constant 0 : index
    %c0_7 = arith.constant 0 : index
    %7 = vector.load %arg2[%c0_5, %c0_6, %c0_7] : memref<2x8x128xbf16, #tpu.memory_space<vmem>>, vector<2x8x128xbf16>
    %8 = arith.extf %7 : vector<2x8x128xbf16> to vector<2x8x128xf32>
    %9 = vector.extract_strided_slice %8 {offsets = [0, 0, 0], sizes = [2, 1, 128], strides = [1, 1, 1]} : vector<2x8x128xf32> to vector<2x1x128xf32>
    %10 = vector.shape_cast %9 : vector<2x1x128xf32> to vector<2x128xf32>
    %11 = vector.extract_strided_slice %8 {offsets = [0, 1, 0], sizes = [2, 1, 128], strides = [1, 1, 1]} : vector<2x8x128xf32> to vector<2x1x128xf32>
    %12 = vector.shape_cast %11 : vector<2x1x128xf32> to vector<2x128xf32>
    %13 = vector.extract_strided_slice %8 {offsets = [0, 2, 0], sizes = [2, 1, 128], strides = [1, 1, 1]} : vector<2x8x128xf32> to vector<2x1x128xf32>
    %14 = vector.shape_cast %13 : vector<2x1x128xf32> to vector<2x128xf32>
    %15 = vector.extract_strided_slice %8 {offsets = [0, 3, 0], sizes = [2, 1, 128], strides = [1, 1, 1]} : vector<2x8x128xf32> to vector<2x1x128xf32>
    %16 = vector.shape_cast %15 : vector<2x1x128xf32> to vector<2x128xf32>
    %17 = vector.extract_strided_slice %8 {offsets = [0, 4, 0], sizes = [2, 1, 128], strides = [1, 1, 1]} : vector<2x8x128xf32> to vector<2x1x128xf32>
    %18 = vector.shape_cast %17 : vector<2x1x128xf32> to vector<2x128xf32>
    %19 = vector.extract_strided_slice %8 {offsets = [0, 5, 0], sizes = [2, 1, 128], strides = [1, 1, 1]} : vector<2x8x128xf32> to vector<2x1x128xf32>
    %20 = vector.shape_cast %19 : vector<2x1x128xf32> to vector<2x128xf32>
    %21 = vector.extract_strided_slice %8 {offsets = [0, 6, 0], sizes = [2, 1, 128], strides = [1, 1, 1]} : vector<2x8x128xf32> to vector<2x1x128xf32>
    %22 = vector.shape_cast %21 : vector<2x1x128xf32> to vector<2x128xf32>
    %23 = vector.extract_strided_slice %8 {offsets = [0, 7, 0], sizes = [2, 1, 128], strides = [1, 1, 1]} : vector<2x8x128xf32> to vector<2x1x128xf32>
    %24 = vector.shape_cast %23 : vector<2x1x128xf32> to vector<2x128xf32>
    %25 = arith.mulf %6, %10 : vector<2x128xf32>
    %cst_8 = arith.constant dense<0.000000e+00> : vector<2xf32>
    %26 = vector.multi_reduction <add>, %25, %cst_8 [1] : vector<2x128xf32> to vector<2xf32>
    %27 = vector.shape_cast %26 : vector<2xf32> to vector<2x1xf32>
    %cst_9 = arith.constant 0.0883883461 : f32
    %28 = vector.broadcast %cst_9 : f32 to vector<2x1xf32>
    %29 = arith.mulf %27, %28 : vector<2x1xf32>
    %30 = arith.mulf %6, %12 : vector<2x128xf32>
    %cst_10 = arith.constant dense<0.000000e+00> : vector<2xf32>
    %31 = vector.multi_reduction <add>, %30, %cst_10 [1] : vector<2x128xf32> to vector<2xf32>
    %32 = vector.shape_cast %31 : vector<2xf32> to vector<2x1xf32>
    %cst_11 = arith.constant 0.0883883461 : f32
    %33 = vector.broadcast %cst_11 : f32 to vector<2x1xf32>
    %34 = arith.mulf %32, %33 : vector<2x1xf32>
    %35 = arith.mulf %6, %14 : vector<2x128xf32>
    %cst_12 = arith.constant dense<0.000000e+00> : vector<2xf32>
    %36 = vector.multi_reduction <add>, %35, %cst_12 [1] : vector<2x128xf32> to vector<2xf32>
    %37 = vector.shape_cast %36 : vector<2xf32> to vector<2x1xf32>
    %cst_13 = arith.constant 0.0883883461 : f32
    %38 = vector.broadcast %cst_13 : f32 to vector<2x1xf32>
    %39 = arith.mulf %37, %38 : vector<2x1xf32>
    %40 = arith.mulf %6, %16 : vector<2x128xf32>
    %cst_14 = arith.constant dense<0.000000e+00> : vector<2xf32>
    %41 = vector.multi_reduction <add>, %40, %cst_14 [1] : vector<2x128xf32> to vector<2xf32>
    %42 = vector.shape_cast %41 : vector<2xf32> to vector<2x1xf32>
    %cst_15 = arith.constant 0.0883883461 : f32
    %43 = vector.broadcast %cst_15 : f32 to vector<2x1xf32>
    %44 = arith.mulf %42, %43 : vector<2x1xf32>
    %45 = arith.mulf %6, %18 : vector<2x128xf32>
    %cst_16 = arith.constant dense<0.000000e+00> : vector<2xf32>
    %46 = vector.multi_reduction <add>, %45, %cst_16 [1] : vector<2x128xf32> to vector<2xf32>
    %47 = vector.shape_cast %46 : vector<2xf32> to vector<2x1xf32>
    %cst_17 = arith.constant 0.0883883461 : f32
    %48 = vector.broadcast %cst_17 : f32 to vector<2x1xf32>
    %49 = arith.mulf %47, %48 : vector<2x1xf32>
    %50 = arith.mulf %6, %20 : vector<2x128xf32>
    %cst_18 = arith.constant dense<0.000000e+00> : vector<2xf32>
    %51 = vector.multi_reduction <add>, %50, %cst_18 [1] : vector<2x128xf32> to vector<2xf32>
    %52 = vector.shape_cast %51 : vector<2xf32> to vector<2x1xf32>
    %cst_19 = arith.constant 0.0883883461 : f32
    %53 = vector.broadcast %cst_19 : f32 to vector<2x1xf32>
    %54 = arith.mulf %52, %53 : vector<2x1xf32>
    %55 = arith.mulf %6, %22 : vector<2x128xf32>
    %cst_20 = arith.constant dense<0.000000e+00> : vector<2xf32>
    %56 = vector.multi_reduction <add>, %55, %cst_20 [1] : vector<2x128xf32> to vector<2xf32>
    %57 = vector.shape_cast %56 : vector<2xf32> to vector<2x1xf32>
    %cst_21 = arith.constant 0.0883883461 : f32
    %58 = vector.broadcast %cst_21 : f32 to vector<2x1xf32>
    %59 = arith.mulf %57, %58 : vector<2x1xf32>
    %60 = arith.mulf %6, %24 : vector<2x128xf32>
    %cst_22 = arith.constant dense<0.000000e+00> : vector<2xf32>
    %61 = vector.multi_reduction <add>, %60, %cst_22 [1] : vector<2x128xf32> to vector<2xf32>
    %62 = vector.shape_cast %61 : vector<2xf32> to vector<2x1xf32>
    %cst_23 = arith.constant 0.0883883461 : f32
    %63 = vector.broadcast %cst_23 : f32 to vector<2x1xf32>
    %64 = arith.mulf %62, %63 : vector<2x1xf32>
    %65 = arith.maximumf %29, %34 : vector<2x1xf32>
    %66 = arith.maximumf %65, %39 : vector<2x1xf32>
    %67 = arith.maximumf %66, %44 : vector<2x1xf32>
    %68 = arith.maximumf %67, %49 : vector<2x1xf32>
    %69 = arith.maximumf %68, %54 : vector<2x1xf32>
    %70 = arith.maximumf %69, %59 : vector<2x1xf32>
    %71 = arith.maximumf %70, %64 : vector<2x1xf32>
    %72 = arith.subf %29, %71 : vector<2x1xf32>
    %73 = math.exp %72 : vector<2x1xf32>
    %74 = arith.subf %34, %71 : vector<2x1xf32>
    %75 = math.exp %74 : vector<2x1xf32>
    %76 = arith.subf %39, %71 : vector<2x1xf32>
    %77 = math.exp %76 : vector<2x1xf32>
    %78 = arith.subf %44, %71 : vector<2x1xf32>
    %79 = math.exp %78 : vector<2x1xf32>
    %80 = arith.subf %49, %71 : vector<2x1xf32>
    %81 = math.exp %80 : vector<2x1xf32>
    %82 = arith.subf %54, %71 : vector<2x1xf32>
    %83 = math.exp %82 : vector<2x1xf32>
    %84 = arith.subf %59, %71 : vector<2x1xf32>
    %85 = math.exp %84 : vector<2x1xf32>
    %86 = arith.subf %64, %71 : vector<2x1xf32>
    %87 = math.exp %86 : vector<2x1xf32>
    %88 = arith.addf %73, %75 : vector<2x1xf32>
    %89 = arith.addf %88, %77 : vector<2x1xf32>
    %90 = arith.addf %89, %79 : vector<2x1xf32>
    %91 = arith.addf %90, %81 : vector<2x1xf32>
    %92 = arith.addf %91, %83 : vector<2x1xf32>
    %93 = arith.addf %92, %85 : vector<2x1xf32>
    %94 = arith.addf %93, %87 : vector<2x1xf32>
    %95 = tpu.reciprocal %94 {approx = true} : vector<2x1xf32> -> vector<2x1xf32>
    %96 = arith.mulf %73, %95 : vector<2x1xf32>
    %97 = vector.broadcast %96 : vector<2x1xf32> to vector<2x128xf32>
    %98 = arith.mulf %97, %10 : vector<2x128xf32>
    %99 = arith.mulf %75, %95 : vector<2x1xf32>
    %100 = vector.broadcast %99 : vector<2x1xf32> to vector<2x128xf32>
    %101 = arith.mulf %100, %12 : vector<2x128xf32>
    %102 = arith.addf %98, %101 : vector<2x128xf32>
    %103 = arith.mulf %77, %95 : vector<2x1xf32>
    %104 = vector.broadcast %103 : vector<2x1xf32> to vector<2x128xf32>
    %105 = arith.mulf %104, %14 : vector<2x128xf32>
    %106 = arith.addf %102, %105 : vector<2x128xf32>
    %107 = arith.mulf %79, %95 : vector<2x1xf32>
    %108 = vector.broadcast %107 : vector<2x1xf32> to vector<2x128xf32>
    %109 = arith.mulf %108, %16 : vector<2x128xf32>
    %110 = arith.addf %106, %109 : vector<2x128xf32>
    %111 = arith.mulf %81, %95 : vector<2x1xf32>
    %112 = vector.broadcast %111 : vector<2x1xf32> to vector<2x128xf32>
    %113 = arith.mulf %112, %18 : vector<2x128xf32>
    %114 = arith.addf %110, %113 : vector<2x128xf32>
    %115 = arith.mulf %83, %95 : vector<2x1xf32>
    %116 = vector.broadcast %115 : vector<2x1xf32> to vector<2x128xf32>
    %117 = arith.mulf %116, %20 : vector<2x128xf32>
    %118 = arith.addf %114, %117 : vector<2x128xf32>
    %119 = arith.mulf %85, %95 : vector<2x1xf32>
    %120 = vector.broadcast %119 : vector<2x1xf32> to vector<2x128xf32>
    %121 = arith.mulf %120, %22 : vector<2x128xf32>
    %122 = arith.addf %118, %121 : vector<2x128xf32>
    %123 = arith.mulf %87, %95 : vector<2x1xf32>
    %124 = vector.broadcast %123 : vector<2x1xf32> to vector<2x128xf32>
    %125 = arith.mulf %124, %24 : vector<2x128xf32>
    %126 = arith.addf %122, %125 : vector<2x128xf32>
    %127 = vector.extract_strided_slice %5 {offsets = [0, 128], sizes = [2, 256], strides = [1, 1]} : vector<2x512xf32> to vector<2x256xf32>
    %c0_24 = arith.constant 0 : index
    %c0_25 = arith.constant 0 : index
    %c0_26 = arith.constant 0 : index
    %128 = vector.load %arg3[%c0_24, %c0_25, %c0_26] : memref<2x8x256xbf16, #tpu.memory_space<vmem>>, vector<2x8x256xbf16>
    %129 = arith.extf %128 : vector<2x8x256xbf16> to vector<2x8x256xf32>
    %130 = vector.extract_strided_slice %129 {offsets = [0, 0, 0], sizes = [2, 1, 256], strides = [1, 1, 1]} : vector<2x8x256xf32> to vector<2x1x256xf32>
    %131 = vector.shape_cast %130 : vector<2x1x256xf32> to vector<2x256xf32>
    %132 = vector.extract_strided_slice %129 {offsets = [0, 1, 0], sizes = [2, 1, 256], strides = [1, 1, 1]} : vector<2x8x256xf32> to vector<2x1x256xf32>
    %133 = vector.shape_cast %132 : vector<2x1x256xf32> to vector<2x256xf32>
    %134 = vector.extract_strided_slice %129 {offsets = [0, 2, 0], sizes = [2, 1, 256], strides = [1, 1, 1]} : vector<2x8x256xf32> to vector<2x1x256xf32>
    %135 = vector.shape_cast %134 : vector<2x1x256xf32> to vector<2x256xf32>
    %136 = vector.extract_strided_slice %129 {offsets = [0, 3, 0], sizes = [2, 1, 256], strides = [1, 1, 1]} : vector<2x8x256xf32> to vector<2x1x256xf32>
    %137 = vector.shape_cast %136 : vector<2x1x256xf32> to vector<2x256xf32>
    %138 = vector.extract_strided_slice %129 {offsets = [0, 4, 0], sizes = [2, 1, 256], strides = [1, 1, 1]} : vector<2x8x256xf32> to vector<2x1x256xf32>
    %139 = vector.shape_cast %138 : vector<2x1x256xf32> to vector<2x256xf32>
    %140 = vector.extract_strided_slice %129 {offsets = [0, 5, 0], sizes = [2, 1, 256], strides = [1, 1, 1]} : vector<2x8x256xf32> to vector<2x1x256xf32>
    %141 = vector.shape_cast %140 : vector<2x1x256xf32> to vector<2x256xf32>
    %142 = vector.extract_strided_slice %129 {offsets = [0, 6, 0], sizes = [2, 1, 256], strides = [1, 1, 1]} : vector<2x8x256xf32> to vector<2x1x256xf32>
    %143 = vector.shape_cast %142 : vector<2x1x256xf32> to vector<2x256xf32>
    %144 = vector.extract_strided_slice %129 {offsets = [0, 7, 0], sizes = [2, 1, 256], strides = [1, 1, 1]} : vector<2x8x256xf32> to vector<2x1x256xf32>
    %145 = vector.shape_cast %144 : vector<2x1x256xf32> to vector<2x256xf32>
    %146 = arith.mulf %127, %131 : vector<2x256xf32>
    %cst_27 = arith.constant dense<0.000000e+00> : vector<2xf32>
    %147 = vector.multi_reduction <add>, %146, %cst_27 [1] : vector<2x256xf32> to vector<2xf32>
    %148 = vector.shape_cast %147 : vector<2xf32> to vector<2x1xf32>
    %cst_28 = arith.constant 6.250000e-02 : f32
    %149 = vector.broadcast %cst_28 : f32 to vector<2x1xf32>
    %150 = arith.mulf %148, %149 : vector<2x1xf32>
    %151 = arith.mulf %127, %133 : vector<2x256xf32>
    %cst_29 = arith.constant dense<0.000000e+00> : vector<2xf32>
    %152 = vector.multi_reduction <add>, %151, %cst_29 [1] : vector<2x256xf32> to vector<2xf32>
    %153 = vector.shape_cast %152 : vector<2xf32> to vector<2x1xf32>
    %cst_30 = arith.constant 6.250000e-02 : f32
    %154 = vector.broadcast %cst_30 : f32 to vector<2x1xf32>
    %155 = arith.mulf %153, %154 : vector<2x1xf32>
    %156 = arith.mulf %127, %135 : vector<2x256xf32>
    %cst_31 = arith.constant dense<0.000000e+00> : vector<2xf32>
    %157 = vector.multi_reduction <add>, %156, %cst_31 [1] : vector<2x256xf32> to vector<2xf32>
    %158 = vector.shape_cast %157 : vector<2xf32> to vector<2x1xf32>
    %cst_32 = arith.constant 6.250000e-02 : f32
    %159 = vector.broadcast %cst_32 : f32 to vector<2x1xf32>
    %160 = arith.mulf %158, %159 : vector<2x1xf32>
    %161 = arith.mulf %127, %137 : vector<2x256xf32>
    %cst_33 = arith.constant dense<0.000000e+00> : vector<2xf32>
    %162 = vector.multi_reduction <add>, %161, %cst_33 [1] : vector<2x256xf32> to vector<2xf32>
    %163 = vector.shape_cast %162 : vector<2xf32> to vector<2x1xf32>
    %cst_34 = arith.constant 6.250000e-02 : f32
    %164 = vector.broadcast %cst_34 : f32 to vector<2x1xf32>
    %165 = arith.mulf %163, %164 : vector<2x1xf32>
    %166 = arith.mulf %127, %139 : vector<2x256xf32>
    %cst_35 = arith.constant dense<0.000000e+00> : vector<2xf32>
    %167 = vector.multi_reduction <add>, %166, %cst_35 [1] : vector<2x256xf32> to vector<2xf32>
    %168 = vector.shape_cast %167 : vector<2xf32> to vector<2x1xf32>
    %cst_36 = arith.constant 6.250000e-02 : f32
    %169 = vector.broadcast %cst_36 : f32 to vector<2x1xf32>
    %170 = arith.mulf %168, %169 : vector<2x1xf32>
    %171 = arith.mulf %127, %141 : vector<2x256xf32>
    %cst_37 = arith.constant dense<0.000000e+00> : vector<2xf32>
    %172 = vector.multi_reduction <add>, %171, %cst_37 [1] : vector<2x256xf32> to vector<2xf32>
    %173 = vector.shape_cast %172 : vector<2xf32> to vector<2x1xf32>
    %cst_38 = arith.constant 6.250000e-02 : f32
    %174 = vector.broadcast %cst_38 : f32 to vector<2x1xf32>
    %175 = arith.mulf %173, %174 : vector<2x1xf32>
    %176 = arith.mulf %127, %143 : vector<2x256xf32>
    %cst_39 = arith.constant dense<0.000000e+00> : vector<2xf32>
    %177 = vector.multi_reduction <add>, %176, %cst_39 [1] : vector<2x256xf32> to vector<2xf32>
    %178 = vector.shape_cast %177 : vector<2xf32> to vector<2x1xf32>
    %cst_40 = arith.constant 6.250000e-02 : f32
    %179 = vector.broadcast %cst_40 : f32 to vector<2x1xf32>
    %180 = arith.mulf %178, %179 : vector<2x1xf32>
    %181 = arith.mulf %127, %145 : vector<2x256xf32>
    %cst_41 = arith.constant dense<0.000000e+00> : vector<2xf32>
    %182 = vector.multi_reduction <add>, %181, %cst_41 [1] : vector<2x256xf32> to vector<2xf32>
    %183 = vector.shape_cast %182 : vector<2xf32> to vector<2x1xf32>
    %cst_42 = arith.constant 6.250000e-02 : f32
    %184 = vector.broadcast %cst_42 : f32 to vector<2x1xf32>
    %185 = arith.mulf %183, %184 : vector<2x1xf32>
    %186 = arith.maximumf %150, %155 : vector<2x1xf32>
    %187 = arith.maximumf %186, %160 : vector<2x1xf32>
    %188 = arith.maximumf %187, %165 : vector<2x1xf32>
    %189 = arith.maximumf %188, %170 : vector<2x1xf32>
    %190 = arith.maximumf %189, %175 : vector<2x1xf32>
    %191 = arith.maximumf %190, %180 : vector<2x1xf32>
    %192 = arith.maximumf %191, %185 : vector<2x1xf32>
    %193 = arith.subf %150, %192 : vector<2x1xf32>
    %194 = math.exp %193 : vector<2x1xf32>
    %195 = arith.subf %155, %192 : vector<2x1xf32>
    %196 = math.exp %195 : vector<2x1xf32>
    %197 = arith.subf %160, %192 : vector<2x1xf32>
    %198 = math.exp %197 : vector<2x1xf32>
    %199 = arith.subf %165, %192 : vector<2x1xf32>
    %200 = math.exp %199 : vector<2x1xf32>
    %201 = arith.subf %170, %192 : vector<2x1xf32>
    %202 = math.exp %201 : vector<2x1xf32>
    %203 = arith.subf %175, %192 : vector<2x1xf32>
    %204 = math.exp %203 : vector<2x1xf32>
    %205 = arith.subf %180, %192 : vector<2x1xf32>
    %206 = math.exp %205 : vector<2x1xf32>
    %207 = arith.subf %185, %192 : vector<2x1xf32>
    %208 = math.exp %207 : vector<2x1xf32>
    %209 = arith.addf %194, %196 : vector<2x1xf32>
    %210 = arith.addf %209, %198 : vector<2x1xf32>
    %211 = arith.addf %210, %200 : vector<2x1xf32>
    %212 = arith.addf %211, %202 : vector<2x1xf32>
    %213 = arith.addf %212, %204 : vector<2x1xf32>
    %214 = arith.addf %213, %206 : vector<2x1xf32>
    %215 = arith.addf %214, %208 : vector<2x1xf32>
    %216 = tpu.reciprocal %215 {approx = true} : vector<2x1xf32> -> vector<2x1xf32>
    %217 = arith.mulf %194, %216 : vector<2x1xf32>
    %218 = vector.broadcast %217 : vector<2x1xf32> to vector<2x256xf32>
    %219 = arith.mulf %218, %131 : vector<2x256xf32>
    %220 = arith.mulf %196, %216 : vector<2x1xf32>
    %221 = vector.broadcast %220 : vector<2x1xf32> to vector<2x256xf32>
    %222 = arith.mulf %221, %133 : vector<2x256xf32>
    %223 = arith.addf %219, %222 : vector<2x256xf32>
    %224 = arith.mulf %198, %216 : vector<2x1xf32>
    %225 = vector.broadcast %224 : vector<2x1xf32> to vector<2x256xf32>
    %226 = arith.mulf %225, %135 : vector<2x256xf32>
    %227 = arith.addf %223, %226 : vector<2x256xf32>
    %228 = arith.mulf %200, %216 : vector<2x1xf32>
    %229 = vector.broadcast %228 : vector<2x1xf32> to vector<2x256xf32>
    %230 = arith.mulf %229, %137 : vector<2x256xf32>
    %231 = arith.addf %227, %230 : vector<2x256xf32>
    %232 = arith.mulf %202, %216 : vector<2x1xf32>
    %233 = vector.broadcast %232 : vector<2x1xf32> to vector<2x256xf32>
    %234 = arith.mulf %233, %139 : vector<2x256xf32>
    %235 = arith.addf %231, %234 : vector<2x256xf32>
    %236 = arith.mulf %204, %216 : vector<2x1xf32>
    %237 = vector.broadcast %236 : vector<2x1xf32> to vector<2x256xf32>
    %238 = arith.mulf %237, %141 : vector<2x256xf32>
    %239 = arith.addf %235, %238 : vector<2x256xf32>
    %240 = arith.mulf %206, %216 : vector<2x1xf32>
    %241 = vector.broadcast %240 : vector<2x1xf32> to vector<2x256xf32>
    %242 = arith.mulf %241, %143 : vector<2x256xf32>
    %243 = arith.addf %239, %242 : vector<2x256xf32>
    %244 = arith.mulf %208, %216 : vector<2x1xf32>
    %245 = vector.broadcast %244 : vector<2x1xf32> to vector<2x256xf32>
    %246 = arith.mulf %245, %145 : vector<2x256xf32>
    %247 = arith.addf %243, %246 : vector<2x256xf32>
    %248 = vector.extract_strided_slice %5 {offsets = [0, 384], sizes = [2, 128], strides = [1, 1]} : vector<2x512xf32> to vector<2x128xf32>
    %c0_43 = arith.constant 0 : index
    %c0_44 = arith.constant 0 : index
    %c0_45 = arith.constant 0 : index
    %249 = vector.load %arg4[%c0_43, %c0_44, %c0_45] : memref<2x8x128xbf16, #tpu.memory_space<vmem>>, vector<2x8x128xbf16>
    %250 = arith.extf %249 : vector<2x8x128xbf16> to vector<2x8x128xf32>
    %251 = vector.extract_strided_slice %250 {offsets = [0, 0, 0], sizes = [2, 1, 128], strides = [1, 1, 1]} : vector<2x8x128xf32> to vector<2x1x128xf32>
    %252 = vector.shape_cast %251 : vector<2x1x128xf32> to vector<2x128xf32>
    %253 = vector.extract_strided_slice %250 {offsets = [0, 1, 0], sizes = [2, 1, 128], strides = [1, 1, 1]} : vector<2x8x128xf32> to vector<2x1x128xf32>
    %254 = vector.shape_cast %253 : vector<2x1x128xf32> to vector<2x128xf32>
    %255 = vector.extract_strided_slice %250 {offsets = [0, 2, 0], sizes = [2, 1, 128], strides = [1, 1, 1]} : vector<2x8x128xf32> to vector<2x1x128xf32>
    %256 = vector.shape_cast %255 : vector<2x1x128xf32> to vector<2x128xf32>
    %257 = vector.extract_strided_slice %250 {offsets = [0, 3, 0], sizes = [2, 1, 128], strides = [1, 1, 1]} : vector<2x8x128xf32> to vector<2x1x128xf32>
    %258 = vector.shape_cast %257 : vector<2x1x128xf32> to vector<2x128xf32>
    %259 = vector.extract_strided_slice %250 {offsets = [0, 4, 0], sizes = [2, 1, 128], strides = [1, 1, 1]} : vector<2x8x128xf32> to vector<2x1x128xf32>
    %260 = vector.shape_cast %259 : vector<2x1x128xf32> to vector<2x128xf32>
    %261 = vector.extract_strided_slice %250 {offsets = [0, 5, 0], sizes = [2, 1, 128], strides = [1, 1, 1]} : vector<2x8x128xf32> to vector<2x1x128xf32>
    %262 = vector.shape_cast %261 : vector<2x1x128xf32> to vector<2x128xf32>
    %263 = vector.extract_strided_slice %250 {offsets = [0, 6, 0], sizes = [2, 1, 128], strides = [1, 1, 1]} : vector<2x8x128xf32> to vector<2x1x128xf32>
    %264 = vector.shape_cast %263 : vector<2x1x128xf32> to vector<2x128xf32>
    %265 = vector.extract_strided_slice %250 {offsets = [0, 7, 0], sizes = [2, 1, 128], strides = [1, 1, 1]} : vector<2x8x128xf32> to vector<2x1x128xf32>
    %266 = vector.shape_cast %265 : vector<2x1x128xf32> to vector<2x128xf32>
    %267 = arith.mulf %248, %252 : vector<2x128xf32>
    %cst_46 = arith.constant dense<0.000000e+00> : vector<2xf32>
    %268 = vector.multi_reduction <add>, %267, %cst_46 [1] : vector<2x128xf32> to vector<2xf32>
    %269 = vector.shape_cast %268 : vector<2xf32> to vector<2x1xf32>
    %cst_47 = arith.constant 0.0883883461 : f32
    %270 = vector.broadcast %cst_47 : f32 to vector<2x1xf32>
    %271 = arith.mulf %269, %270 : vector<2x1xf32>
    %272 = arith.mulf %248, %254 : vector<2x128xf32>
    %cst_48 = arith.constant dense<0.000000e+00> : vector<2xf32>
    %273 = vector.multi_reduction <add>, %272, %cst_48 [1] : vector<2x128xf32> to vector<2xf32>
    %274 = vector.shape_cast %273 : vector<2xf32> to vector<2x1xf32>
    %cst_49 = arith.constant 0.0883883461 : f32
    %275 = vector.broadcast %cst_49 : f32 to vector<2x1xf32>
    %276 = arith.mulf %274, %275 : vector<2x1xf32>
    %277 = arith.mulf %248, %256 : vector<2x128xf32>
    %cst_50 = arith.constant dense<0.000000e+00> : vector<2xf32>
    %278 = vector.multi_reduction <add>, %277, %cst_50 [1] : vector<2x128xf32> to vector<2xf32>
    %279 = vector.shape_cast %278 : vector<2xf32> to vector<2x1xf32>
    %cst_51 = arith.constant 0.0883883461 : f32
    %280 = vector.broadcast %cst_51 : f32 to vector<2x1xf32>
    %281 = arith.mulf %279, %280 : vector<2x1xf32>
    %282 = arith.mulf %248, %258 : vector<2x128xf32>
    %cst_52 = arith.constant dense<0.000000e+00> : vector<2xf32>
    %283 = vector.multi_reduction <add>, %282, %cst_52 [1] : vector<2x128xf32> to vector<2xf32>
    %284 = vector.shape_cast %283 : vector<2xf32> to vector<2x1xf32>
    %cst_53 = arith.constant 0.0883883461 : f32
    %285 = vector.broadcast %cst_53 : f32 to vector<2x1xf32>
    %286 = arith.mulf %284, %285 : vector<2x1xf32>
    %287 = arith.mulf %248, %260 : vector<2x128xf32>
    %cst_54 = arith.constant dense<0.000000e+00> : vector<2xf32>
    %288 = vector.multi_reduction <add>, %287, %cst_54 [1] : vector<2x128xf32> to vector<2xf32>
    %289 = vector.shape_cast %288 : vector<2xf32> to vector<2x1xf32>
    %cst_55 = arith.constant 0.0883883461 : f32
    %290 = vector.broadcast %cst_55 : f32 to vector<2x1xf32>
    %291 = arith.mulf %289, %290 : vector<2x1xf32>
    %292 = arith.mulf %248, %262 : vector<2x128xf32>
    %cst_56 = arith.constant dense<0.000000e+00> : vector<2xf32>
    %293 = vector.multi_reduction <add>, %292, %cst_56 [1] : vector<2x128xf32> to vector<2xf32>
    %294 = vector.shape_cast %293 : vector<2xf32> to vector<2x1xf32>
    %cst_57 = arith.constant 0.0883883461 : f32
    %295 = vector.broadcast %cst_57 : f32 to vector<2x1xf32>
    %296 = arith.mulf %294, %295 : vector<2x1xf32>
    %297 = arith.mulf %248, %264 : vector<2x128xf32>
    %cst_58 = arith.constant dense<0.000000e+00> : vector<2xf32>
    %298 = vector.multi_reduction <add>, %297, %cst_58 [1] : vector<2x128xf32> to vector<2xf32>
    %299 = vector.shape_cast %298 : vector<2xf32> to vector<2x1xf32>
    %cst_59 = arith.constant 0.0883883461 : f32
    %300 = vector.broadcast %cst_59 : f32 to vector<2x1xf32>
    %301 = arith.mulf %299, %300 : vector<2x1xf32>
    %302 = arith.mulf %248, %266 : vector<2x128xf32>
    %cst_60 = arith.constant dense<0.000000e+00> : vector<2xf32>
    %303 = vector.multi_reduction <add>, %302, %cst_60 [1] : vector<2x128xf32> to vector<2xf32>
    %304 = vector.shape_cast %303 : vector<2xf32> to vector<2x1xf32>
    %cst_61 = arith.constant 0.0883883461 : f32
    %305 = vector.broadcast %cst_61 : f32 to vector<2x1xf32>
    %306 = arith.mulf %304, %305 : vector<2x1xf32>
    %307 = arith.maximumf %271, %276 : vector<2x1xf32>
    %308 = arith.maximumf %307, %281 : vector<2x1xf32>
    %309 = arith.maximumf %308, %286 : vector<2x1xf32>
    %310 = arith.maximumf %309, %291 : vector<2x1xf32>
    %311 = arith.maximumf %310, %296 : vector<2x1xf32>
    %312 = arith.maximumf %311, %301 : vector<2x1xf32>
    %313 = arith.maximumf %312, %306 : vector<2x1xf32>
    %314 = arith.subf %271, %313 : vector<2x1xf32>
    %315 = math.exp %314 : vector<2x1xf32>
    %316 = arith.subf %276, %313 : vector<2x1xf32>
    %317 = math.exp %316 : vector<2x1xf32>
    %318 = arith.subf %281, %313 : vector<2x1xf32>
    %319 = math.exp %318 : vector<2x1xf32>
    %320 = arith.subf %286, %313 : vector<2x1xf32>
    %321 = math.exp %320 : vector<2x1xf32>
    %322 = arith.subf %291, %313 : vector<2x1xf32>
    %323 = math.exp %322 : vector<2x1xf32>
    %324 = arith.subf %296, %313 : vector<2x1xf32>
    %325 = math.exp %324 : vector<2x1xf32>
    %326 = arith.subf %301, %313 : vector<2x1xf32>
    %327 = math.exp %326 : vector<2x1xf32>
    %328 = arith.subf %306, %313 : vector<2x1xf32>
    %329 = math.exp %328 : vector<2x1xf32>
    %330 = arith.addf %315, %317 : vector<2x1xf32>
    %331 = arith.addf %330, %319 : vector<2x1xf32>
    %332 = arith.addf %331, %321 : vector<2x1xf32>
    %333 = arith.addf %332, %323 : vector<2x1xf32>
    %334 = arith.addf %333, %325 : vector<2x1xf32>
    %335 = arith.addf %334, %327 : vector<2x1xf32>
    %336 = arith.addf %335, %329 : vector<2x1xf32>
    %337 = tpu.reciprocal %336 {approx = true} : vector<2x1xf32> -> vector<2x1xf32>
    %338 = arith.mulf %315, %337 : vector<2x1xf32>
    %339 = vector.broadcast %338 : vector<2x1xf32> to vector<2x128xf32>
    %340 = arith.mulf %339, %252 : vector<2x128xf32>
    %341 = arith.mulf %317, %337 : vector<2x1xf32>
    %342 = vector.broadcast %341 : vector<2x1xf32> to vector<2x128xf32>
    %343 = arith.mulf %342, %254 : vector<2x128xf32>
    %344 = arith.addf %340, %343 : vector<2x128xf32>
    %345 = arith.mulf %319, %337 : vector<2x1xf32>
    %346 = vector.broadcast %345 : vector<2x1xf32> to vector<2x128xf32>
    %347 = arith.mulf %346, %256 : vector<2x128xf32>
    %348 = arith.addf %344, %347 : vector<2x128xf32>
    %349 = arith.mulf %321, %337 : vector<2x1xf32>
    %350 = vector.broadcast %349 : vector<2x1xf32> to vector<2x128xf32>
    %351 = arith.mulf %350, %258 : vector<2x128xf32>
    %352 = arith.addf %348, %351 : vector<2x128xf32>
    %353 = arith.mulf %323, %337 : vector<2x1xf32>
    %354 = vector.broadcast %353 : vector<2x1xf32> to vector<2x128xf32>
    %355 = arith.mulf %354, %260 : vector<2x128xf32>
    %356 = arith.addf %352, %355 : vector<2x128xf32>
    %357 = arith.mulf %325, %337 : vector<2x1xf32>
    %358 = vector.broadcast %357 : vector<2x1xf32> to vector<2x128xf32>
    %359 = arith.mulf %358, %262 : vector<2x128xf32>
    %360 = arith.addf %356, %359 : vector<2x128xf32>
    %361 = arith.mulf %327, %337 : vector<2x1xf32>
    %362 = vector.broadcast %361 : vector<2x1xf32> to vector<2x128xf32>
    %363 = arith.mulf %362, %264 : vector<2x128xf32>
    %364 = arith.addf %360, %363 : vector<2x128xf32>
    %365 = arith.mulf %329, %337 : vector<2x1xf32>
    %366 = vector.broadcast %365 : vector<2x1xf32> to vector<2x128xf32>
    %367 = arith.mulf %366, %266 : vector<2x128xf32>
    %368 = arith.addf %364, %367 : vector<2x128xf32>
    %369 = arith.truncf %126 : vector<2x128xf32> to vector<2x128xbf16>
    %c0_62 = arith.constant 0 : index
    %c0_63 = arith.constant 0 : index
    %370 = vector.load %arg7[%c0_62, %c0_63] : memref<128x512xbf16, #tpu.memory_space<vmem>>, vector<128x512xbf16>
    %cst_64 = arith.constant dense<0.000000e+00> : vector<2x512xf32>
    %371 = tpu.matmul %369, %370, %cst_64 {dimension_numbers = #tpu.dot_dimension_numbers<[1], [0], [0], [1], [0, 0, 1, 1], [], []>} : vector<2x128xbf16>, vector<128x512xbf16>, vector<2x512xf32> -> vector<2x512xf32>
    %c0_65 = arith.constant 0 : index
    %c0_66 = arith.constant 0 : index
    %372 = vector.load %arg8[%c0_65, %c0_66] : memref<1x512xf32, #tpu.memory_space<vmem>>, vector<1x512xf32>
    %373 = vector.broadcast %372 : vector<1x512xf32> to vector<2x512xf32>
    %374 = arith.addf %371, %373 : vector<2x512xf32>
    %cst_67 = arith.constant 0.000000e+00 : f32
    %375 = vector.broadcast %cst_67 : f32 to vector<2x512xf32>
    %376 = arith.maximumf %374, %375 : vector<2x512xf32>
    %377 = arith.truncf %247 : vector<2x256xf32> to vector<2x256xbf16>
    %c0_68 = arith.constant 0 : index
    %c0_69 = arith.constant 0 : index
    %378 = vector.load %arg9[%c0_68, %c0_69] : memref<256x512xbf16, #tpu.memory_space<vmem>>, vector<256x512xbf16>
    %cst_70 = arith.constant dense<0.000000e+00> : vector<2x512xf32>
    %379 = tpu.matmul %377, %378, %cst_70 {dimension_numbers = #tpu.dot_dimension_numbers<[1], [0], [0], [1], [0, 0, 1, 1], [], []>} : vector<2x256xbf16>, vector<256x512xbf16>, vector<2x512xf32> -> vector<2x512xf32>
    %c0_71 = arith.constant 0 : index
    %c0_72 = arith.constant 0 : index
    %380 = vector.load %arg10[%c0_71, %c0_72] : memref<1x512xf32, #tpu.memory_space<vmem>>, vector<1x512xf32>
    %381 = vector.broadcast %380 : vector<1x512xf32> to vector<2x512xf32>
    %382 = arith.addf %379, %381 : vector<2x512xf32>
    %cst_73 = arith.constant 0.000000e+00 : f32
    %383 = vector.broadcast %cst_73 : f32 to vector<2x512xf32>
    %384 = arith.maximumf %382, %383 : vector<2x512xf32>
    %385 = arith.truncf %368 : vector<2x128xf32> to vector<2x128xbf16>
    %c0_74 = arith.constant 0 : index
    %c0_75 = arith.constant 0 : index
    %386 = vector.load %arg11[%c0_74, %c0_75] : memref<128x512xbf16, #tpu.memory_space<vmem>>, vector<128x512xbf16>
    %cst_76 = arith.constant dense<0.000000e+00> : vector<2x512xf32>
    %387 = tpu.matmul %385, %386, %cst_76 {dimension_numbers = #tpu.dot_dimension_numbers<[1], [0], [0], [1], [0, 0, 1, 1], [], []>} : vector<2x128xbf16>, vector<128x512xbf16>, vector<2x512xf32> -> vector<2x512xf32>
    %c0_77 = arith.constant 0 : index
    %c0_78 = arith.constant 0 : index
    %388 = vector.load %arg12[%c0_77, %c0_78] : memref<1x512xf32, #tpu.memory_space<vmem>>, vector<1x512xf32>
    %389 = vector.broadcast %388 : vector<1x512xf32> to vector<2x512xf32>
    %390 = arith.addf %387, %389 : vector<2x512xf32>
    %cst_79 = arith.constant 0.000000e+00 : f32
    %391 = vector.broadcast %cst_79 : f32 to vector<2x512xf32>
    %392 = arith.maximumf %390, %391 : vector<2x512xf32>
    %393 = arith.mulf %376, %376 : vector<2x512xf32>
    %cst_80 = arith.constant dense<0.000000e+00> : vector<2xf32>
    %394 = vector.multi_reduction <add>, %393, %cst_80 [1] : vector<2x512xf32> to vector<2xf32>
    %395 = vector.shape_cast %394 : vector<2xf32> to vector<2x1xf32>
    %cst_81 = arith.constant 0.0441941731 : f32
    %396 = vector.broadcast %cst_81 : f32 to vector<2x1xf32>
    %397 = arith.mulf %395, %396 : vector<2x1xf32>
    %398 = arith.mulf %376, %384 : vector<2x512xf32>
    %cst_82 = arith.constant dense<0.000000e+00> : vector<2xf32>
    %399 = vector.multi_reduction <add>, %398, %cst_82 [1] : vector<2x512xf32> to vector<2xf32>
    %400 = vector.shape_cast %399 : vector<2xf32> to vector<2x1xf32>
    %cst_83 = arith.constant 0.0441941731 : f32
    %401 = vector.broadcast %cst_83 : f32 to vector<2x1xf32>
    %402 = arith.mulf %400, %401 : vector<2x1xf32>
    %403 = arith.mulf %376, %392 : vector<2x512xf32>
    %cst_84 = arith.constant dense<0.000000e+00> : vector<2xf32>
    %404 = vector.multi_reduction <add>, %403, %cst_84 [1] : vector<2x512xf32> to vector<2xf32>
    %405 = vector.shape_cast %404 : vector<2xf32> to vector<2x1xf32>
    %cst_85 = arith.constant 0.0441941731 : f32
    %406 = vector.broadcast %cst_85 : f32 to vector<2x1xf32>
    %407 = arith.mulf %405, %406 : vector<2x1xf32>
    %408 = arith.mulf %384, %384 : vector<2x512xf32>
    %cst_86 = arith.constant dense<0.000000e+00> : vector<2xf32>
    %409 = vector.multi_reduction <add>, %408, %cst_86 [1] : vector<2x512xf32> to vector<2xf32>
    %410 = vector.shape_cast %409 : vector<2xf32> to vector<2x1xf32>
    %cst_87 = arith.constant 0.0441941731 : f32
    %411 = vector.broadcast %cst_87 : f32 to vector<2x1xf32>
    %412 = arith.mulf %410, %411 : vector<2x1xf32>
    %413 = arith.mulf %384, %392 : vector<2x512xf32>
    %cst_88 = arith.constant dense<0.000000e+00> : vector<2xf32>
    %414 = vector.multi_reduction <add>, %413, %cst_88 [1] : vector<2x512xf32> to vector<2xf32>
    %415 = vector.shape_cast %414 : vector<2xf32> to vector<2x1xf32>
    %cst_89 = arith.constant 0.0441941731 : f32
    %416 = vector.broadcast %cst_89 : f32 to vector<2x1xf32>
    %417 = arith.mulf %415, %416 : vector<2x1xf32>
    %418 = arith.mulf %392, %392 : vector<2x512xf32>
    %cst_90 = arith.constant dense<0.000000e+00> : vector<2xf32>
    %419 = vector.multi_reduction <add>, %418, %cst_90 [1] : vector<2x512xf32> to vector<2xf32>
    %420 = vector.shape_cast %419 : vector<2xf32> to vector<2x1xf32>
    %cst_91 = arith.constant 0.0441941731 : f32
    %421 = vector.broadcast %cst_91 : f32 to vector<2x1xf32>
    %422 = arith.mulf %420, %421 : vector<2x1xf32>
    %cst_92 = arith.constant 0.000000e+00 : f32
    %423 = vector.broadcast %cst_92 : f32 to vector<2x1xf32>
    %cst_93 = arith.constant 0.000000e+00 : f32
    %424 = vector.broadcast %cst_93 : f32 to vector<2x1xf32>
    %cst_94 = arith.constant 0.000000e+00 : f32
    %425 = vector.broadcast %cst_94 : f32 to vector<2x1xf32>
    %426 = arith.maximumf %397, %402 : vector<2x1xf32>
    %427 = arith.maximumf %426, %407 : vector<2x1xf32>
    %428 = arith.subf %397, %427 : vector<2x1xf32>
    %429 = math.exp %428 : vector<2x1xf32>
    %430 = arith.subf %402, %427 : vector<2x1xf32>
    %431 = math.exp %430 : vector<2x1xf32>
    %432 = arith.subf %407, %427 : vector<2x1xf32>
    %433 = math.exp %432 : vector<2x1xf32>
    %434 = arith.addf %429, %431 : vector<2x1xf32>
    %435 = arith.addf %434, %433 : vector<2x1xf32>
    %436 = tpu.reciprocal %435 {approx = true} : vector<2x1xf32> -> vector<2x1xf32>
    %437 = arith.mulf %429, %436 : vector<2x1xf32>
    %438 = arith.addf %423, %437 : vector<2x1xf32>
    %439 = arith.mulf %431, %436 : vector<2x1xf32>
    %440 = arith.addf %424, %439 : vector<2x1xf32>
    %441 = arith.mulf %433, %436 : vector<2x1xf32>
    %442 = arith.addf %425, %441 : vector<2x1xf32>
    %443 = arith.maximumf %402, %412 : vector<2x1xf32>
    %444 = arith.maximumf %443, %417 : vector<2x1xf32>
    %445 = arith.subf %402, %444 : vector<2x1xf32>
    %446 = math.exp %445 : vector<2x1xf32>
    %447 = arith.subf %412, %444 : vector<2x1xf32>
    %448 = math.exp %447 : vector<2x1xf32>
    %449 = arith.subf %417, %444 : vector<2x1xf32>
    %450 = math.exp %449 : vector<2x1xf32>
    %451 = arith.addf %446, %448 : vector<2x1xf32>
    %452 = arith.addf %451, %450 : vector<2x1xf32>
    %453 = tpu.reciprocal %452 {approx = true} : vector<2x1xf32> -> vector<2x1xf32>
    %454 = arith.mulf %446, %453 : vector<2x1xf32>
    %455 = arith.addf %438, %454 : vector<2x1xf32>
    %456 = arith.mulf %448, %453 : vector<2x1xf32>
    %457 = arith.addf %440, %456 : vector<2x1xf32>
    %458 = arith.mulf %450, %453 : vector<2x1xf32>
    %459 = arith.addf %442, %458 : vector<2x1xf32>
    %460 = arith.maximumf %407, %417 : vector<2x1xf32>
    %461 = arith.maximumf %460, %422 : vector<2x1xf32>
    %462 = arith.subf %407, %461 : vector<2x1xf32>
    %463 = math.exp %462 : vector<2x1xf32>
    %464 = arith.subf %417, %461 : vector<2x1xf32>
    %465 = math.exp %464 : vector<2x1xf32>
    %466 = arith.subf %422, %461 : vector<2x1xf32>
    %467 = math.exp %466 : vector<2x1xf32>
    %468 = arith.addf %463, %465 : vector<2x1xf32>
    %469 = arith.addf %468, %467 : vector<2x1xf32>
    %470 = tpu.reciprocal %469 {approx = true} : vector<2x1xf32> -> vector<2x1xf32>
    %471 = arith.mulf %463, %470 : vector<2x1xf32>
    %472 = arith.addf %455, %471 : vector<2x1xf32>
    %473 = arith.mulf %465, %470 : vector<2x1xf32>
    %474 = arith.addf %457, %473 : vector<2x1xf32>
    %475 = arith.mulf %467, %470 : vector<2x1xf32>
    %476 = arith.addf %459, %475 : vector<2x1xf32>
    %477 = vector.broadcast %472 : vector<2x1xf32> to vector<2x512xf32>
    %478 = arith.mulf %477, %376 : vector<2x512xf32>
    %479 = vector.broadcast %474 : vector<2x1xf32> to vector<2x512xf32>
    %480 = arith.mulf %479, %384 : vector<2x512xf32>
    %481 = arith.addf %478, %480 : vector<2x512xf32>
    %482 = vector.broadcast %476 : vector<2x1xf32> to vector<2x512xf32>
    %483 = arith.mulf %482, %392 : vector<2x512xf32>
    %484 = arith.addf %481, %483 : vector<2x512xf32>
    %cst_95 = arith.constant 0.333333343 : f32
    %485 = vector.broadcast %cst_95 : f32 to vector<2x512xf32>
    %486 = arith.mulf %484, %485 : vector<2x512xf32>
    %487 = arith.truncf %486 : vector<2x512xf32> to vector<2x512xbf16>
    %c0_96 = arith.constant 0 : index
    %c0_97 = arith.constant 0 : index
    %488 = vector.load %arg13[%c0_96, %c0_97] : memref<512x256xbf16, #tpu.memory_space<vmem>>, vector<512x256xbf16>
    %cst_98 = arith.constant dense<0.000000e+00> : vector<2x256xf32>
    %489 = tpu.matmul %487, %488, %cst_98 {dimension_numbers = #tpu.dot_dimension_numbers<[1], [0], [0], [1], [0, 0, 1, 1], [], []>} : vector<2x512xbf16>, vector<512x256xbf16>, vector<2x256xf32> -> vector<2x256xf32>
    %c0_99 = arith.constant 0 : index
    %c0_100 = arith.constant 0 : index
    %490 = vector.load %arg14[%c0_99, %c0_100] : memref<1x256xf32, #tpu.memory_space<vmem>>, vector<1x256xf32>
    %491 = vector.broadcast %490 : vector<1x256xf32> to vector<2x256xf32>
    %492 = arith.addf %489, %491 : vector<2x256xf32>
    %cst_101 = arith.constant 0.000000e+00 : f32
    %493 = vector.broadcast %cst_101 : f32 to vector<2x256xf32>
    %494 = arith.maximumf %492, %493 : vector<2x256xf32>
    %c0_102 = arith.constant 0 : index
    %c0_103 = arith.constant 0 : index
    %495 = vector.load %arg15[%c0_102, %c0_103] : memref<1x256xf32, #tpu.memory_space<vmem>>, vector<1x256xf32>
    %496 = vector.broadcast %495 : vector<1x256xf32> to vector<2x256xf32>
    %497 = arith.mulf %494, %496 : vector<2x256xf32>
    %cst_104 = arith.constant dense<0.000000e+00> : vector<2xf32>
    %498 = vector.multi_reduction <add>, %497, %cst_104 [1] : vector<2x256xf32> to vector<2xf32>
    %499 = vector.shape_cast %498 : vector<2xf32> to vector<2x1xf32>
    %c0_105 = arith.constant 0 : index
    %c0_106 = arith.constant 0 : index
    %500 = vector.load %arg16[%c0_105, %c0_106] : memref<1x1xf32, #tpu.memory_space<vmem>>, vector<1x1xf32>
    %501 = vector.broadcast %500 : vector<1x1xf32> to vector<2x1xf32>
    %502 = arith.addf %499, %501 : vector<2x1xf32>
    %cst_107 = arith.constant 0.000000e+00 : f32
    %503 = vector.broadcast %cst_107 : f32 to vector<2x1xf32>
    %504 = arith.subf %503, %502 : vector<2x1xf32>
    %505 = math.exp %504 : vector<2x1xf32>
    %cst_108 = arith.constant 1.000000e+00 : f32
    %506 = vector.broadcast %cst_108 : f32 to vector<2x1xf32>
    %507 = arith.addf %506, %505 : vector<2x1xf32>
    %cst_109 = arith.constant 1.000000e+00 : f32
    %508 = vector.broadcast %cst_109 : f32 to vector<2x1xf32>
    %509 = arith.divf %508, %507 : vector<2x1xf32>
    %c0_110 = arith.constant 0 : index
    %c0_111 = arith.constant 0 : index
    %510 = vector.load %arg17[%c0_110, %c0_111] : memref<2x1xf32, #tpu.memory_space<vmem>>, vector<2x1xf32>
    tpu.vector_store %arg17[%c0_110, %c0_111], %509 {strides = array<i32>} : memref<2x1xf32, #tpu.memory_space<vmem>>, vector<2x1xf32>,
    return
  }
  func.func @transform_0(%arg0: i32) -> (i32, i32) {
    %c0_i32 = arith.constant 0 : i32
    %c0_i32_0 = arith.constant 0 : i32
    return %arg0, %c0_i32 : i32, i32
  }
  func.func @transform_1(%arg0: i32) -> (i32, i32, i32) {
    %c0_i32 = arith.constant 0 : i32
    %c0_i32_0 = arith.constant 0 : i32
    %c0_i32_1 = arith.constant 0 : i32
    return %arg0, %c0_i32, %c0_i32_0 : i32, i32, i32
  }
  func.func @transform_2(%arg0: i32) -> (i32, i32, i32) {
    %c0_i32 = arith.constant 0 : i32
    %c0_i32_0 = arith.constant 0 : i32
    %c0_i32_1 = arith.constant 0 : i32
    return %arg0, %c0_i32, %c0_i32_0 : i32, i32, i32
  }
  func.func @transform_3(%arg0: i32) -> (i32, i32, i32) {
    %c0_i32 = arith.constant 0 : i32
    %c0_i32_0 = arith.constant 0 : i32
    %c0_i32_1 = arith.constant 0 : i32
    return %arg0, %c0_i32, %c0_i32_0 : i32, i32, i32
  }
  func.func @transform_4(%arg0: i32) -> (i32, i32) {
    %c0_i32 = arith.constant 0 : i32
    %c0_i32_0 = arith.constant 0 : i32
    %c0_i32_1 = arith.constant 0 : i32
    return %c0_i32, %c0_i32_0 : i32, i32
  }
  func.func @transform_5(%arg0: i32) -> (i32, i32) {
    %c0_i32 = arith.constant 0 : i32
    %c0_i32_0 = arith.constant 0 : i32
    %c0_i32_1 = arith.constant 0 : i32
    return %c0_i32, %c0_i32_0 : i32, i32
  }
  func.func @transform_6(%arg0: i32) -> (i32, i32) {
    %c0_i32 = arith.constant 0 : i32
    %c0_i32_0 = arith.constant 0 : i32
    %c0_i32_1 = arith.constant 0 : i32
    return %c0_i32, %c0_i32_0 : i32, i32
  }
  func.func @transform_7(%arg0: i32) -> (i32, i32) {
    %c0_i32 = arith.constant 0 : i32
    %c0_i32_0 = arith.constant 0 : i32
    %c0_i32_1 = arith.constant 0 : i32
    return %c0_i32, %c0_i32_0 : i32, i32
  }
  func.func @transform_8(%arg0: i32) -> (i32, i32) {
    %c0_i32 = arith.constant 0 : i32
    %c0_i32_0 = arith.constant 0 : i32
    %c0_i32_1 = arith.constant 0 : i32
    return %c0_i32, %c0_i32_0 : i32, i32
  }
  func.func @transform_9(%arg0: i32) -> (i32, i32) {
    %c0_i32 = arith.constant 0 : i32
    %c0_i32_0 = arith.constant 0 : i32
    %c0_i32_1 = arith.constant 0 : i32
    return %c0_i32, %c0_i32_0 : i32, i32
  }
  func.func @transform_10(%arg0: i32) -> (i32, i32) {
    %c0_i32 = arith.constant 0 : i32
    %c0_i32_0 = arith.constant 0 : i32
    %c0_i32_1 = arith.constant 0 : i32
    return %c0_i32, %c0_i32_0 : i32, i32
  }
  func.func @transform_11(%arg0: i32) -> (i32, i32) {
    %c0_i32 = arith.constant 0 : i32
    %c0_i32_0 = arith.constant 0 : i32
    %c0_i32_1 = arith.constant 0 : i32
    return %c0_i32, %c0_i32_0 : i32, i32
  }
  func.func @transform_12(%arg0: i32) -> (i32, i32) {
    %c0_i32 = arith.constant 0 : i32
    %c0_i32_0 = arith.constant 0 : i32
    %c0_i32_1 = arith.constant 0 : i32
    return %c0_i32, %c0_i32_0 : i32, i32
  }
  func.func @transform_13(%arg0: i32) -> (i32, i32) {
    %c0_i32 = arith.constant 0 : i32
    %c0_i32_0 = arith.constant 0 : i32
    %c0_i32_1 = arith.constant 0 : i32
    return %c0_i32, %c0_i32_0 : i32, i32
  }
  func.func @transform_14(%arg0: i32) -> (i32, i32) {
    %c0_i32 = arith.constant 0 : i32
    %c0_i32_0 = arith.constant 0 : i32
    %c0_i32_1 = arith.constant 0 : i32
    return %c0_i32, %c0_i32_0 : i32, i32
  }
  func.func @transform_15(%arg0: i32) -> (i32, i32) {
    %c0_i32 = arith.constant 0 : i32
    %c0_i32_0 = arith.constant 0 : i32
    %c0_i32_1 = arith.constant 0 : i32
    return %c0_i32, %c0_i32_0 : i32, i32
  }
  func.func @transform_16(%arg0: i32) -> (i32, i32) {
    %c0_i32 = arith.constant 0 : i32
    %c0_i32_0 = arith.constant 0 : i32
    return %arg0, %c0_i32 : i32, i32
  }
}

</mosaic_0001>

<bundles_post_ra>
// kernel: tpu_custom_call.1
= control target key start
LH: loop header
LB: loop body
LE: loop exit
PB: predicated region body
PF: predicated region fallthrough
CT: control target
= control target key end

     0   :  { %s5208_s0 = inlined_call_operand.hbm [shape: bf16[2,512], index: 0, kind: input, shape index: {}]   ;;  %s5209_s1 = inlined_call_operand.hbm [shape: bf16[2,8,128], index: 1, kind: input, shape index: {}]   ;;  %s5210_s2 = inlined_call_operand.hbm [shape: bf16[2,8,256], index: 2, kind: input, shape index: {}]   ;;  %s5211_s3 = inlined_call_operand.vmem [shape: bf16[2,8,128], index: 3, kind: input, shape index: {}]   ;;  %s5212_s4 = inlined_call_operand.hbm [shape: bf16[512,512], index: 4, kind: input, shape index: {}]   ;;  %s5213_s5 = inlined_call_operand.vmem [shape: f32[1,512], index: 5, kind: input, shape index: {}]   ;;  %s5214_s6 = inlined_call_operand.hbm [shape: bf16[128,512], index: 6, kind: input, shape index: {}]   ;;  %s5215_s7 = inlined_call_operand.vmem [shape: f32[1,512], index: 7, kind: input, shape index: {}]   ;;  %s5216_s8 = inlined_call_operand.hbm [shape: bf16[256,512], index: 8, kind: input, shape index: {}]   ;;  %s5217_s9 = inlined_call_operand.vmem [shape: f32[1,512], index: 9, kind: input, shape index: {}]   ;;  %s5218_s10 = inlined_call_operand.hbm [shape: bf16[128,512], index: 10, kind: input, shape index: {}]   ;;  %s5219_s11 = inlined_call_operand.vmem [shape: f32[1,512], index: 11, kind: input, shape index: {}]   ;;  %s5220_s12 = inlined_call_operand.hbm [shape: bf16[512,256], index: 12, kind: input, shape index: {}]   ;;  %s5221_s13 = inlined_call_operand.vmem [shape: f32[1,256], index: 13, kind: input, shape index: {}]   ;;  %s5222_s14 = inlined_call_operand.vmem [shape: f32[1,256], index: 14, kind: input, shape index: {}]   ;;  %s5223_s15 = inlined_call_operand.<no memory space> [shape: f32[1,1], index: 15, kind: input, shape index: {}]   ;;  %s5224_s16 = inlined_call_operand.vmem [shape: f32[2,1], index: 16, kind: output, shape index: {}]  }
   0x1   :  { %5228 = sst [smem:[#allocation21_spill]] %s5208_s0  ;;  %v21_v0 = vstv %s5223_s15 }
   0x2   :  { %22 = vst [vmem:[#allocation2] sm:$0x1] %v21_v0 }
   0x3   :  { %23 = vsyncpa [#allocation4], 0 }
   0x4   :  { %24 = vsyncpa [#allocation6], 0 }
   0x5   :  { %25 = vsyncpa [#allocation9], 0 }
   0x6   :  { %26 = vsyncpa [#allocation12], 0 }
   0x7   :  { %27 = vsyncpa [#allocation15], 0  ;;  %s4538_s23 = smov [#allocation5]   ;;  %s4352_s27 = scalar_lea.hbm %s5209_s1, 128 }
   0x8   :  { %s43_s24 = sshll.u32 %s4538_s23, 4  ;;  %p4353_p0 = scmp.ne.s32.totalorder %s5209_s1, %s4352_s27  ;;  %s44_s24 = int_to_ptr.vmem [resolvable:$true] %s43_s24 }
   0x9   :  { %p4356_p1 = scmp.lt.u32.totalorder %s4352_s27, %s5209_s1 }
   0xb   :  { %p4358_p2 = pnand %p4356_p1, %p4353_p0 }
   0xd   :  { %4361 = shalt.err (!%p4358_p2)
}
   0xe   :  { %s4362_s15 = scalar_lea.vmem %s44_s24, 128  ;;  %p4367_p4 = scmp.lt.s32.totalorder %s44_s24, %s44_s24 }
   0xf   :  { %p4363_p3 = scmp.ne.s32.totalorder %s44_s24, %s4362_s15  ;;  %p4368_p5 = scmp.lt.s32.totalorder %s4362_s15, %s4362_s15 }
  0x11   :  { %p4369_p6 = por %p4368_p5, %p4367_p4 }
  0x13   :  { %p4370_p7 = pnand %p4369_p6, %p4363_p3 }
  0x15   :  { %4373 = shalt.err (!%p4370_p7)
}
  0x16   :  { %s4539_s17 = smov 64   ;;  %s4540_s18 = smov 4  }
  0x17   :  { %49 = dma.hbm_to_vmem [thread:$0]  %s5209_s1, 128, %s44_s24, [#allocation6], %s4539_s17, %s4539_s17, %s4540_s18  }
  0x18   :  { %s4541_s21 = smov [#allocation8]   ;;  %s4374_s26 = scalar_lea.hbm %s5212_s4, 16384 }
  0x19   :  { %s69_s22 = sshll.u32 %s4541_s21, 4  ;;  %p4375_p8 = scmp.ne.s32.totalorder %s5212_s4, %s4374_s26  ;;  %s70_s22 = int_to_ptr.vmem [resolvable:$true] %s69_s22 }
  0x1a   :  { %p4378_p9 = scmp.lt.u32.totalorder %s4374_s26, %s5212_s4 }
  0x1c   :  { %p4380_p10 = pnand %p4378_p9, %p4375_p8 }
  0x1e   :  { %4383 = shalt.err (!%p4380_p10)
}
  0x1f   :  { %s4384_s0 = scalar_lea.vmem %s70_s22, 16384  ;;  %p4389_p12 = scmp.lt.s32.totalorder %s70_s22, %s70_s22 }
  0x20   :  { %p4385_p11 = scmp.ne.s32.totalorder %s70_s22, %s4384_s0  ;;  %p4390_p13 = scmp.lt.s32.totalorder %s4384_s0, %s4384_s0 }
  0x22   :  { %p4391_p0 = por %p4390_p13, %p4389_p12 }
  0x24   :  { %p4392_p1 = pnand %p4391_p0, %p4385_p11 }
  0x26   :  { %4395 = shalt.err (!%p4392_p1)
}
  0x27   :  { %s4542_s1 = smov 256   ;;  %s4543_s24 = smov 16  }
  0x28   :  { %75 = dma.hbm_to_vmem [thread:$0]  %s5212_s4, 16384, %s70_s22, [#allocation9], %s4542_s1, %s4542_s1, %s4543_s24  }
  0x29   :  { %s4544_s18 = smov [#allocation11]   ;;  %s4545_s20 = smov [#allocation3]  }
  0x2a   :  { %s97_s19 = sshll.u32 %s4544_s18, 4  ;;  %s34_s21 = sshll.u32 %s4545_s20, 4  ;;  %s98_s19 = int_to_ptr.vmem [resolvable:$true] %s97_s19  ;;  %s35_s21 = int_to_ptr.vmem [resolvable:$true] %s34_s21 }
  0x2b   :  { %s4396_s26 = scalar_lea.hbm %s5216_s8, 8192 }
  0x2c   :  { %p4397_p2 = scmp.ne.s32.totalorder %s5216_s8, %s4396_s26  ;;  %p4400_p3 = scmp.lt.u32.totalorder %s4396_s26, %s5216_s8 }
  0x2e   :  { %p4402_p4 = pnand %p4400_p3, %p4397_p2 }
  0x30   :  { %4405 = shalt.err (!%p4402_p4)
}
  0x31   :  { %s4406_s4 = scalar_lea.vmem %s98_s19, 8192  ;;  %p4411_p6 = scmp.lt.s32.totalorder %s98_s19, %s98_s19 }
  0x32   :  { %p4407_p5 = scmp.ne.s32.totalorder %s98_s19, %s4406_s4  ;;  %p4412_p7 = scmp.lt.s32.totalorder %s4406_s4, %s4406_s4 }
  0x34   :  { %p4413_p8 = por %p4412_p7, %p4411_p6 }
  0x36   :  { %p4414_p9 = pnand %p4413_p8, %p4407_p5 }
  0x38   :  { %4417 = shalt.err (!%p4414_p9)
}
  0x39   :  { %103 = dma.hbm_to_vmem [thread:$0]  %s5216_s8, 8192, %s98_s19, [#allocation12], %s4542_s1, %s4542_s1, %s4543_s24  }
  0x3a   :  { %s5229_s18 = sld [smem:[#allocation21_spill]] }
  0x40   :  { %s4418_s20 = scalar_lea.hbm %s5229_s18, 64 }
  0x41   :  { %p4419_p10 = scmp.ne.s32.totalorder %s5229_s18, %s4418_s20  ;;  %p4422_p11 = scmp.lt.u32.totalorder %s4418_s20, %s5229_s18 }
  0x43   :  { %p4424_p12 = pnand %p4422_p11, %p4419_p10 }
  0x45   :  { %4427 = shalt.err (!%p4424_p12)
}
  0x46   :  { %s4428_s28 = scalar_lea.vmem %s35_s21, 64  ;;  %p4433_p0 = scmp.lt.s32.totalorder %s35_s21, %s35_s21 }
  0x47   :  { %p4429_p13 = scmp.ne.s32.totalorder %s35_s21, %s4428_s28  ;;  %p4434_p1 = scmp.lt.s32.totalorder %s4428_s28, %s4428_s28 }
  0x49   :  { %p4435_p2 = por %p4434_p1, %p4433_p0 }
  0x4b   :  { %p4436_p3 = pnand %p4435_p2, %p4429_p13 }
  0x4d   :  { %4439 = shalt.err (!%p4436_p3)
}
  0x4e   :  { %37 = dma.hbm_to_vmem [thread:$0]  %s5229_s18, 64, %s35_s21, [#allocation4]  }
  0x4f   :  { %s4546_s29 = smov [#allocation7]   ;;  %s4440_s0 = scalar_lea.hbm %s5210_s2, 256 }
  0x50   :  { %s55_s30 = sshll.u32 %s4546_s29, 4  ;;  %p4441_p4 = scmp.ne.s32.totalorder %s5210_s2, %s4440_s0  ;;  %s56_s30 = int_to_ptr.vmem [resolvable:$true] %s55_s30 }
  0x51   :  { %p4444_p5 = scmp.lt.u32.totalorder %s4440_s0, %s5210_s2 }
  0x53   :  { %p4446_p6 = pnand %p4444_p5, %p4441_p4 }
  0x55   :  { %4449 = shalt.err (!%p4446_p6)
}
  0x56   :  { %s4450_s25 = scalar_lea.vmem %s56_s30, 256  ;;  %p4455_p8 = scmp.lt.s32.totalorder %s56_s30, %s56_s30 }
  0x57   :  { %p4451_p7 = scmp.ne.s32.totalorder %s56_s30, %s4450_s25  ;;  %p4456_p9 = scmp.lt.s32.totalorder %s4450_s25, %s4450_s25 }
  0x59   :  { %p4457_p10 = por %p4456_p9, %p4455_p8 }
  0x5b   :  { %p4458_p11 = pnand %p4457_p10, %p4451_p7 }
  0x5d   :  { %4461 = shalt.err (!%p4458_p11)
}
  0x5e   :  { %s4547_s21 = smov 128   ;;  %s4548_s18 = smov 8  }
  0x5f   :  { %61 = dma.hbm_to_vmem [thread:$0]  %s5210_s2, 256, %s56_s30, [#allocation6], %s4547_s21, %s4547_s21, %s4548_s18  }
  0x60   :  { %s4549_s28 = smov [#allocation10]   ;;  %s4550_s19 = smov [#allocation13]  }
  0x61   :  { %s83_s8 = sshll.u32 %s4549_s28, 4  ;;  %s111_s29 = sshll.u32 %s4550_s19, 4  ;;  %s84_s8 = int_to_ptr.vmem [resolvable:$true] %s83_s8  ;;  %s112_s29 = int_to_ptr.vmem [resolvable:$true] %s111_s29 }
  0x62   :  { %s4462_s0 = scalar_lea.hbm %s5214_s6, 4096 }
  0x63   :  { %p4463_p12 = scmp.ne.s32.totalorder %s5214_s6, %s4462_s0  ;;  %p4466_p13 = scmp.lt.u32.totalorder %s4462_s0, %s5214_s6 }
  0x65   :  { %p4468_p0 = pnand %p4466_p13, %p4463_p12 }
  0x67   :  { %4471 = shalt.err (!%p4468_p0)
}
  0x68   :  { %s4472_s2 = scalar_lea.vmem %s84_s8, 4096  ;;  %p4477_p2 = scmp.lt.s32.totalorder %s84_s8, %s84_s8 }
  0x69   :  { %p4473_p1 = scmp.ne.s32.totalorder %s84_s8, %s4472_s2  ;;  %p4478_p3 = scmp.lt.s32.totalorder %s4472_s2, %s4472_s2 }
  0x6b   :  { %p4479_p4 = por %p4478_p3, %p4477_p2 }
  0x6d   :  { %p4480_p5 = pnand %p4479_p4, %p4473_p1 }
  0x6f   :  { %4483 = shalt.err (!%p4480_p5)
}
  0x70   :  { %89 = dma.hbm_to_vmem [thread:$0]  %s5214_s6, 4096, %s84_s8, [#allocation9], %s4542_s1, %s4542_s1, %s4543_s24  }
  0x71   :  { %s4484_s28 = scalar_lea.hbm %s5218_s10, 4096 }
  0x72   :  { %p4485_p6 = scmp.ne.s32.totalorder %s5218_s10, %s4484_s28  ;;  %p4488_p7 = scmp.lt.u32.totalorder %s4484_s28, %s5218_s10 }
  0x74   :  { %p4490_p8 = pnand %p4488_p7, %p4485_p6 }
  0x76   :  { %4493 = shalt.err (!%p4490_p8)
}
  0x77   :  { %s4494_s15 = scalar_lea.vmem %s112_s29, 4096  ;;  %p4499_p10 = scmp.lt.s32.totalorder %s112_s29, %s112_s29 }
  0x78   :  { %p4495_p9 = scmp.ne.s32.totalorder %s112_s29, %s4494_s15  ;;  %p4500_p11 = scmp.lt.s32.totalorder %s4494_s15, %s4494_s15 }
  0x7a   :  { %p4501_p12 = por %p4500_p11, %p4499_p10 }
  0x7c   :  { %p4502_p13 = pnand %p4501_p12, %p4495_p9 }
  0x7e   :  { %4505 = shalt.err (!%p4502_p13)
}
  0x7f   :  { %117 = dma.hbm_to_vmem [thread:$0]  %s5218_s10, 4096, %s112_s29, [#allocation12], %s4542_s1, %s4542_s1, %s4543_s24  }
  0x80   :  { %s4551_s17 = smov [#allocation14]   ;;  %s4506_s30 = scalar_lea.hbm %s5220_s12, 8192 }
  0x81   :  { %s125_s20 = sshll.u32 %s4551_s17, 4  ;;  %p4507_p0 = scmp.ne.s32.totalorder %s5220_s12, %s4506_s30  ;;  %s126_s20 = int_to_ptr.vmem [resolvable:$true] %s125_s20 }
  0x82   :  { %p4510_p1 = scmp.lt.u32.totalorder %s4506_s30, %s5220_s12 }
  0x84   :  { %p4512_p2 = pnand %p4510_p1, %p4507_p0 }
  0x86   :  { %4515 = shalt.err (!%p4512_p2)
}
  0x87   :  { %s4516_s19 = scalar_lea.vmem %s126_s20, 8192  ;;  %p4521_p4 = scmp.lt.s32.totalorder %s126_s20, %s126_s20 }
  0x88   :  { %p4517_p3 = scmp.ne.s32.totalorder %s126_s20, %s4516_s19  ;;  %p4522_p5 = scmp.lt.s32.totalorder %s4516_s19, %s4516_s19 }
  0x8a   :  { %p4523_p6 = por %p4522_p5, %p4521_p4 }
  0x8c   :  { %p4524_p7 = pnand %p4523_p6, %p4517_p3 }
  0x8e   :  { %4527 = shalt.err (!%p4524_p7)
}
  0x8f   :  { %131 = dma.hbm_to_vmem [thread:$0]  %s5220_s12, 8192, %s126_s20, [#allocation15], %s4547_s21, %s4547_s21, %s4548_s18  }
  0x90   :  { %4528 = dma.done.wait [#allocation4], 64  }
  0x91   :  { %4529 = vsyncadd [#allocation4], 4294967232 }
  0x92   :  { %4530 = dma.done.wait [#allocation6], 384  }
  0x93   :  { %4531 = vsyncadd [#allocation6], 4294966912 }
  0x94   :  { %4532 = dma.done.wait [#allocation9], 20480  }
  0x95   :  { %4533 = vsyncadd [#allocation9], 4294946816 }
  0x96   :  { %4534 = dma.done.wait [#allocation12], 12288  }
  0x97   :  { %4535 = vsyncadd [#allocation12], 4294955008 }
  0x98   :  { %4536 = dma.done.wait [#allocation15], 8192  }
  0x99   :  { %4537 = vsyncadd [#allocation15], 4294959104  ;;  %v3790_v1 = vld [vmem:[#allocation8 + $0x4] ss:$16 sps:$4 sm:$0xff]   ;;  %v3792_v2 = vld [vmem:[#allocation8] ss:$16 sps:$4 sm:$0xff]   ;;  %v294_v38 = vlaneseq }
  0x9a   :  { %983 = vmatprep.subr.bf16.mxu1 %v3790_v1  ;;  %v3793_v3 = vld [vmem:[#allocation8 + $0x204] ss:$16 sps:$4 sm:$0xff]   ;;  %v3795_v4 = vld [vmem:[#allocation8 + $0x200] ss:$16 sps:$4 sm:$0xff]   ;;  %v4552_v39 = vmov 1966171168  }
  0x9b   :  { %984 = vmatpush1.bf16.msra.mxu1 %v3792_v2  ;;  %v3796_v5 = vld [vmem:[#allocation8 + $0x24] ss:$16 sps:$4 sm:$0xff]   ;;  %v3798_v6 = vld [vmem:[#allocation8 + $0x20] ss:$16 sps:$4 sm:$0xff]   ;;  %1024 = vmatprep.subr.bf16.mxu0 %v3793_v3  ;;  %v324_v40 = vunpack.c.l.s4 %v4552_v39  ;;  %v4756_v45 = vshrl.u32 %v294_v38, 7  ;;  %vm1154_vm0 = vcmask 1041409  }
  0x9c   :  { %v3799_v7 = vld [vmem:[#allocation8 + $0x224] ss:$16 sps:$4 sm:$0xff]   ;;  %1025 = vmatpush1.bf16.msra.mxu0 %v3795_v4  ;;  %985 = vmatprep.subr.bf16.mxu1 %v3796_v5  ;;  %v3801_v8 = vld [vmem:[#allocation8 + $0x220] ss:$16 sps:$4 sm:$0xff]   ;;  %v3922_v38 = vld [vmem:[#allocation8 + $0x188] ss:$16 sps:$4 sm:$0xff]  }
  0x9d   :  { %1026 = vmatprep.subr.bf16.mxu0 %v3799_v7  ;;  %v3802_v9 = vld [vmem:[#allocation8 + $0x44] ss:$16 sps:$4 sm:$0xff]   ;;  %v3804_v10 = vld [vmem:[#allocation8 + $0x40] ss:$16 sps:$4 sm:$0xff]   ;;  %v325_v46 = vunpack.c.0.s8 %v324_v40  ;;  %v3927_v39 = vld [vmem:[#allocation8 + $0x1ac] ss:$16 sps:$4 sm:$0xff]  }
  0x9e   :  { %v3805_v11 = vld [vmem:[#allocation8 + $0x244] ss:$16 sps:$4 sm:$0xff]   ;;  %v3807_v13 = vld [vmem:[#allocation8 + $0x240] ss:$16 sps:$4 sm:$0xff]   ;;  %v3925_v40 = vld [vmem:[#allocation8 + $0x1a8] ss:$16 sps:$4 sm:$0xff]  }
  0x9f   :  { %986 = vmatpush1.bf16.msra.mxu1 %v3798_v6  ;;  %v3808_v12 = vld [vmem:[#allocation8 + $0x64] ss:$16 sps:$4 sm:$0xff]   ;;  %v3810_v15 = vld [vmem:[#allocation8 + $0x60] ss:$16 sps:$4 sm:$0xff]   ;;  %v328_v51 = vsub.s32 %v325_v46, %v4756_v45  ;;  %v3936_v46 = vld [vmem:[#allocation8 + $0x20c] ss:$16 sps:$4 sm:$0xff]  }
  0xa0   :  { %987 = vmatprep.subr.bf16.mxu1 %v3802_v9  ;;  %1027 = vmatpush1.bf16.msra.mxu0 %v3801_v8  ;;  %v3811_v14 = vld [vmem:[#allocation8 + $0x264] ss:$16 sps:$4 sm:$0xff]   ;;  %v3813_v17 = vld [vmem:[#allocation8 + $0x260] ss:$16 sps:$4 sm:$0xff]   ;;  %vm1158_vm1 = vcmask 1041408   ;;  %vm3417_vm2 = vcmask 1024  }
  0xa1   :  { %1028 = vmatprep.subr.bf16.mxu0 %v3805_v11  ;;  %v3814_v16 = vld [vmem:[#allocation8 + $0x84] ss:$16 sps:$4 sm:$0xff]   ;;  %v3816_v19 = vld [vmem:[#allocation8 + $0x80] ss:$16 sps:$4 sm:$0xff]   ;;  %v3888_v11 = vld [vmem:[#allocation8 + $0xc] ss:$16 sps:$4 sm:$0xff]  }
  0xa2   :  { %v3817_v18 = vld [vmem:[#allocation8 + $0x284] ss:$16 sps:$4 sm:$0xff]   ;;  %v3819_v21 = vld [vmem:[#allocation8 + $0x280] ss:$16 sps:$4 sm:$0xff]  }
  0xa3   :  { %988 = vmatpush1.bf16.msra.mxu1 %v3804_v10  ;;  %v3820_v20 = vld [vmem:[#allocation8 + $0xa4] ss:$16 sps:$4 sm:$0xff]   ;;  %v3822_v23 = vld [vmem:[#allocation8 + $0xa0] ss:$16 sps:$4 sm:$0xff]  }
  0xa4   :  { %989 = vmatprep.subr.bf16.mxu1 %v3808_v12  ;;  %1029 = vmatpush1.bf16.msra.mxu0 %v3807_v13  ;;  %v3823_v22 = vld [vmem:[#allocation8 + $0x2a4] ss:$16 sps:$4 sm:$0xff]   ;;  %v3825_v25 = vld [vmem:[#allocation8 + $0x2a0] ss:$16 sps:$4 sm:$0xff]   ;;  %v3886_v13 = vld [vmem:[#allocation8 + $0x8] ss:$16 sps:$4 sm:$0xff]  }
  0xa5   :  { %1030 = vmatprep.subr.bf16.mxu0 %v3811_v14  ;;  %v3826_v24 = vld [vmem:[#allocation8 + $0xc4] ss:$16 sps:$4 sm:$0xff]   ;;  %v3828_v27 = vld [vmem:[#allocation8 + $0xc0] ss:$16 sps:$4 sm:$0xff]  }
  0xa6   :  { %v3829_v26 = vld [vmem:[#allocation8 + $0x2c4] ss:$16 sps:$4 sm:$0xff]   ;;  %v3831_v29 = vld [vmem:[#allocation8 + $0x2c0] ss:$16 sps:$4 sm:$0xff]  }
  0xa7   :  { %990 = vmatpush1.bf16.msra.mxu1 %v3810_v15  ;;  %v3832_v28 = vld [vmem:[#allocation8 + $0xe4] ss:$16 sps:$4 sm:$0xff]   ;;  %v3834_v31 = vld [vmem:[#allocation8 + $0xe0] ss:$16 sps:$4 sm:$0xff]   ;;  %v3891_v15 = vld [vmem:[#allocation8 + $0x2c] ss:$16 sps:$4 sm:$0xff]  }
  0xa8   :  { %991 = vmatprep.subr.bf16.mxu1 %v3814_v16  ;;  %1031 = vmatpush1.bf16.msra.mxu0 %v3813_v17  ;;  %v3835_v30 = vld [vmem:[#allocation8 + $0x2e4] ss:$16 sps:$4 sm:$0xff]   ;;  %v3837_v33 = vld [vmem:[#allocation8 + $0x2e0] ss:$16 sps:$4 sm:$0xff]   ;;  %v3889_v16 = vld [vmem:[#allocation8 + $0x28] ss:$16 sps:$4 sm:$0xff]  }
  0xa9   :  { %1032 = vmatprep.subr.bf16.mxu0 %v3817_v18  ;;  %v3838_v32 = vld [vmem:[#allocation8 + $0x104] ss:$16 sps:$4 sm:$0xff]   ;;  %v3840_v35 = vld [vmem:[#allocation8 + $0x100] ss:$16 sps:$4 sm:$0xff]   ;;  %v3894_v17 = vld [vmem:[#allocation8 + $0x4c] ss:$16 sps:$4 sm:$0xff]  }
  0xaa   :  { %v3841_v34 = vld [vmem:[#allocation8 + $0x304] ss:$16 sps:$4 sm:$0xff]   ;;  %v3843_v37 = vld [vmem:[#allocation8 + $0x300] ss:$16 sps:$4 sm:$0xff]   ;;  %v3892_v18 = vld [vmem:[#allocation8 + $0x48] ss:$16 sps:$4 sm:$0xff]  }
  0xab   :  { %992 = vmatpush1.bf16.msra.mxu1 %v3816_v19  ;;  %v3844_v36 = vld [vmem:[#allocation8 + $0x124] ss:$16 sps:$4 sm:$0xff]   ;;  %v3846_v42 = vld [vmem:[#allocation8 + $0x120] ss:$16 sps:$4 sm:$0xff]   ;;  %v3897_v19 = vld [vmem:[#allocation8 + $0x6c] ss:$16 sps:$4 sm:$0xff]  }
  0xac   :  { %993 = vmatprep.subr.bf16.mxu1 %v3820_v20  ;;  %1033 = vmatpush1.bf16.msra.mxu0 %v3819_v21  ;;  %v3847_v41 = vld [vmem:[#allocation8 + $0x324] ss:$16 sps:$4 sm:$0xff]   ;;  %v3849_v44 = vld [vmem:[#allocation8 + $0x320] ss:$16 sps:$4 sm:$0xff]   ;;  %v3895_v20 = vld [vmem:[#allocation8 + $0x68] ss:$16 sps:$4 sm:$0xff]  }
  0xad   :  { %1034 = vmatprep.subr.bf16.mxu0 %v3823_v22  ;;  %v3850_v43 = vld [vmem:[#allocation8 + $0x144] ss:$16 sps:$4 sm:$0xff]   ;;  %v3852_v48 = vld [vmem:[#allocation8 + $0x140] ss:$16 sps:$4 sm:$0xff]   ;;  %v3900_v21 = vld [vmem:[#allocation8 + $0x8c] ss:$16 sps:$4 sm:$0xff]  }
  0xae   :  { %v3853_v47 = vld [vmem:[#allocation8 + $0x344] ss:$16 sps:$4 sm:$0xff]   ;;  %v3855_v50 = vld [vmem:[#allocation8 + $0x340] ss:$16 sps:$4 sm:$0xff]   ;;  %v3898_v22 = vld [vmem:[#allocation8 + $0x88] ss:$16 sps:$4 sm:$0xff]  }
  0xaf   :  { %994 = vmatpush1.bf16.msra.mxu1 %v3822_v23  ;;  %v3856_v49 = vld [vmem:[#allocation8 + $0x164] ss:$16 sps:$4 sm:$0xff]   ;;  %v3858_v54 = vld [vmem:[#allocation8 + $0x160] ss:$16 sps:$4 sm:$0xff]   ;;  %v3903_v23 = vld [vmem:[#allocation8 + $0xac] ss:$16 sps:$4 sm:$0xff]  }
  0xb0   :  { %995 = vmatprep.subr.bf16.mxu1 %v3826_v24  ;;  %1035 = vmatpush1.bf16.msra.mxu0 %v3825_v25  ;;  %v3859_v52 = vld [vmem:[#allocation8 + $0x364] ss:$16 sps:$4 sm:$0xff]   ;;  %v3861_v57 = vld [vmem:[#allocation8 + $0x360] ss:$16 sps:$4 sm:$0xff]   ;;  %v3901_v24 = vld [vmem:[#allocation8 + $0xa8] ss:$16 sps:$4 sm:$0xff]  }
  0xb1   :  { %1036 = vmatprep.subr.bf16.mxu0 %v3829_v26  ;;  %v3428_v53 = vld.sshfl [vmem:[#allocation3] sm:$0x33 pattern:$0x75316420]  ;;  %v3864_v60 = vld [vmem:[#allocation8 + $0x180] ss:$16 sps:$4 sm:$0xff]  }
  0xb2   :  { %v322_v55 = vcombine.high %v3428_v53, %v3428_v53  ;;  %v3862_v56 = vld [vmem:[#allocation8 + $0x184] ss:$16 sps:$4 sm:$0xff]   ;;  %v3867_v63 = vld [vmem:[#allocation8 + $0x380] ss:$16 sps:$4 sm:$0xff]   ;;  %v4762_v10 = vrot.slane %v3428_v53, %v328_v51  ;;  %v3906_v25 = vld [vmem:[#allocation8 + $0xcc] ss:$16 sps:$4 sm:$0xff]  }
  0xb3   :  { %996 = vmatpush1.bf16.msra.mxu1 %v3828_v27  ;;  %v3865_v59 = vld [vmem:[#allocation8 + $0x384] ss:$16 sps:$4 sm:$0xff]   ;;  %v3870_v1 = vld [vmem:[#allocation8 + $0x1a0] ss:$16 sps:$4 sm:$0xff]   ;;  %v3904_v26 = vld [vmem:[#allocation8 + $0xc8] ss:$16 sps:$4 sm:$0xff]  }
  0xb4   :  { %997 = vmatprep.subr.bf16.mxu1 %v3832_v28  ;;  %1037 = vmatpush1.bf16.msra.mxu0 %v3831_v29  ;;  %v336_v58 = vrot.slane %v322_v55, %v328_v51  ;;  %v3868_v62 = vld [vmem:[#allocation8 + $0x1a4] ss:$16 sps:$4 sm:$0xff]   ;;  %v3873_v3 = vld [vmem:[#allocation8 + $0x3a0] ss:$16 sps:$4 sm:$0xff]   ;;  %v4766_v14 = vcombine.high %v4762_v10, %v4762_v10  ;;  %v3909_v27 = vld [vmem:[#allocation8 + $0xec] ss:$16 sps:$4 sm:$0xff]  }
  0xb5   :  { %1038 = vmatprep.subr.bf16.mxu0 %v3835_v30  ;;  %v3871_v0 = vld [vmem:[#allocation8 + $0x3a4] ss:$16 sps:$4 sm:$0xff]   ;;  %v3876_v5 = vld [vmem:[#allocation8 + $0x1c0] ss:$16 sps:$4 sm:$0xff]   ;;  %v3907_v28 = vld [vmem:[#allocation8 + $0xe8] ss:$16 sps:$4 sm:$0xff]  }
  0xb6   :  { %1015 = vmatprep.mubr.bf16.mxu1 %v336_v58  ;;  %v4759_v61 = vcombine.high %v336_v58, %v336_v58  ;;  %v3874_v2 = vld [vmem:[#allocation8 + $0x1c4] ss:$16 sps:$4 sm:$0xff]   ;;  %v3879_v7 = vld [vmem:[#allocation8 + $0x3c0] ss:$16 sps:$4 sm:$0xff]   ;;  %v3912_v29 = vld [vmem:[#allocation8 + $0x10c] ss:$16 sps:$4 sm:$0xff]  }
  0xb7   :  { %998 = vmatpush1.bf16.msra.mxu1 %v3834_v31  ;;  %v3877_v4 = vld [vmem:[#allocation8 + $0x3c4] ss:$16 sps:$4 sm:$0xff]   ;;  %v3882_v9 = vld [vmem:[#allocation8 + $0x1e0] ss:$16 sps:$4 sm:$0xff]   ;;  %v3910_v30 = vld [vmem:[#allocation8 + $0x108] ss:$16 sps:$4 sm:$0xff]  }
  0xb8   :  { %999 = vmatprep.subr.bf16.mxu1 %v3838_v32  ;;  %1039 = vmatpush1.bf16.msra.mxu0 %v3837_v33  ;;  %v3880_v6 = vld [vmem:[#allocation8 + $0x1e4] ss:$16 sps:$4 sm:$0xff]   ;;  %v3885_v12 = vld [vmem:[#allocation8 + $0x3e0] ss:$16 sps:$4 sm:$0xff]   ;;  %v3915_v31 = vld [vmem:[#allocation8 + $0x12c] ss:$16 sps:$4 sm:$0xff]  }
  0xb9   :  { %1040 = vmatprep.subr.bf16.mxu0 %v3841_v34  ;;  %1056 = vmatprep.mubr.bf16.mxu0 %v4759_v61  ;;  %v3883_v8 = vld [vmem:[#allocation8 + $0x3e4] ss:$16 sps:$4 sm:$0xff]   ;;  %v3913_v32 = vld [vmem:[#allocation8 + $0x128] ss:$16 sps:$4 sm:$0xff]   ;;  %v3918_v33 = vld [vmem:[#allocation8 + $0x14c] ss:$16 sps:$4 sm:$0xff]  }
  0xba   :  { %v3916_v34 = vld [vmem:[#allocation8 + $0x148] ss:$16 sps:$4 sm:$0xff]  }
  0xbb   :  { %1000 = vmatpush1.bf16.msra.mxu1 %v3840_v35  ;;  %v3921_v35 = vld [vmem:[#allocation8 + $0x16c] ss:$16 sps:$4 sm:$0xff]   ;;  %v3940_v51 = vld [vmem:[#allocation8 + $0x248] ss:$16 sps:$4 sm:$0xff]  }
  0xbc   :  { %1001 = vmatprep.subr.bf16.mxu1 %v3844_v36  ;;  %1041 = vmatpush1.bf16.msra.mxu0 %v3843_v37  ;;  %v3919_v36 = vld [vmem:[#allocation8 + $0x168] ss:$16 sps:$4 sm:$0xff]   ;;  %v3924_v37 = vld [vmem:[#allocation8 + $0x18c] ss:$16 sps:$4 sm:$0xff]  }
  0xbd   :  { %1042 = vmatprep.subr.bf16.mxu0 %v3847_v41  ;;  %v3930_v41 = vld [vmem:[#allocation8 + $0x1cc] ss:$16 sps:$4 sm:$0xff]   ;;  %v3943_v53 = vld [vmem:[#allocation8 + $0x268] ss:$16 sps:$4 sm:$0xff]  }
  0xbe   :  { %v3946_v55 = vld [vmem:[#allocation8 + $0x288] ss:$16 sps:$4 sm:$0xff]  }
  0xbf   :  { %1002 = vmatpush1.bf16.msra.mxu1 %v3846_v42  ;;  %v3928_v42 = vld [vmem:[#allocation8 + $0x1c8] ss:$16 sps:$4 sm:$0xff]  }
  0xc0   :  { %1003 = vmatprep.subr.bf16.mxu1 %v3850_v43  ;;  %1043 = vmatpush1.bf16.msra.mxu0 %v3849_v44  ;;  %v3933_v43 = vld [vmem:[#allocation8 + $0x1ec] ss:$16 sps:$4 sm:$0xff]   ;;  %v3931_v44 = vld [vmem:[#allocation8 + $0x1e8] ss:$16 sps:$4 sm:$0xff]  }
  0xc1   :  { %1044 = vmatprep.subr.bf16.mxu0 %v3853_v47  ;;  %v3934_v47 = vld [vmem:[#allocation8 + $0x208] ss:$16 sps:$4 sm:$0xff]  }
  0xc3   :  { %1004 = vmatpush1.bf16.msra.mxu1 %v3852_v48  ;;  %v3939_v48 = vld [vmem:[#allocation8 + $0x22c] ss:$16 sps:$4 sm:$0xff]  }
  0xc4   :  { %1005 = vmatprep.subr.bf16.mxu1 %v3856_v49  ;;  %1045 = vmatpush1.bf16.msra.mxu0 %v3855_v50  ;;  %v3937_v49 = vld [vmem:[#allocation8 + $0x228] ss:$16 sps:$4 sm:$0xff]   ;;  %v3942_v50 = vld [vmem:[#allocation8 + $0x24c] ss:$16 sps:$4 sm:$0xff]  }
  0xc5   :  { %1046 = vmatprep.subr.bf16.mxu0 %v3859_v52  ;;  %v3945_v52 = vld [vmem:[#allocation8 + $0x26c] ss:$16 sps:$4 sm:$0xff]  }
  0xc7   :  { %1006 = vmatpush1.bf16.msra.mxu1 %v3858_v54  ;;  %v3948_v54 = vld [vmem:[#allocation8 + $0x28c] ss:$16 sps:$4 sm:$0xff]  }
  0xc8   :  { %1007 = vmatprep.subr.bf16.mxu1 %v3862_v56  ;;  %1047 = vmatpush1.bf16.msra.mxu0 %v3861_v57  ;;  %v3951_v56 = vld [vmem:[#allocation8 + $0x2ac] ss:$16 sps:$4 sm:$0xff]   ;;  %v3949_v57 = vld [vmem:[#allocation8 + $0x2a8] ss:$16 sps:$4 sm:$0xff]  }
  0xc9   :  { %1048 = vmatprep.subr.bf16.mxu0 %v3865_v59  ;;  %v3952_v59 = vld [vmem:[#allocation8 + $0x2c8] ss:$16 sps:$4 sm:$0xff]  }
  0xcb   :  { %1008 = vmatpush1.bf16.msra.mxu1 %v3864_v60  ;;  %v3957_v60 = vld [vmem:[#allocation8 + $0x2ec] ss:$16 sps:$4 sm:$0xff]  }
  0xcc   :  { %1009 = vmatprep.subr.bf16.mxu1 %v3868_v62  ;;  %1049 = vmatpush1.bf16.msra.mxu0 %v3867_v63  ;;  %v3960_v62 = vld [vmem:[#allocation8 + $0x30c] ss:$16 sps:$4 sm:$0xff]   ;;  %v3958_v63 = vld [vmem:[#allocation8 + $0x308] ss:$16 sps:$4 sm:$0xff]  }
  0xcd   :  { %1050 = vmatprep.subr.bf16.mxu0 %v3871_v0  ;;  %v3963_v0 = vld [vmem:[#allocation8 + $0x32c] ss:$16 sps:$4 sm:$0xff]  }
  0xcf   :  { %1010 = vmatpush1.bf16.msra.mxu1 %v3870_v1  ;;  %v3961_v1 = vld [vmem:[#allocation8 + $0x328] ss:$16 sps:$4 sm:$0xff]  }
  0xd0   :  { %1011 = vmatprep.subr.bf16.mxu1 %v3874_v2  ;;  %1051 = vmatpush1.bf16.msra.mxu0 %v3873_v3  ;;  %v3966_v2 = vld [vmem:[#allocation8 + $0x34c] ss:$16 sps:$4 sm:$0xff]   ;;  %v3964_v3 = vld [vmem:[#allocation8 + $0x348] ss:$16 sps:$4 sm:$0xff]  }
  0xd1   :  { %1052 = vmatprep.subr.bf16.mxu0 %v3877_v4  ;;  %v3969_v4 = vld [vmem:[#allocation8 + $0x36c] ss:$16 sps:$4 sm:$0xff]  }
  0xd3   :  { %1012 = vmatpush1.bf16.msra.mxu1 %v3876_v5  ;;  %v3967_v5 = vld [vmem:[#allocation8 + $0x368] ss:$16 sps:$4 sm:$0xff]  }
  0xd4   :  { %1013 = vmatprep.subr.bf16.mxu1 %v3880_v6  ;;  %1053 = vmatpush1.bf16.msra.mxu0 %v3879_v7  ;;  %v3972_v6 = vld [vmem:[#allocation8 + $0x38c] ss:$16 sps:$4 sm:$0xff]   ;;  %v3970_v7 = vld [vmem:[#allocation8 + $0x388] ss:$16 sps:$4 sm:$0xff]  }
  0xd5   :  { %1054 = vmatprep.subr.bf16.mxu0 %v3883_v8  ;;  %v3975_v8 = vld [vmem:[#allocation8 + $0x3ac] ss:$16 sps:$4 sm:$0xff]  }
  0xd7   :  { %1014 = vmatpush1.bf16.msra.mxu1 %v3882_v9  ;;  %v3973_v9 = vld [vmem:[#allocation8 + $0x3a8] ss:$16 sps:$4 sm:$0xff]  }
  0xd8   :  { %1065 = vmatprep.subr.bf16.mxu1 %v3888_v11  ;;  %1055 = vmatpush1.bf16.msra.mxu0 %v3885_v12  ;;  %v3976_v11 = vld [vmem:[#allocation8 + $0x3c8] ss:$16 sps:$4 sm:$0xff]   ;;  %v3981_v12 = vld [vmem:[#allocation8 + $0x3ec] ss:$16 sps:$4 sm:$0xff]  }
  0xda   :  { %1016 = vmatmul.mubr.bf16.vlgmr.msra.gmra.mrb[0].mxu1 %v4762_v10 }
  0xdb   :  { %1066 = vmatpush1.bf16.msra.mxu1 %v3886_v13  ;;  %1097 = vmatprep.mubr.bf16.mxu1 %v336_v58  ;;  %v3954_v58 = vld [vmem:[#allocation8 + $0x2cc] ss:$16 sps:$4 sm:$0xff]   ;;  %v3979_v13 = vld [vmem:[#allocation8 + $0x3e8] ss:$16 sps:$4 sm:$0xff]  }
  0xdc   :  { %1057 = vmatmul.mubr.bf16.vlgmr.msra.gmra.mrb[0].mxu0 %v4766_v14  ;;  %1067 = vmatprep.subr.bf16.mxu1 %v3891_v15  ;;  %v3751_v15 = vld [vmem:[#allocation5] sm:$0xff]  }
  0xdf   :  { %1068 = vmatpush1.bf16.msra.mxu1 %v3889_v16  ;;  %v4774_v16 = vsub.s32 0, %v4756_v45 }
  0xe0   :  { %1069 = vmatprep.subr.bf16.mxu1 %v3894_v17  ;;  %v4779_v17 = vld [vmem:[%s5213_s5] sm:$0xf] }
  0xe3   :  { %1070 = vmatpush1.bf16.msra.mxu1 %v3892_v18  ;;  %v4782_v18 = vsub.s32 1, %v4756_v45 }
  0xe4   :  { %1071 = vmatprep.subr.bf16.mxu1 %v3897_v19  ;;  %v3752_v19 = vunpack.c.l.bf16 %v3751_v15 }
  0xe7   :  { %1072 = vmatpush1.bf16.msra.mxu1 %v3895_v20  ;;  %v3753_v20 = vunpack.c.h.bf16 %v3751_v15  ;;  %v3993_v15 = vld [vmem:[#allocation10 + $0x2c] ss:$16 sps:$4 sm:$0xff]  }
  0xe8   :  { %1073 = vmatprep.subr.bf16.mxu1 %v3900_v21  ;;  %v297_v21 = vrot.slane %v4779_v17, %v4774_v16 }
  0xeb   :  { %1074 = vmatpush1.bf16.msra.mxu1 %v3898_v22  ;;  %v1171_v22 = vrot.slane %v3752_v19, 2 }
  0xec   :  { %1075 = vmatprep.subr.bf16.mxu1 %v3903_v23  ;;  %v1172_v23 = vrot.slane %v3753_v20, 1 }
  0xef   :  { %1076 = vmatpush1.bf16.msra.mxu1 %v3901_v24  ;;  %v1153_v24 = vrot.slane %v3753_v20, 7 }
  0xf0   :  { %1077 = vmatprep.subr.bf16.mxu1 %v3906_v25  ;;  %v1180_v25 = vrot.slane %v3752_v19, 3 }
  0xf3   :  { %1078 = vmatpush1.bf16.msra.mxu1 %v3904_v26  ;;  %v1181_v26 = vrot.slane %v3753_v20, 2 }
  0xf4   :  { %1079 = vmatprep.subr.bf16.mxu1 %v3909_v27  ;;  %v1163_v27 = vrot.slane %v3752_v19, 1 }
  0xf7   :  { %1080 = vmatpush1.bf16.msra.mxu1 %v3907_v28 }
  0xf8   :  { %1081 = vmatprep.subr.bf16.mxu1 %v3912_v29 }
  0xfb   :  { %1082 = vmatpush1.bf16.msra.mxu1 %v3910_v30 }
  0xfc   :  { %1083 = vmatprep.subr.bf16.mxu1 %v3915_v31 }
  0xff   :  { %1084 = vmatpush1.bf16.msra.mxu1 %v3913_v32 }
 0x100   :  { %1085 = vmatprep.subr.bf16.mxu1 %v3918_v33 }
 0x103   :  { %1086 = vmatpush1.bf16.msra.mxu1 %v3916_v34  ;;  %v4789_v34 = vsel %vm1154_vm0, %v1172_v23, %v1171_v22  ;;  %v3994_v22 = vld [vmem:[#allocation10 + $0x40] ss:$16 sps:$4 sm:$0xff]   ;;  %v3997_v23 = vld [vmem:[#allocation10 + $0x48] ss:$16 sps:$4 sm:$0xff]  }
 0x104   :  { %1087 = vmatprep.subr.bf16.mxu1 %v3921_v35  ;;  %v4792_v35 = vsel %vm1154_vm0, %v1153_v24, %v3752_v19  ;;  %v4002_v24 = vld [vmem:[#allocation10 + $0x64] ss:$16 sps:$4 sm:$0xff]  }
 0x107   :  { %1088 = vmatpush1.bf16.msra.mxu1 %v3919_v36 }
 0x108   :  { %1089 = vmatprep.subr.bf16.mxu1 %v3924_v37 }
 0x10b   :  { %1090 = vmatpush1.bf16.msra.mxu1 %v3922_v38 }
 0x10c   :  { %1091 = vmatprep.subr.bf16.mxu1 %v3927_v39  ;;  %v4795_v39 = vsel %vm1154_vm0, %v1181_v26, %v1180_v25  ;;  %v4005_v25 = vld [vmem:[#allocation10 + $0x6c] ss:$16 sps:$4 sm:$0xff]   ;;  %v4000_v26 = vld [vmem:[#allocation10 + $0x60] ss:$16 sps:$4 sm:$0xff]  }
 0x10f   :  { %1092 = vmatpush1.bf16.msra.mxu1 %v3925_v40  ;;  %v4798_v40 = vsel %vm1154_vm0, %v3753_v20, %v1163_v27  ;;  %v5226_v27 = vmov 0  }
 0x110   :  { %1093 = vmatprep.subr.bf16.mxu1 %v3930_v41  ;;  %v1198_v41 = vrot.slane %v3752_v19, 5  ;;  %1883 = vmatprep.mubr.bf16.mxu0 %v5226_v27 }
 0x113   :  { %1094 = vmatpush1.bf16.msra.mxu1 %v3928_v42 }
 0x114   :  { %1095 = vmatprep.subr.bf16.mxu1 %v3933_v43  ;;  %v1199_v43 = vrot.slane %v3753_v20, 4 }
 0x117   :  { %1096 = vmatpush1.bf16.msra.mxu1 %v3931_v44  ;;  %v1189_v44 = vrot.slane %v3752_v19, 4 }
 0x118   :  { %1106 = vmatprep.subr.bf16.mxu1 %v3936_v46  ;;  %v1190_v46 = vrot.slane %v3753_v20, 3 }
 0x11a   :  { %1098 = vmatmul.mubr.bf16.vlgmr.msra.gmra.mrb[4].mxu1 %v4762_v10  ;;  %v3978_v10 = vld [vmem:[#allocation8 + $0x3cc] ss:$16 sps:$4 sm:$0xff]  }
 0x11b   :  { %1107 = vmatpush1.bf16.msra.mxu1 %v3934_v47  ;;  %1138 = vmatprep.mubr.bf16.mxu1 %v4759_v61  ;;  %v3955_v61 = vld [vmem:[#allocation8 + $0x2e8] ss:$16 sps:$4 sm:$0xff]  }
 0x11c   :  { %1108 = vmatprep.subr.bf16.mxu1 %v3939_v48 }
 0x11f   :  { %1109 = vmatpush1.bf16.msra.mxu1 %v3937_v49 }
 0x120   :  { %1110 = vmatprep.subr.bf16.mxu1 %v3942_v50 }
 0x123   :  { %1111 = vmatpush1.bf16.msra.mxu1 %v3940_v51  ;;  %v1216_v51 = vrot.slane %v3752_v19, 7 }
 0x124   :  { %1112 = vmatprep.subr.bf16.mxu1 %v3945_v52  ;;  %v1217_v52 = vrot.slane %v3753_v20, 6 }
 0x127   :  { %1113 = vmatpush1.bf16.msra.mxu1 %v3943_v53 }
 0x128   :  { %1114 = vmatprep.subr.bf16.mxu1 %v3948_v54 }
 0x12b   :  { %1115 = vmatpush1.bf16.msra.mxu1 %v3946_v55 }
 0x12c   :  { %1116 = vmatprep.subr.bf16.mxu1 %v3951_v56 }
 0x12f   :  { %1117 = vmatpush1.bf16.msra.mxu1 %v3949_v57  ;;  %v4809_v57 = vsel %vm1154_vm0, %v1199_v43, %v1198_v41  ;;  %v4020_v41 = vld [vmem:[#allocation10 + $0xc4] ss:$16 sps:$4 sm:$0xff]   ;;  %v4023_v43 = vld [vmem:[#allocation10 + $0xcc] ss:$16 sps:$4 sm:$0xff]  }
 0x130   :  { %1118 = vmatprep.subr.bf16.mxu1 %v3954_v58  ;;  %v4812_v58 = vsel %vm1154_vm0, %v1190_v46, %v1189_v44  ;;  %v4018_v44 = vld [vmem:[#allocation10 + $0xc0] ss:$16 sps:$4 sm:$0xff]   ;;  %v4021_v46 = vld [vmem:[#allocation10 + $0xc8] ss:$16 sps:$4 sm:$0xff]  }
 0x133   :  { %1119 = vmatpush1.bf16.msra.mxu1 %v3952_v59  ;;  %v1207_v59 = vrot.slane %v3752_v19, 6  ;;  %v3988_v19 = vld [vmem:[#allocation10 + $0x20] ss:$16 sps:$4 sm:$0xff]  }
 0x134   :  { %1120 = vmatprep.subr.bf16.mxu1 %v3957_v60  ;;  %v1208_v60 = vrot.slane %v3753_v20, 5  ;;  %v3991_v20 = vld [vmem:[#allocation10 + $0x28] ss:$16 sps:$4 sm:$0xff]  }
 0x137   :  { %1121 = vmatpush1.bf16.msra.mxu1 %v3955_v61 }
 0x138   :  { %1122 = vmatprep.subr.bf16.mxu1 %v3960_v62 }
 0x13b   :  { %1123 = vmatpush1.bf16.msra.mxu1 %v3958_v63 }
 0x13c   :  { %1124 = vmatprep.subr.bf16.mxu1 %v3963_v0 }
 0x13f   :  { %1125 = vmatpush1.bf16.msra.mxu1 %v3961_v1  ;;  %v4819_v1 = vsel %vm1154_vm0, %v1217_v52, %v1216_v51  ;;  %v1287_v51 = vld [vmem:[#allocation7] sm:$0xff]  ;;  %v1288_v52 = vld [vmem:[#allocation7 + $0x8] sm:$0xff] }
 0x140   :  { %1126 = vmatprep.subr.bf16.mxu1 %v3966_v2  ;;  %v4822_v2 = vsel %vm1154_vm0, %v1208_v60, %v1207_v59 }
 0x143   :  { %1127 = vmatpush1.bf16.msra.mxu1 %v3964_v3 }
 0x144   :  { %1128 = vmatprep.subr.bf16.mxu1 %v3969_v4 }
 0x147   :  { %1129 = vmatpush1.bf16.msra.mxu1 %v3967_v5 }
 0x148   :  { %1130 = vmatprep.subr.bf16.mxu1 %v3972_v6 }
 0x14b   :  { %1131 = vmatpush1.bf16.msra.mxu1 %v3970_v7 }
 0x14c   :  { %1132 = vmatprep.subr.bf16.mxu1 %v3975_v8 }
 0x14f   :  { %1133 = vmatpush1.bf16.msra.mxu1 %v3973_v9  ;;  %v3982_v9 = vld [vmem:[#allocation10] ss:$16 sps:$4 sm:$0xff]  }
 0x150   :  { %1134 = vmatprep.subr.bf16.mxu1 %v3978_v10  ;;  %v3984_v10 = vld [vmem:[#allocation10 + $0x4] ss:$16 sps:$4 sm:$0xff]  }
 0x151   :  { %1851 = vmatprep.subr.bf16.mxu0 %v3984_v10  ;;  %v1290_v10 = vunpack.c.h.bf16 %v1287_v51 }
 0x152   :  { %1852 = vmatpush1.bf16.msra.mxu0 %v3982_v9 }
 0x153   :  { %1135 = vmatpush1.bf16.msra.mxu1 %v3976_v11  ;;  %v3985_v11 = vld [vmem:[#allocation10 + $0x8] ss:$16 sps:$4 sm:$0xff]  }
 0x154   :  { %1136 = vmatprep.subr.bf16.mxu1 %v3981_v12  ;;  %v3987_v12 = vld [vmem:[#allocation10 + $0xc] ss:$16 sps:$4 sm:$0xff]  }
 0x157   :  { %1137 = vmatpush1.bf16.msra.mxu1 %v3979_v13  ;;  %v3990_v13 = vld [vmem:[#allocation10 + $0x24] ss:$16 sps:$4 sm:$0xff]  }
 0x158   :  { %1892 = vmatprep.subr.bf16.mxu1 %v3987_v12  ;;  %1853 = vmatprep.subr.bf16.mxu0 %v3990_v13 }
 0x159   :  { %1854 = vmatpush1.bf16.msra.mxu0 %v3988_v19 }
 0x15a   :  { %1139 = vmatmul.mubr.bf16.vlgmr.msra.gmra.mrb[4].mxu1 %v4766_v14  ;;  %v301_v14 = vrot.slane %v4779_v17, %v4782_v18 }
 0x15b   :  { %1893 = vmatpush1.bf16.msra.mxu1 %v3985_v11  ;;  %1924 = vmatprep.mubr.bf16.mxu1 %v5226_v27  ;;  %v1292_v11 = vunpack.c.h.bf16 %v1288_v52 }
 0x15c   :  { %1894 = vmatprep.subr.bf16.mxu1 %v3993_v15 }
 0x15f   :  { %1895 = vmatpush1.bf16.msra.mxu1 %v3991_v20 }
 0x1ad   :  { %v1017_v28 = vpop.f32.mrb[0].mxu1 }
 0x1ae   :  { %v1018_v29 = vadd.f32 %v1017_v28, %v297_v21  ;;  %v1019_v30 = vpop.f32.mrb[1].mxu1  ;;  %v3996_v21 = vld [vmem:[#allocation10 + $0x44] ss:$16 sps:$4 sm:$0xff]   ;;  %v4003_v28 = vld [vmem:[#allocation10 + $0x68] ss:$16 sps:$4 sm:$0xff]  }
 0x1af   :  { %v1020_v31 = vadd.f32 %v1019_v30, %v301_v14  ;;  %v1021_v32 = vpop.f32.mrb[2].mxu1  ;;  %v1058_v33 = vpop.f32.mrb[0].mxu0  ;;  %v3999_v14 = vld [vmem:[#allocation10 + $0x4c] ss:$16 sps:$4 sm:$0xff]   ;;  %1855 = vmatprep.subr.bf16.mxu0 %v3996_v21 }
 0x1b0   :  { %v1059_v36 = vadd.f32 %v1058_v33, %v1018_v29  ;;  %v1022_v37 = vpop.f32.mrb[3].mxu1  ;;  %v1060_v38 = vpop.f32.mrb[1].mxu0  ;;  %1896 = vmatprep.subr.bf16.mxu1 %v3999_v14  ;;  %1856 = vmatpush1.bf16.msra.mxu0 %v3994_v22  ;;  %v4008_v29 = vld [vmem:[#allocation10 + $0x84] ss:$16 sps:$4 sm:$0xff]   ;;  %v4011_v30 = vld [vmem:[#allocation10 + $0x8c] ss:$16 sps:$4 sm:$0xff]  }
 0x1b1   :  { %v4800_v42 = vadd.f32 %v1060_v38, %v1020_v31  ;;  %v1062_v47 = vpop.f32.mrb[2].mxu0  ;;  %1897 = vmatpush1.bf16.msra.mxu1 %v3997_v23  ;;  %1857 = vmatprep.subr.bf16.mxu0 %v4002_v24  ;;  %v4006_v31 = vld [vmem:[#allocation10 + $0x80] ss:$16 sps:$4 sm:$0xff]   ;;  %v4009_v32 = vld [vmem:[#allocation10 + $0x88] ss:$16 sps:$4 sm:$0xff]   ;;  %v4856_v22 = vsub.s32 3, %v4756_v45 }
 0x1b2   :  { %v1175_v48 = vmul.f32 %v4789_v34, %v1059_v36  ;;  %v1157_v49 = vmul.f32 %v4792_v35, %v1059_v36  ;;  %v1063_v50 = vpop.f32.mrb[3].mxu0  ;;  %v1184_v55 = vmul.f32 %v4795_v39, %v1059_v36  ;;  %v1166_v56 = vmul.f32 %v4798_v40, %v1059_v36  ;;  %1898 = vmatprep.subr.bf16.mxu1 %v4005_v25  ;;  %v4014_v33 = vld [vmem:[#allocation10 + $0xa4] ss:$16 sps:$4 sm:$0xff]   ;;  %v4012_v37 = vld [vmem:[#allocation10 + $0xa0] ss:$16 sps:$4 sm:$0xff]  }
 0x1b3   :  { %v1202_v63 = vmul.f32 %v4809_v57, %v1059_v36  ;;  %v1193_v0 = vmul.f32 %v4812_v58, %v1059_v36  ;;  %v1220_v5 = vmul.f32 %v4819_v1, %v1059_v36  ;;  %v1211_v6 = vmul.f32 %v4822_v2, %v1059_v36  ;;  %v4017_v36 = vld [vmem:[#allocation10 + $0xac] ss:$16 sps:$4 sm:$0xff]   ;;  %v4015_v38 = vld [vmem:[#allocation10 + $0xa8] ss:$16 sps:$4 sm:$0xff]   ;;  %v4026_v47 = vld [vmem:[#allocation10 + $0xe4] ss:$16 sps:$4 sm:$0xff]  }
 0x1b4   :  { %v1176_v53 = vsel %vm1158_vm1, %v1175_v48, 0.0  ;;  %v1159_v54 = vsel %vm1158_vm1, %v1157_v49, 0.0  ;;  %v1185_v61 = vsel %vm1158_vm1, %v1184_v55, 0.0  ;;  %v1167_v62 = vsel %vm1158_vm1, %v1166_v56, 0.0  ;;  %1858 = vmatpush1.bf16.msra.mxu0 %v4000_v26  ;;  %v4029_v48 = vld [vmem:[#allocation10 + $0xec] ss:$16 sps:$4 sm:$0xff]  }
 0x1b5   :  { %1177 = vadd.xlane.f32.xlu1 %v1176_v53  ;;  %1160 = vadd.xlane.f32.xlu0 %v1159_v54  ;;  %v1203_v3 = vsel %vm1158_vm1, %v1202_v63, 0.0  ;;  %v1194_v4 = vsel %vm1158_vm1, %v1193_v0, 0.0  ;;  %v1221_v7 = vsel %vm1158_vm1, %v1220_v5, 0.0  ;;  %v1212_v8 = vsel %vm1158_vm1, %v1211_v6, 0.0  ;;  %v4024_v49 = vld [vmem:[#allocation10 + $0xe0] ss:$16 sps:$4 sm:$0xff]  }
 0x1b6   :  { %1899 = vmatpush1.bf16.msra.mxu1 %v4003_v28  ;;  %1859 = vmatprep.subr.bf16.mxu0 %v4008_v29  ;;  %v4027_v50 = vld [vmem:[#allocation10 + $0xe8] ss:$16 sps:$4 sm:$0xff]   ;;  %v1289_v53 = vunpack.c.l.bf16 %v1287_v51  ;;  %v1291_v54 = vunpack.c.l.bf16 %v1288_v52  ;;  %v4833_v6 = vsub.s32 2, %v4756_v45  ;;  %v1313_v25 = vrot.slane %v1290_v10, 1 }
 0x1b7   :  { %1900 = vmatprep.subr.bf16.mxu1 %v4011_v30  ;;  %v1299_v26 = vrot.slane %v1292_v11, 7  ;;  %v1344_v28 = vrot.slane %v1290_v10, 3  ;;  %v1345_v29 = vrot.slane %v1292_v11, 2 }
 0x1b8   :  { %1860 = vmatpush1.bf16.msra.mxu0 %v4006_v31  ;;  %v1311_v55 = vrot.slane %v1289_v53, 1  ;;  %v1297_v56 = vrot.slane %v1291_v54, 7  ;;  %v1341_v59 = vrot.slane %v1289_v53, 3  ;;  %v1342_v60 = vrot.slane %v1291_v54, 2 }
 0x1b9   :  { %1186 = vadd.xlane.f32.xlu1 %v1185_v61  ;;  %1168 = vadd.xlane.f32.xlu0 %v1167_v62  ;;  %v1325_v61 = vrot.slane %v1289_v53, 2  ;;  %v1326_v62 = vrot.slane %v1291_v54, 1  ;;  %v1373_v63 = vrot.slane %v1289_v53, 5  ;;  %v1374_v0 = vrot.slane %v1291_v54, 4 }
 0x1ba   :  { %1901 = vmatpush1.bf16.msra.mxu1 %v4009_v32  ;;  %1861 = vmatprep.subr.bf16.mxu0 %v4014_v33  ;;  %v1405_v5 = vrot.slane %v1289_v53, 7  ;;  %v1390_v9 = vrot.slane %v1291_v54, 5  ;;  %v4836_v12 = vsel %vm1154_vm0, %v1291_v54, %v1311_v55  ;;  %v4839_v13 = vsel %vm1154_vm0, %v1297_v56, %v1289_v53 }
 0x1bb   :  { %1902 = vmatprep.subr.bf16.mxu1 %v4017_v36  ;;  %v4842_v15 = vsel %vm1154_vm0, %v1342_v60, %v1341_v59  ;;  %v4845_v19 = vsel %vm1154_vm0, %v1326_v62, %v1325_v61  ;;  %v4848_v20 = vsel %vm1154_vm0, %v1374_v0, %v1373_v63  ;;  %v305_v14 = vrot.slane %v4779_v17, %v4833_v6  ;;  %v3755_v61 = vld [vmem:[%s5211_s3] sm:$0xff]  }
 0x1bc   :  { %1862 = vmatpush1.bf16.msra.mxu0 %v4012_v37  ;;  %v1317_v30 = vmul.f32 %v4836_v12, %v4800_v42  ;;  %v1328_v31 = vrot.slane %v1290_v10, 2  ;;  %v1329_v32 = vrot.slane %v1292_v11, 1  ;;  %v1376_v33 = vrot.slane %v1290_v10, 5 }
 0x1bd   :  { %1204 = vadd.xlane.f32.xlu1 %v1203_v3  ;;  %1195 = vadd.xlane.f32.xlu0 %v1194_v4  ;;  %v1357_v3 = vrot.slane %v1289_v53, 4  ;;  %v1358_v4 = vrot.slane %v1291_v54, 3  ;;  %v1303_v45 = vmul.f32 %v4839_v13, %v4800_v42  ;;  %v1349_v36 = vmul.f32 %v4842_v15, %v4800_v42 }
 0x1be   :  { %1903 = vmatpush1.bf16.msra.mxu1 %v4015_v38  ;;  %1863 = vmatprep.subr.bf16.mxu0 %v4020_v41  ;;  %v1333_v37 = vmul.f32 %v4845_v19, %v4800_v42  ;;  %v1377_v38 = vrot.slane %v1292_v11, 4  ;;  %v1381_v41 = vmul.f32 %v4848_v20, %v4800_v42  ;;  %v4877_v51 = vsel %vm1154_vm0, %v1292_v11, %v1313_v25 }
 0x1bf   :  { %1904 = vmatprep.subr.bf16.mxu1 %v4023_v43  ;;  %v4851_v21 = vsel %vm1154_vm0, %v1358_v4, %v1357_v3  ;;  %v1360_v43 = vrot.slane %v1290_v10, 4  ;;  %v4880_v52 = vsel %vm1154_vm0, %v1299_v26, %v1290_v10  ;;  %v1319_v55 = vsel %vm1158_vm1, %v1317_v30, 0.0 }
 0x1c0   :  { %1864 = vmatpush1.bf16.msra.mxu0 %v4018_v44  ;;  %v1361_v44 = vrot.slane %v1292_v11, 3  ;;  %v1305_v56 = vsel %vm1158_vm1, %v1303_v45, 0.0  ;;  %v1351_v59 = vsel %vm1158_vm1, %v1349_v36, 0.0  ;;  %v4891_v60 = vsel %vm1154_vm0, %v1329_v32, %v1328_v31 }
 0x1c1   :  { %1222 = vadd.xlane.f32.xlu1 %v1221_v7  ;;  %1213 = vadd.xlane.f32.xlu0 %v1212_v8  ;;  %v1406_v7 = vrot.slane %v1291_v54, 6  ;;  %v1389_v8 = vrot.slane %v1289_v53, 6  ;;  %v4883_v53 = vsel %vm1154_vm0, %v1345_v29, %v1344_v28  ;;  %v1335_v63 = vsel %vm1158_vm1, %v1333_v37, 0.0 }
 0x1c2   :  { %1905 = vmatpush1.bf16.msra.mxu1 %v4021_v46  ;;  %1865 = vmatprep.subr.bf16.mxu0 %v4026_v47  ;;  %v1365_v46 = vmul.f32 %v4851_v21, %v4800_v42  ;;  %v1408_v47 = vrot.slane %v1290_v10, 7  ;;  %v4898_v0 = vsel %vm1154_vm0, %v1377_v38, %v1376_v33  ;;  %v1383_v3 = vsel %vm1158_vm1, %v1381_v41, 0.0 }
 0x1c3   :  { %1906 = vmatprep.subr.bf16.mxu1 %v4029_v48  ;;  %v4859_v23 = vsel %vm1154_vm0, %v1406_v7, %v1405_v5  ;;  %v4862_v24 = vsel %vm1154_vm0, %v1390_v9, %v1389_v8  ;;  %v1409_v48 = vrot.slane %v1292_v11, 6  ;;  %v4902_v4 = vsel %vm1154_vm0, %v1361_v44, %v1360_v43 }
 0x1c4   :  { %1866 = vmatpush1.bf16.msra.mxu0 %v4024_v49  ;;  %v1392_v49 = vrot.slane %v1290_v10, 6  ;;  %v1413_v54 = vmul.f32 %v4859_v23, %v4800_v42  ;;  %v1367_v8 = vsel %vm1158_vm1, %v1365_v46, 0.0  ;;  %v1397_v26 = vmul.f32 %v4862_v24, %v4800_v42 }
 0x1c5   :  { %v4906_v9 = vsel %vm1154_vm0, %v1409_v48, %v1408_v47  ;;  %v4914_v28 = vunpack.c.l.bf16 %v3755_v61  ;;  %v4916_v29 = vunpack.c.h.bf16 %v3755_v61 }
 0x1c6   :  { %1907 = vmatpush1.bf16.msra.mxu1 %v4027_v50  ;;  %v1393_v50 = vrot.slane %v1292_v11, 5  ;;  %v1415_v25 = vsel %vm1158_vm1, %v1413_v54, 0.0 }
 0x1c8   :  { %v4909_v10 = vsel %vm1154_vm0, %v1393_v50, %v1392_v49 }
 0x22d   :  { %v1140_v62 = vpop.f32.mrb[4].mxu1 }
 0x22e   :  { %v3762_v5 = vadd.f32 %v1140_v62, %v305_v14  ;;  %v1142_v7 = vpop.f32.mrb[5].mxu1 }
 0x22f   :  { %v1144_v11 = vpop.f32.mrb[6].mxu1 }
 0x230   :  { %v1145_v14 = vpop.f32.mrb[7].mxu1  ;;  %v1318_v30 = vmul.f32 %v3762_v5, %v4877_v51  ;;  %v1304_v31 = vmul.f32 %v3762_v5, %v4880_v52  ;;  %v1350_v32 = vmul.f32 %v3762_v5, %v4883_v53  ;;  %v1334_v33 = vmul.f32 %v3762_v5, %v4891_v60 }
 0x231   :  { %v1382_v45 = vmul.f32 %v3762_v5, %v4898_v0  ;;  %v1366_v36 = vmul.f32 %v3762_v5, %v4902_v4  ;;  %v1414_v37 = vmul.f32 %v3762_v5, %v4906_v9  ;;  %v1398_v42 = vmul.f32 %v3762_v5, %v4909_v10 }
 0x232   :  { %v1320_v38 = vsel %vm1158_vm1, %v1318_v30, 0.0  ;;  %v1306_v41 = vsel %vm1158_vm1, %v1304_v31, 0.0  ;;  %v1352_v43 = vsel %vm1158_vm1, %v1350_v32, 0.0  ;;  %v1336_v44 = vsel %vm1158_vm1, %v1334_v33, 0.0 }
 0x233   :  { %v1321_v46 = vadd.f32 %v1320_v38, %v1319_v55  ;;  %v1307_v47 = vadd.f32 %v1306_v41, %v1305_v56  ;;  %v1353_v48 = vadd.f32 %v1352_v43, %v1351_v59  ;;  %v1337_v49 = vadd.f32 %v1336_v44, %v1335_v63 }
 0x234   :  { %v1384_v50 = vsel %vm1158_vm1, %v1382_v45, 0.0  ;;  %v1368_v54 = vsel %vm1158_vm1, %v1366_v36, 0.0  ;;  %v1416_v61 = vsel %vm1158_vm1, %v1414_v37, 0.0  ;;  %v1400_v62 = vsel %vm1158_vm1, %v1398_v42, 0.0 }
 0x235   :  { %1322 = vadd.xlane.f32.xlu1 %v1321_v46  ;;  %1308 = vadd.xlane.f32.xlu0 %v1307_v47  ;;  %v1385_v5 = vadd.f32 %v1384_v50, %v1383_v3  ;;  %v1369_v11 = vadd.f32 %v1368_v54, %v1367_v8  ;;  %v1417_v14 = vadd.f32 %v1416_v61, %v1415_v25  ;;  %v1399_v30 = vsel %vm1158_vm1, %v1397_v26, 0.0 }
 0x236   :  { %v1401_v31 = vadd.f32 %v1400_v62, %v1399_v30  ;;  %v309_v55 = vrot.slane %v4779_v17, %v4856_v22  ;;  %v1512_v56 = vrot.slane %v4914_v28, 1  ;;  %v1504_v59 = vrot.slane %v4916_v29, 7 }
 0x237   :  { %v1529_v32 = vrot.slane %v4914_v28, 3  ;;  %v1520_v33 = vrot.slane %v4914_v28, 2  ;;  %v1530_v8 = vrot.slane %v4916_v29, 2  ;;  %v1521_v25 = vrot.slane %v4916_v29, 1 }
 0x238   :  { %v3763_v63 = vadd.f32 %v1142_v7, %v309_v55  ;;  %v4943_v3 = vsel %vm1154_vm0, %v4916_v29, %v1512_v56  ;;  %v4947_v17 = vsel %vm1154_vm0, %v1504_v59, %v4914_v28  ;;  %v1547_v7 = vrot.slane %v4914_v28, 5 }
 0x239   :  { %1354 = vadd.xlane.f32.xlu1 %v1353_v48  ;;  %1338 = vadd.xlane.f32.xlu0 %v1337_v49  ;;  %v1548_v26 = vrot.slane %v4916_v29, 4  ;;  %v4956_v37 = vsel %vm1154_vm0, %v1530_v8, %v1529_v32  ;;  %v4959_v42 = vsel %vm1154_vm0, %v1521_v25, %v1520_v33  ;;  %v1538_v38 = vrot.slane %v4914_v28, 4 }
 0x23a   :  { %v1515_v45 = vmul.f32 %v3763_v63, %v4943_v3  ;;  %v1507_v36 = vmul.f32 %v3763_v63, %v4947_v17  ;;  %v1539_v41 = vrot.slane %v4916_v29, 3  ;;  %v1565_v47 = vrot.slane %v4914_v28, 7 }
 0x23b   :  { %v4964_v46 = vsel %vm1154_vm0, %v1548_v26, %v1547_v7  ;;  %v1533_v50 = vmul.f32 %v3763_v63, %v4956_v37  ;;  %v1524_v54 = vmul.f32 %v3763_v63, %v4959_v42  ;;  %v1566_v62 = vrot.slane %v4916_v29, 6 }
 0x23c   :  { %v1516_v48 = vsel %vm1158_vm1, %v1515_v45, 0.0  ;;  %v1508_v49 = vsel %vm1158_vm1, %v1507_v36, 0.0  ;;  %v4972_v61 = vsel %vm1154_vm0, %v1539_v41, %v1538_v38  ;;  %v1551_v32 = vmul.f32 %v3763_v63, %v4964_v46 }
 0x23d   :  { %1386 = vadd.xlane.f32.xlu1 %v1385_v5  ;;  %1370 = vadd.xlane.f32.xlu0 %v1369_v11  ;;  %v1556_v5 = vrot.slane %v4914_v28, 6  ;;  %v1557_v11 = vrot.slane %v4916_v29, 5  ;;  %v1534_v56 = vsel %vm1158_vm1, %v1533_v50, 0.0  ;;  %v1525_v59 = vsel %vm1158_vm1, %v1524_v54, 0.0 }
 0x23e   :  { %v1542_v33 = vmul.f32 %v3763_v63, %v4972_v61  ;;  %v4982_v28 = vsel %vm1154_vm0, %v1566_v62, %v1565_v47  ;;  %v1552_v38 = vsel %vm1158_vm1, %v1551_v32, 0.0 }
 0x23f   :  { %v4985_v29 = vsel %vm1154_vm0, %v1557_v11, %v1556_v5 }
 0x240   :  { %v1543_v41 = vsel %vm1158_vm1, %v1542_v33, 0.0 }
 0x241   :  { %1418 = vadd.xlane.f32.xlu1 %v1417_v14  ;;  %1402 = vadd.xlane.f32.xlu0 %v1401_v31 }
 0x242   :  { %v1178_v43 = vpop.xlane.xlu1 %1177  ;;  %v1161_v44 = vpop.xlane.xlu0 %1160 }
 0x243   :  { %v1162_v31 = vmul.f32 0.088388346, %v1161_v44  ;;  %v1179_v8 = vmul.f32 0.088388346, %v1178_v43  ;;  %v1569_v44 = vmul.f32 %v3763_v63, %v4982_v28  ;;  %v1560_v43 = vmul.f32 %v3763_v63, %v4985_v29 }
 0x245   :  { %1517 = vadd.xlane.f32.xlu1 %v1516_v48  ;;  %1509 = vadd.xlane.f32.xlu0 %v1508_v49  ;;  %v1570_v5 = vsel %vm1158_vm1, %v1569_v44, 0.0  ;;  %v1561_v11 = vsel %vm1158_vm1, %v1560_v43, 0.0 }
 0x246   :  { %v1187_v14 = vpop.xlane.xlu1 %1186  ;;  %v1169_v30 = vpop.xlane.xlu0 %1168 }
 0x247   :  { %v1170_v55 = vmul.f32 0.088388346, %v1169_v30  ;;  %v1188_v45 = vmul.f32 0.088388346, %v1187_v14 }
 0x249   :  { %v1225_v25 = vmax.f32 %v1162_v31, %v1170_v55  ;;  %1535 = vadd.xlane.f32.xlu1 %v1534_v56  ;;  %1526 = vadd.xlane.f32.xlu0 %v1525_v59 }
 0x24a   :  { %v1205_v7 = vpop.xlane.xlu1 %1204  ;;  %v1196_v26 = vpop.xlane.xlu0 %1195 }
 0x24b   :  { %v1226_v36 = vmax.f32 %v1225_v25, %v1179_v8  ;;  %v1197_v49 = vmul.f32 0.088388346, %v1196_v26  ;;  %v1206_v50 = vmul.f32 0.088388346, %v1205_v7 }
 0x24d   :  { %v1227_v48 = vmax.f32 %v1226_v36, %v1188_v45  ;;  %1553 = vadd.xlane.f32.xlu1 %v1552_v38  ;;  %1544 = vadd.xlane.f32.xlu0 %v1543_v41  ;;  %v4032_v36 = vld [vmem:[#allocation11 + $0x4] ss:$16 sps:$4 sm:$0xff]   ;;  %v4035_v38 = vld [vmem:[#allocation11 + $0xc] ss:$16 sps:$4 sm:$0xff]  }
 0x24e   :  { %v1214_v47 = vpop.xlane.xlu0 %1213  ;;  %v1223_v62 = vpop.xlane.xlu1 %1222  ;;  %2345 = vmatprep.subr.bf16.mxu0 %v4032_v36  ;;  %2386 = vmatprep.subr.bf16.mxu1 %v4035_v38 }
 0x24f   :  { %v1228_v54 = vmax.f32 %v1227_v48, %v1197_v49  ;;  %v1215_v30 = vmul.f32 0.088388346, %v1214_v47  ;;  %v1224_v56 = vmul.f32 0.088388346, %v1223_v62 }
 0x251   :  { %v1229_v14 = vmax.f32 %v1228_v54, %v1206_v50  ;;  %1571 = vadd.xlane.f32.xlu1 %v1570_v5  ;;  %1562 = vadd.xlane.f32.xlu0 %v1561_v11 }
 0x253   :  { %v1230_v59 = vmax.f32 %v1229_v14, %v1215_v30 }
 0x255   :  { %v1231_v32 = vmax.f32 %v1230_v59, %v1224_v56 }
 0x257   :  { %v1232_v63 = vsub.f32 %v1162_v31, %v1231_v32  ;;  %v1235_v33 = vsub.f32 %v1170_v55, %v1231_v32  ;;  %v1238_v25 = vsub.f32 %v1179_v8, %v1231_v32  ;;  %v1241_v26 = vsub.f32 %v1188_v45, %v1231_v32 }
 0x258   :  { %v1244_v27 = vsub.f32 %v1197_v49, %v1231_v32  ;;  %v1247_v43 = vsub.f32 %v1206_v50, %v1231_v32  ;;  %v1250_v54 = vsub.f32 %v1215_v30, %v1231_v32  ;;  %v1253_v55 = vsub.f32 %v1224_v56, %v1231_v32 }
 0x259   :  { %v1233_v7 = vmul.f32 1.442695, %v1232_v63  ;;  %v1236_v41 = vmul.f32 1.442695, %v1235_v33  ;;  %v1239_v48 = vmul.f32 1.442695, %v1238_v25 }
 0x25a   :  { %v1242_v44 = vmul.f32 1.442695, %v1241_v26  ;;  %v1245_v47 = vmul.f32 1.442695, %v1244_v27  ;;  %v1248_v31 = vmul.f32 1.442695, %v1247_v43 }
 0x25b   :  { %4270 = vpow2.f32 %v1233_v7  ;;  %v1251_v8 = vmul.f32 1.442695, %v1250_v54  ;;  %v1254_v45 = vmul.f32 1.442695, %v1253_v55 }
 0x25c   :  { %4272 = vpow2.f32 %v1236_v41 }
 0x25d   :  { %4274 = vpow2.f32 %v1239_v48 }
 0x25e   :  { %4276 = vpow2.f32 %v1242_v44 }
 0x25f   :  { %4278 = vpow2.f32 %v1245_v47 }
 0x260   :  { %4280 = vpow2.f32 %v1248_v31 }
 0x261   :  { %4282 = vpow2.f32 %v1251_v8 }
 0x262   :  { %4284 = vpow2.f32 %v1254_v45 }
 0x265   :  { %v4271_v62 = vpop.eup %4270 }
 0x266   :  { %v4273_v5 = vpop.eup %4272 }
 0x267   :  { %v1256_v49 = vadd.f32 %v4273_v5, %v4271_v62  ;;  %v4275_v11 = vpop.eup %4274 }
 0x268   :  { %v4277_v59 = vpop.eup %4276 }
 0x269   :  { %v1257_v14 = vadd.f32 %v4275_v11, %v1256_v49  ;;  %v4279_v50 = vpop.eup %4278 }
 0x26a   :  { %v4281_v27 = vpop.eup %4280 }
 0x26b   :  { %v1258_v63 = vadd.f32 %v4277_v59, %v1257_v14  ;;  %v4283_v25 = vpop.eup %4282 }
 0x26c   :  { %v4285_v56 = vpop.eup %4284 }
 0x26d   :  { %v1259_v33 = vadd.f32 %v4279_v50, %v1258_v63 }
 0x26f   :  { %v1260_v30 = vadd.f32 %v4281_v27, %v1259_v33 }
 0x271   :  { %v1261_v26 = vadd.f32 %v4283_v25, %v1260_v30  ;;  %v4033_v30 = vld [vmem:[#allocation11 + $0x8] ss:$16 sps:$4 sm:$0xff]  }
 0x273   :  { %v1262_v32 = vadd.f32 %v4285_v56, %v1261_v26 }
 0x275   :  { %4286 = vrcp.f32 %v1262_v32  ;;  %v4050_v32 = vld [vmem:[#allocation11 + $0x64] ss:$16 sps:$4 sm:$0xff]  }
 0x27f   :  { %v4287_v36 = vpop.eup %4286 }
 0x280   :  { %v1264_v38 = vmul.f32 %v4287_v36, %v4271_v62  ;;  %v1266_v7 = vmul.f32 %v4287_v36, %v4273_v5  ;;  %v1269_v41 = vmul.f32 %v4287_v36, %v4275_v11  ;;  %v1272_v43 = vmul.f32 %v4287_v36, %v4277_v59 }
 0x281   :  { %v1275_v31 = vmul.f32 %v4287_v36, %v4279_v50  ;;  %v1278_v45 = vmul.f32 %v4287_v36, %v4281_v27  ;;  %v1281_v63 = vmul.f32 %v4287_v36, %v4283_v25  ;;  %v1284_v11 = vmul.f32 %v4287_v36, %v4285_v56  ;;  %v4030_v50 = vld [vmem:[#allocation11] ss:$16 sps:$4 sm:$0xff]   ;;  %v4041_v27 = vld [vmem:[#allocation11 + $0x2c] ss:$16 sps:$4 sm:$0xff]   ;;  %v4039_v25 = vld [vmem:[#allocation11 + $0x28] ss:$16 sps:$4 sm:$0xff]  }
 0x282   :  { %v1265_v48 = vmul.f32 %v1264_v38, %v4792_v35  ;;  %v1267_v44 = vmul.f32 %v1266_v7, %v4798_v40  ;;  %v1270_v54 = vmul.f32 %v1269_v41, %v4789_v34  ;;  %v1273_v8 = vmul.f32 %v1272_v43, %v4795_v39  ;;  %v4038_v39 = vld [vmem:[#allocation11 + $0x24] ss:$16 sps:$4 sm:$0xff]   ;;  %v4047_v56 = vld [vmem:[#allocation11 + $0x4c] ss:$16 sps:$4 sm:$0xff]   ;;  %v4048_v38 = vld [vmem:[#allocation11 + $0x60] ss:$16 sps:$4 sm:$0xff]  }
 0x283   :  { %v1276_v14 = vmul.f32 %v1275_v31, %v4812_v58  ;;  %v1279_v5 = vmul.f32 %v1278_v45, %v4809_v57  ;;  %v1282_v40 = vmul.f32 %v1281_v63, %v4822_v2  ;;  %v1285_v33 = vmul.f32 %v1284_v11, %v4819_v1  ;;  %v4036_v58 = vld [vmem:[#allocation11 + $0x20] ss:$16 sps:$4 sm:$0xff]   ;;  %v4044_v57 = vld [vmem:[#allocation11 + $0x44] ss:$16 sps:$4 sm:$0xff]   ;;  %v4045_v1 = vld [vmem:[#allocation11 + $0x48] ss:$16 sps:$4 sm:$0xff]  }
 0x284   :  { %v1268_v47 = vadd.f32 %v1267_v44, %v1265_v48  ;;  %v4042_v2 = vld [vmem:[#allocation11 + $0x40] ss:$16 sps:$4 sm:$0xff]   ;;  %v4053_v36 = vld [vmem:[#allocation11 + $0x6c] ss:$16 sps:$4 sm:$0xff]   ;;  %v4051_v7 = vld [vmem:[#allocation11 + $0x68] ss:$16 sps:$4 sm:$0xff]  }
 0x285   :  { %v4056_v41 = vld [vmem:[#allocation11 + $0x84] ss:$16 sps:$4 sm:$0xff]   ;;  %v4059_v48 = vld [vmem:[#allocation11 + $0x8c] ss:$16 sps:$4 sm:$0xff]   ;;  %v4054_v44 = vld [vmem:[#allocation11 + $0x80] ss:$16 sps:$4 sm:$0xff]  }
 0x286   :  { %v1271_v55 = vadd.f32 %v1270_v54, %v1268_v47  ;;  %v4057_v43 = vld [vmem:[#allocation11 + $0x88] ss:$16 sps:$4 sm:$0xff]   ;;  %v4062_v47 = vld [vmem:[#allocation11 + $0xa4] ss:$16 sps:$4 sm:$0xff]   ;;  %v4065_v54 = vld [vmem:[#allocation11 + $0xac] ss:$16 sps:$4 sm:$0xff]  }
 0x287   :  { %v4060_v31 = vld [vmem:[#allocation11 + $0xa0] ss:$16 sps:$4 sm:$0xff]   ;;  %v4071_v45 = vld [vmem:[#allocation11 + $0xcc] ss:$16 sps:$4 sm:$0xff]   ;;  %v4074_v63 = vld [vmem:[#allocation11 + $0xe4] ss:$16 sps:$4 sm:$0xff]  }
 0x288   :  { %v1274_v49 = vadd.f32 %v1273_v8, %v1271_v55  ;;  %v4063_v55 = vld [vmem:[#allocation11 + $0xa8] ss:$16 sps:$4 sm:$0xff]   ;;  %v4068_v8 = vld [vmem:[#allocation11 + $0xc4] ss:$16 sps:$4 sm:$0xff]  }
 0x289   :  { %v4075_v11 = vld [vmem:[#allocation11 + $0xe8] ss:$16 sps:$4 sm:$0xff]  }
 0x28a   :  { %v1277_v62 = vadd.f32 %v1276_v14, %v1274_v49  ;;  %v4066_v49 = vld [vmem:[#allocation11 + $0xc0] ss:$16 sps:$4 sm:$0xff]   ;;  %v4069_v14 = vld [vmem:[#allocation11 + $0xc8] ss:$16 sps:$4 sm:$0xff]  }
 0x28c   :  { %v1280_v35 = vadd.f32 %v1279_v5, %v1277_v62  ;;  %v4077_v62 = vld [vmem:[#allocation11 + $0xec] ss:$16 sps:$4 sm:$0xff]   ;;  %v4072_v5 = vld [vmem:[#allocation11 + $0xe0] ss:$16 sps:$4 sm:$0xff]  }
 0x28e   :  { %v1283_v59 = vadd.f32 %v1282_v40, %v1280_v35  ;;  %v4080_v35 = vld [vmem:[#allocation11 + $0x104] ss:$16 sps:$4 sm:$0xff]   ;;  %v4083_v40 = vld [vmem:[#allocation11 + $0x10c] ss:$16 sps:$4 sm:$0xff]  }
 0x290   :  { %v1286_v34 = vadd.f32 %v1285_v33, %v1283_v59  ;;  %v4078_v59 = vld [vmem:[#allocation11 + $0x100] ss:$16 sps:$4 sm:$0xff]   ;;  %v4081_v33 = vld [vmem:[#allocation11 + $0x108] ss:$16 sps:$4 sm:$0xff]  }
 0x292   :  { %v1636_v26 = vpack.c.bf16 %v1286_v34, %v1286_v34  ;;  %v4086_v34 = vld [vmem:[#allocation11 + $0x124] ss:$16 sps:$4 sm:$0xff]  }
 0x294   :  { %1884 = vmatmul.mubr.bf16.vlgmr.msra.gmra.mrb[4].mxu0 %v1636_v26  ;;  %1925 = vmatmul.mubr.bf16.vlgmr.msra.gmra.mrb[8].mxu1 %v1636_v26  ;;  %v4087_v26 = vld [vmem:[#allocation11 + $0x128] ss:$16 sps:$4 sm:$0xff]  }
 0x295   :  { %2346 = vmatpush1.bf16.msra.mxu0 %v4030_v50  ;;  %2387 = vmatpush1.bf16.msra.mxu1 %v4033_v30  ;;  %v4089_v50 = vld [vmem:[#allocation11 + $0x12c] ss:$16 sps:$4 sm:$0xff]   ;;  %v4084_v30 = vld [vmem:[#allocation11 + $0x120] ss:$16 sps:$4 sm:$0xff]  }
 0x296   :  { %2347 = vmatprep.subr.bf16.mxu0 %v4038_v39  ;;  %2388 = vmatprep.subr.bf16.mxu1 %v4041_v27  ;;  %v4092_v39 = vld [vmem:[#allocation11 + $0x144] ss:$16 sps:$4 sm:$0xff]   ;;  %v4095_v27 = vld [vmem:[#allocation11 + $0x14c] ss:$16 sps:$4 sm:$0xff]  }
 0x299   :  { %2348 = vmatpush1.bf16.msra.mxu0 %v4036_v58  ;;  %2389 = vmatpush1.bf16.msra.mxu1 %v4039_v25  ;;  %v4090_v58 = vld [vmem:[#allocation11 + $0x140] ss:$16 sps:$4 sm:$0xff]   ;;  %v4093_v25 = vld [vmem:[#allocation11 + $0x148] ss:$16 sps:$4 sm:$0xff]  }
 0x29a   :  { %2349 = vmatprep.subr.bf16.mxu0 %v4044_v57  ;;  %2390 = vmatprep.subr.bf16.mxu1 %v4047_v56  ;;  %v4098_v57 = vld [vmem:[#allocation11 + $0x164] ss:$16 sps:$4 sm:$0xff]   ;;  %v4101_v56 = vld [vmem:[#allocation11 + $0x16c] ss:$16 sps:$4 sm:$0xff]  }
 0x29d   :  { %2350 = vmatpush1.bf16.msra.mxu0 %v4042_v2  ;;  %2391 = vmatpush1.bf16.msra.mxu1 %v4045_v1  ;;  %v4096_v2 = vld [vmem:[#allocation11 + $0x160] ss:$16 sps:$4 sm:$0xff]   ;;  %v4099_v1 = vld [vmem:[#allocation11 + $0x168] ss:$16 sps:$4 sm:$0xff]  }
 0x29e   :  { %2351 = vmatprep.subr.bf16.mxu0 %v4050_v32  ;;  %2392 = vmatprep.subr.bf16.mxu1 %v4053_v36  ;;  %v4104_v32 = vld [vmem:[#allocation11 + $0x184] ss:$16 sps:$4 sm:$0xff]   ;;  %v4107_v36 = vld [vmem:[#allocation11 + $0x18c] ss:$16 sps:$4 sm:$0xff]  }
 0x2a1   :  { %2352 = vmatpush1.bf16.msra.mxu0 %v4048_v38  ;;  %2393 = vmatpush1.bf16.msra.mxu1 %v4051_v7  ;;  %v4102_v38 = vld [vmem:[#allocation11 + $0x180] ss:$16 sps:$4 sm:$0xff]   ;;  %v4105_v7 = vld [vmem:[#allocation11 + $0x188] ss:$16 sps:$4 sm:$0xff]  }
 0x2a2   :  { %2353 = vmatprep.subr.bf16.mxu0 %v4056_v41  ;;  %2394 = vmatprep.subr.bf16.mxu1 %v4059_v48 }
 0x2a5   :  { %2354 = vmatpush1.bf16.msra.mxu0 %v4054_v44  ;;  %2395 = vmatpush1.bf16.msra.mxu1 %v4057_v43  ;;  %v4110_v44 = vld [vmem:[#allocation11 + $0x1a4] ss:$16 sps:$4 sm:$0xff]   ;;  %v4113_v43 = vld [vmem:[#allocation11 + $0x1ac] ss:$16 sps:$4 sm:$0xff]  }
 0x2a6   :  { %2355 = vmatprep.subr.bf16.mxu0 %v4062_v47  ;;  %2396 = vmatprep.subr.bf16.mxu1 %v4065_v54 }
 0x2a9   :  { %2356 = vmatpush1.bf16.msra.mxu0 %v4060_v31  ;;  %2397 = vmatpush1.bf16.msra.mxu1 %v4063_v55  ;;  %v4108_v31 = vld [vmem:[#allocation11 + $0x1a0] ss:$16 sps:$4 sm:$0xff]   ;;  %v4111_v55 = vld [vmem:[#allocation11 + $0x1a8] ss:$16 sps:$4 sm:$0xff]  }
 0x2aa   :  { %2357 = vmatprep.subr.bf16.mxu0 %v4068_v8  ;;  %2398 = vmatprep.subr.bf16.mxu1 %v4071_v45 }
 0x2ad   :  { %2358 = vmatpush1.bf16.msra.mxu0 %v4066_v49  ;;  %2399 = vmatpush1.bf16.msra.mxu1 %v4069_v14  ;;  %v4116_v49 = vld [vmem:[#allocation11 + $0x1c4] ss:$16 sps:$4 sm:$0xff]   ;;  %v4119_v14 = vld [vmem:[#allocation11 + $0x1cc] ss:$16 sps:$4 sm:$0xff]  }
 0x2ae   :  { %2359 = vmatprep.subr.bf16.mxu0 %v4074_v63  ;;  %2400 = vmatprep.subr.bf16.mxu1 %v4077_v62 }
 0x2b1   :  { %2360 = vmatpush1.bf16.msra.mxu0 %v4072_v5  ;;  %2401 = vmatpush1.bf16.msra.mxu1 %v4075_v11 }
 0x2b2   :  { %2361 = vmatprep.subr.bf16.mxu0 %v4080_v35  ;;  %2402 = vmatprep.subr.bf16.mxu1 %v4083_v40  ;;  %v4114_v35 = vld [vmem:[#allocation11 + $0x1c0] ss:$16 sps:$4 sm:$0xff]   ;;  %v4117_v40 = vld [vmem:[#allocation11 + $0x1c8] ss:$16 sps:$4 sm:$0xff]  }
 0x2b5   :  { %2362 = vmatpush1.bf16.msra.mxu0 %v4078_v59  ;;  %2403 = vmatpush1.bf16.msra.mxu1 %v4081_v33 }
 0x2b6   :  { %2363 = vmatprep.subr.bf16.mxu0 %v4086_v34  ;;  %2404 = vmatprep.subr.bf16.mxu1 %v4089_v50  ;;  %v4122_v34 = vld [vmem:[#allocation11 + $0x1e4] ss:$16 sps:$4 sm:$0xff]   ;;  %v4125_v50 = vld [vmem:[#allocation11 + $0x1ec] ss:$16 sps:$4 sm:$0xff]  }
 0x2b9   :  { %2364 = vmatpush1.bf16.msra.mxu0 %v4084_v30  ;;  %2405 = vmatpush1.bf16.msra.mxu1 %v4087_v26 }
 0x2ba   :  { %2365 = vmatprep.subr.bf16.mxu0 %v4092_v39  ;;  %2406 = vmatprep.subr.bf16.mxu1 %v4095_v27 }
 0x2bd   :  { %2366 = vmatpush1.bf16.msra.mxu0 %v4090_v58  ;;  %2407 = vmatpush1.bf16.msra.mxu1 %v4093_v25  ;;  %v4120_v58 = vld [vmem:[#allocation11 + $0x1e0] ss:$16 sps:$4 sm:$0xff]   ;;  %v4123_v25 = vld [vmem:[#allocation11 + $0x1e8] ss:$16 sps:$4 sm:$0xff]  }
 0x2be   :  { %2367 = vmatprep.subr.bf16.mxu0 %v4098_v57  ;;  %2408 = vmatprep.subr.bf16.mxu1 %v4101_v56 }
 0x2c1   :  { %2368 = vmatpush1.bf16.msra.mxu0 %v4096_v2  ;;  %2409 = vmatpush1.bf16.msra.mxu1 %v4099_v1  ;;  %v4128_v2 = vld [vmem:[#allocation13 + $0x4] ss:$16 sps:$4 sm:$0xff]   ;;  %v4131_v1 = vld [vmem:[#allocation13 + $0xc] ss:$16 sps:$4 sm:$0xff]  }
 0x2c2   :  { %v1323_v41 = vpop.xlane.xlu1 %1322  ;;  %v1309_v48 = vpop.xlane.xlu0 %1308  ;;  %2369 = vmatprep.subr.bf16.mxu0 %v4104_v32  ;;  %2410 = vmatprep.subr.bf16.mxu1 %v4107_v36 }
 0x2c3   :  { %v1324_v47 = vmul.f32 0.0625, %v1323_v41  ;;  %v1310_v54 = vmul.f32 0.0625, %v1309_v48 }
 0x2c5   :  { %2370 = vmatpush1.bf16.msra.mxu0 %v4102_v38  ;;  %2411 = vmatpush1.bf16.msra.mxu1 %v4105_v7  ;;  %v1421_v63 = vmax.f32 %v1310_v54, %v1324_v47 }
 0x2c6   :  { %v1355_v8 = vpop.xlane.xlu1 %1354  ;;  %v1339_v45 = vpop.xlane.xlu0 %1338  ;;  %2371 = vmatprep.subr.bf16.mxu0 %v4110_v44  ;;  %2412 = vmatprep.subr.bf16.mxu1 %v4113_v43 }
 0x2c7   :  { %v1340_v62 = vmul.f32 0.0625, %v1339_v45  ;;  %v1356_v5 = vmul.f32 0.0625, %v1355_v8 }
 0x2c9   :  { %v1422_v11 = vmax.f32 %v1421_v63, %v1340_v62  ;;  %2372 = vmatpush1.bf16.msra.mxu0 %v4108_v31  ;;  %2413 = vmatpush1.bf16.msra.mxu1 %v4111_v55 }
 0x2ca   :  { %v1387_v59 = vpop.xlane.xlu1 %1386  ;;  %v1371_v33 = vpop.xlane.xlu0 %1370  ;;  %2373 = vmatprep.subr.bf16.mxu0 %v4116_v49  ;;  %2414 = vmatprep.subr.bf16.mxu1 %v4119_v14 }
 0x2cb   :  { %v1423_v30 = vmax.f32 %v1422_v11, %v1356_v5  ;;  %v1372_v26 = vmul.f32 0.0625, %v1371_v33  ;;  %v1388_v39 = vmul.f32 0.0625, %v1387_v59 }
 0x2cd   :  { %v1424_v27 = vmax.f32 %v1423_v30, %v1372_v26  ;;  %2374 = vmatpush1.bf16.msra.mxu0 %v4114_v35  ;;  %2415 = vmatpush1.bf16.msra.mxu1 %v4117_v40 }
 0x2ce   :  { %v1419_v57 = vpop.xlane.xlu1 %1418  ;;  %v1403_v56 = vpop.xlane.xlu0 %1402  ;;  %2375 = vmatprep.subr.bf16.mxu0 %v4122_v34  ;;  %2416 = vmatprep.subr.bf16.mxu1 %v4125_v50 }
 0x2cf   :  { %v1425_v32 = vmax.f32 %v1424_v27, %v1388_v39  ;;  %v1404_v36 = vmul.f32 0.0625, %v1403_v56  ;;  %v1420_v38 = vmul.f32 0.0625, %v1419_v57 }
 0x2d1   :  { %v1426_v7 = vmax.f32 %v1425_v32, %v1404_v36  ;;  %2376 = vmatpush1.bf16.msra.mxu0 %v4120_v58  ;;  %2417 = vmatpush1.bf16.msra.mxu1 %v4123_v25 }
 0x2d2   :  { %v1518_v41 = vpop.xlane.xlu1 %1517  ;;  %v1510_v48 = vpop.xlane.xlu0 %1509  ;;  %2646 = vmatprep.subr.bf16.mxu0 %v4128_v2  ;;  %2687 = vmatprep.subr.bf16.mxu1 %v4131_v1 }
 0x2d3   :  { %v1427_v44 = vmax.f32 %v1426_v7, %v1420_v38  ;;  %v1519_v45 = vmul.f32 0.088388346, %v1518_v41  ;;  %v1511_v49 = vmul.f32 0.088388346, %v1510_v48 }
 0x2d5   :  { %v1428_v43 = vsub.f32 %v1310_v54, %v1427_v44  ;;  %v1431_v31 = vsub.f32 %v1324_v47, %v1427_v44  ;;  %v1434_v55 = vsub.f32 %v1340_v62, %v1427_v44  ;;  %v1437_v8 = vsub.f32 %v1356_v5, %v1427_v44 }
 0x2d6   :  { %v1536_v14 = vpop.xlane.xlu1 %1535  ;;  %v1527_v63 = vpop.xlane.xlu0 %1526  ;;  %v1440_v40 = vsub.f32 %v1372_v26, %v1427_v44  ;;  %v1443_v33 = vsub.f32 %v1388_v39, %v1427_v44  ;;  %v1574_v50 = vmax.f32 %v1511_v49, %v1519_v45  ;;  %v1446_v54 = vsub.f32 %v1404_v36, %v1427_v44 }
 0x2d7   :  { %v1429_v11 = vmul.f32 1.442695, %v1428_v43  ;;  %v1432_v35 = vmul.f32 1.442695, %v1431_v31  ;;  %v1435_v59 = vmul.f32 1.442695, %v1434_v55  ;;  %v1449_v56 = vsub.f32 %v1420_v38, %v1427_v44 }
 0x2d8   :  { %v1438_v34 = vmul.f32 1.442695, %v1437_v8  ;;  %v1528_v30 = vmul.f32 0.088388346, %v1527_v63  ;;  %v1441_v58 = vmul.f32 1.442695, %v1440_v40 }
 0x2d9   :  { %4288 = vpow2.f32 %v1429_v11  ;;  %v1537_v62 = vmul.f32 0.088388346, %v1536_v14  ;;  %v1444_v57 = vmul.f32 1.442695, %v1443_v33  ;;  %v1447_v1 = vmul.f32 1.442695, %v1446_v54 }
 0x2da   :  { %4290 = vpow2.f32 %v1432_v35  ;;  %v1545_v27 = vpop.xlane.xlu0 %1544  ;;  %v1554_v47 = vpop.xlane.xlu1 %1553  ;;  %v1575_v5 = vmax.f32 %v1574_v50, %v1528_v30  ;;  %v1450_v48 = vmul.f32 1.442695, %v1449_v56 }
 0x2db   :  { %4292 = vpow2.f32 %v1435_v59  ;;  %v1546_v25 = vmul.f32 0.088388346, %v1545_v27  ;;  %v1555_v39 = vmul.f32 0.088388346, %v1554_v47 }
 0x2dc   :  { %4294 = vpow2.f32 %v1438_v34  ;;  %v1576_v2 = vmax.f32 %v1575_v5, %v1537_v62 }
 0x2dd   :  { %4296 = vpow2.f32 %v1441_v58 }
 0x2de   :  { %v1563_v26 = vpop.xlane.xlu0 %1562  ;;  %v1577_v32 = vmax.f32 %v1576_v2, %v1546_v25  ;;  %v1572_v41 = vpop.xlane.xlu1 %1571  ;;  %4298 = vpow2.f32 %v1444_v57 }
 0x2df   :  { %v1564_v7 = vmul.f32 0.088388346, %v1563_v26  ;;  %4300 = vpow2.f32 %v1447_v1  ;;  %v1573_v55 = vmul.f32 0.088388346, %v1572_v41 }
 0x2e0   :  { %v1578_v43 = vmax.f32 %v1577_v32, %v1555_v39  ;;  %4302 = vpow2.f32 %v1450_v48 }
 0x2e2   :  { %v1579_v8 = vmax.f32 %v1578_v43, %v1564_v7 }
 0x2e3   :  { %v4289_v36 = vpop.eup %4288 }
 0x2e4   :  { %v4291_v31 = vpop.eup %4290  ;;  %v1580_v38 = vmax.f32 %v1579_v8, %v1573_v55 }
 0x2e5   :  { %v1452_v14 = vadd.f32 %v4291_v31, %v4289_v36  ;;  %v4293_v63 = vpop.eup %4292 }
 0x2e6   :  { %v4295_v11 = vpop.eup %4294  ;;  %v1581_v35 = vsub.f32 %v1511_v49, %v1580_v38  ;;  %v1584_v40 = vsub.f32 %v1519_v45, %v1580_v38  ;;  %v1587_v59 = vsub.f32 %v1528_v30, %v1580_v38  ;;  %v1590_v34 = vsub.f32 %v1537_v62, %v1580_v38 }
 0x2e7   :  { %v1453_v44 = vadd.f32 %v4293_v63, %v1452_v14  ;;  %v4297_v50 = vpop.eup %4296  ;;  %v1593_v54 = vsub.f32 %v1546_v25, %v1580_v38  ;;  %v1596_v26 = vsub.f32 %v1555_v39, %v1580_v38  ;;  %v1599_v45 = vsub.f32 %v1564_v7, %v1580_v38 }
 0x2e8   :  { %v1582_v27 = vmul.f32 1.442695, %v1581_v35  ;;  %v1585_v58 = vmul.f32 1.442695, %v1584_v40  ;;  %v1588_v5 = vmul.f32 1.442695, %v1587_v59  ;;  %v4299_v57 = vpop.eup %4298  ;;  %v1602_v48 = vsub.f32 %v1573_v55, %v1580_v38 }
 0x2e9   :  { %v1454_v33 = vadd.f32 %v4295_v11, %v1453_v44  ;;  %v1591_v2 = vmul.f32 1.442695, %v1590_v34  ;;  %v4301_v1 = vpop.eup %4300  ;;  %v1594_v32 = vmul.f32 1.442695, %v1593_v54  ;;  %v1597_v62 = vmul.f32 1.442695, %v1596_v26 }
 0x2ea   :  { %4304 = vpow2.f32 %v1582_v27  ;;  %v4303_v49 = vpop.eup %4302  ;;  %v1600_v25 = vmul.f32 1.442695, %v1599_v45  ;;  %v1603_v43 = vmul.f32 1.442695, %v1602_v48 }
 0x2eb   :  { %v1455_v47 = vadd.f32 %v4297_v50, %v1454_v33  ;;  %4306 = vpow2.f32 %v1585_v58 }
 0x2ec   :  { %4308 = vpow2.f32 %v1588_v5 }
 0x2ed   :  { %v1456_v56 = vadd.f32 %v4299_v57, %v1455_v47  ;;  %4310 = vpow2.f32 %v1591_v2 }
 0x2ee   :  { %4312 = vpow2.f32 %v1594_v32 }
 0x2ef   :  { %v1457_v41 = vadd.f32 %v4301_v1, %v1456_v56 }
 0x2f1   :  { %v1458_v30 = vadd.f32 %v4303_v49, %v1457_v41 }
 0x2f3   :  { %4314 = vrcp.f32 %v1458_v30 }
 0x2f4   :  { %4316 = vpow2.f32 %v1597_v62  ;;  %v4305_v8 = vpop.eup %4304 }
 0x2f5   :  { %v4307_v14 = vpop.eup %4306  ;;  %4318 = vpow2.f32 %v1600_v25 }
 0x2f6   :  { %v1605_v44 = vadd.f32 %v4307_v14, %v4305_v8  ;;  %v5001_v39 = vpop.eup %4308  ;;  %4320 = vpow2.f32 %v1603_v43 }
 0x2f7   :  { %v5004_v7 = vpop.eup %4310 }
 0x2f8   :  { %v1606_v35 = vadd.f32 %v5001_v39, %v1605_v44  ;;  %v5006_v40 = vpop.eup %4312 }
 0x2fa   :  { %v1607_v55 = vadd.f32 %v5004_v7, %v1606_v35 }
 0x2fc   :  { %v1608_v59 = vadd.f32 %v5006_v40, %v1607_v55 }
 0x2fd   :  { %v4315_v38 = vpop.eup %4314 }
 0x2fe   :  { %v1460_v33 = vmul.f32 %v4315_v38, %v4289_v36  ;;  %v1463_v34 = vmul.f32 %v4315_v38, %v4291_v31  ;;  %v1468_v27 = vmul.f32 %v4315_v38, %v4293_v63  ;;  %v5010_v58 = vpop.eup %4316  ;;  %v1473_v56 = vmul.f32 %v4315_v38, %v4295_v11 }
 0x2ff   :  { %v1609_v54 = vadd.f32 %v5010_v58, %v1608_v59  ;;  %v5015_v2 = vpop.eup %4318  ;;  %v1478_v26 = vmul.f32 %v4315_v38, %v4297_v50  ;;  %v1483_v11 = vmul.f32 %v4315_v38, %v4299_v57  ;;  %v1493_v35 = vmul.f32 %v4315_v38, %v4303_v49 }
 0x300   :  { %v1462_v47 = vmul.f32 %v1460_v33, %v4880_v52  ;;  %v1465_v5 = vmul.f32 %v1463_v34, %v4877_v51  ;;  %v1470_v45 = vmul.f32 %v1468_v27, %v4891_v60  ;;  %v1461_v36 = vmul.f32 %v1460_v33, %v4839_v13  ;;  %v5020_v31 = vpop.eup %4320 }
 0x301   :  { %v1610_v32 = vadd.f32 %v5015_v2, %v1609_v54  ;;  %v1464_v63 = vmul.f32 %v1463_v34, %v4836_v12  ;;  %v1475_v51 = vmul.f32 %v1473_v56, %v4883_v53  ;;  %v1469_v50 = vmul.f32 %v1468_v27, %v4845_v19 }
 0x302   :  { %v1467_v41 = vadd.f32 %v1465_v5, %v1462_v47  ;;  %v1480_v25 = vmul.f32 %v1478_v26, %v4902_v4  ;;  %v1488_v60 = vmul.f32 %v4315_v38, %v4301_v1  ;;  %v1474_v13 = vmul.f32 %v1473_v56, %v4842_v15  ;;  %v4129_v5 = vld [vmem:[#allocation13 + $0x8] ss:$16 sps:$4 sm:$0xff]   ;;  %v4134_v56 = vld [vmem:[#allocation13 + $0x24] ss:$16 sps:$4 sm:$0xff]  }
 0x303   :  { %v1611_v30 = vadd.f32 %v5020_v31, %v1610_v32  ;;  %v1466_v62 = vadd.f32 %v1464_v63, %v1461_v36  ;;  %v1485_v12 = vmul.f32 %v1483_v11, %v4898_v0  ;;  %v1479_v59 = vmul.f32 %v1478_v26, %v4851_v21  ;;  %v4137_v26 = vld [vmem:[#allocation13 + $0x2c] ss:$16 sps:$4 sm:$0xff]  }
 0x304   :  { %v1472_v52 = vadd.f32 %v1470_v45, %v1467_v41  ;;  %v1490_v57 = vmul.f32 %v1488_v60, %v4909_v10  ;;  %v1484_v19 = vmul.f32 %v1483_v11, %v4848_v20  ;;  %v1495_v4 = vmul.f32 %v1493_v35, %v4906_v9  ;;  %v4126_v20 = vld [vmem:[#allocation13] ss:$16 sps:$4 sm:$0xff]   ;;  %v4140_v41 = vld [vmem:[#allocation13 + $0x44] ss:$16 sps:$4 sm:$0xff]   ;;  %v4143_v45 = vld [vmem:[#allocation13 + $0x4c] ss:$16 sps:$4 sm:$0xff]  }
 0x305   :  { %4322 = vrcp.f32 %v1611_v30  ;;  %v1471_v43 = vadd.f32 %v1469_v50, %v1466_v62  ;;  %v1489_v27 = vmul.f32 %v1488_v60, %v4862_v24  ;;  %v1494_v0 = vmul.f32 %v1493_v35, %v4859_v23  ;;  %v4141_v30 = vld [vmem:[#allocation13 + $0x48] ss:$16 sps:$4 sm:$0xff]  }
 0x306   :  { %v1477_v48 = vadd.f32 %v1475_v51, %v1472_v52  ;;  %v5230_v63 = vmov 0   ;;  %v4146_v52 = vld [vmem:[#allocation13 + $0x64] ss:$16 sps:$4 sm:$0xff]   ;;  %v4149_v51 = vld [vmem:[#allocation13 + $0x6c] ss:$16 sps:$4 sm:$0xff]  }
 0x307   :  { %v1476_v55 = vadd.f32 %v1474_v13, %v1471_v43 }
 0x308   :  { %v1482_v44 = vadd.f32 %v1480_v25, %v1477_v48  ;;  %v4147_v48 = vld [vmem:[#allocation13 + $0x68] ss:$16 sps:$4 sm:$0xff]   ;;  %v4155_v25 = vld [vmem:[#allocation13 + $0x8c] ss:$16 sps:$4 sm:$0xff]  }
 0x309   :  { %v1481_v33 = vadd.f32 %v1479_v59, %v1476_v55 }
 0x30a   :  { %v1487_v53 = vadd.f32 %v1485_v12, %v1482_v44  ;;  %v4153_v44 = vld [vmem:[#allocation13 + $0x88] ss:$16 sps:$4 sm:$0xff]   ;;  %v4161_v12 = vld [vmem:[#allocation13 + $0xac] ss:$16 sps:$4 sm:$0xff]  }
 0x30b   :  { %v1486_v1 = vadd.f32 %v1484_v19, %v1481_v33 }
 0x30c   :  { %v1492_v34 = vadd.f32 %v1490_v57, %v1487_v53  ;;  %v4159_v53 = vld [vmem:[#allocation13 + $0xa8] ss:$16 sps:$4 sm:$0xff]   ;;  %v4167_v57 = vld [vmem:[#allocation13 + $0xcc] ss:$16 sps:$4 sm:$0xff]  }
 0x30d   :  { %v1491_v54 = vadd.f32 %v1489_v27, %v1486_v1  ;;  %v4173_v1 = vld [vmem:[#allocation13 + $0xec] ss:$16 sps:$4 sm:$0xff]  }
 0x30e   :  { %v1497_v15 = vadd.f32 %v1495_v4, %v1492_v34  ;;  %v4165_v4 = vld [vmem:[#allocation13 + $0xc8] ss:$16 sps:$4 sm:$0xff]  }
 0x30f   :  { %v5035_v49 = vpop.eup %4322  ;;  %v1496_v21 = vadd.f32 %v1494_v0, %v1491_v54  ;;  %v4168_v54 = vld [vmem:[#allocation13 + $0xe0] ss:$16 sps:$4 sm:$0xff]   ;;  %v4171_v0 = vld [vmem:[#allocation13 + $0xe8] ss:$16 sps:$4 sm:$0xff]  }
 0x310   :  { %v1938_v38 = vpack.c.bf16 %v1497_v15, %v1497_v15  ;;  %v1613_v47 = vmul.f32 %v5035_v49, %v4305_v8  ;;  %v1615_v10 = vmul.f32 %v5035_v49, %v4307_v14  ;;  %v1618_v23 = vmul.f32 %v5035_v49, %v5001_v39  ;;  %v4132_v8 = vld [vmem:[#allocation13 + $0x20] ss:$16 sps:$4 sm:$0xff]   ;;  %v4135_v14 = vld [vmem:[#allocation13 + $0x28] ss:$16 sps:$4 sm:$0xff]  }
 0x311   :  { %v1937_v9 = vpack.c.bf16 %v1496_v21, %v1496_v21  ;;  %v4138_v39 = vld [vmem:[#allocation13 + $0x40] ss:$16 sps:$4 sm:$0xff]   ;;  %v1624_v50 = vmul.f32 %v5035_v49, %v5006_v40  ;;  %v1627_v13 = vmul.f32 %v5035_v49, %v5010_v58  ;;  %v4158_v40 = vld [vmem:[#allocation13 + $0xa4] ss:$16 sps:$4 sm:$0xff]   ;;  %v1630_v59 = vmul.f32 %v5035_v49, %v5015_v2 }
 0x312   :  { %2377 = vmatprep.mubr.bf16.mxu0 %v1938_v38  ;;  %2418 = vmatprep.mubr.bf16.mxu1 %v1938_v38  ;;  %v1614_v24 = vmul.f32 %v1613_v47, %v4947_v17  ;;  %v1616_v32 = vmul.f32 %v1615_v10, %v4943_v3  ;;  %v1619_v3 = vmul.f32 %v1618_v23, %v4959_v42  ;;  %v4144_v42 = vld [vmem:[#allocation13 + $0x60] ss:$16 sps:$4 sm:$0xff]   ;;  %v4164_v58 = vld [vmem:[#allocation13 + $0xc4] ss:$16 sps:$4 sm:$0xff]  }
 0x313   :  { %2378 = vmatmul.mubr.bf16.vlgmr.msra.gmra.mrb[8].mxu0 %v1937_v9  ;;  %2419 = vmatmul.mubr.bf16.vlgmr.msra.gmra.mrb[12].mxu1 %v1937_v9  ;;  %v1621_v17 = vmul.f32 %v5035_v49, %v5004_v7  ;;  %v4152_v7 = vld [vmem:[#allocation13 + $0x84] ss:$16 sps:$4 sm:$0xff]   ;;  %v1625_v43 = vmul.f32 %v1624_v50, %v4972_v61  ;;  %v1628_v55 = vmul.f32 %v1627_v13, %v4964_v46  ;;  %v4156_v61 = vld [vmem:[#allocation13 + $0xa0] ss:$16 sps:$4 sm:$0xff]  }
 0x314   :  { %2647 = vmatpush1.bf16.msra.mxu0 %v4126_v20  ;;  %2688 = vmatpush1.bf16.msra.mxu1 %v4129_v5  ;;  %v1617_v36 = vadd.f32 %v1616_v32, %v1614_v24  ;;  %v1631_v19 = vmul.f32 %v1630_v59, %v4985_v29  ;;  %v1633_v34 = vmul.f32 %v5035_v49, %v5020_v31  ;;  %v4162_v46 = vld [vmem:[#allocation13 + $0xc0] ss:$16 sps:$4 sm:$0xff]   ;;  %v4170_v2 = vld [vmem:[#allocation13 + $0xe4] ss:$16 sps:$4 sm:$0xff]  }
 0x315   :  { %2648 = vmatprep.subr.bf16.mxu0 %v4134_v56  ;;  %2689 = vmatprep.subr.bf16.mxu1 %v4137_v26  ;;  %v1622_v62 = vmul.f32 %v1621_v17, %v4956_v37  ;;  %v4150_v37 = vld [vmem:[#allocation13 + $0x80] ss:$16 sps:$4 sm:$0xff]  }
 0x316   :  { %2678 = vmatprep.mubr.bf16.mxu0 %v5230_v63  ;;  %2719 = vmatprep.mubr.bf16.mxu1 %v5230_v63  ;;  %v1620_v11 = vadd.f32 %v1619_v3, %v1617_v36  ;;  %v1634_v15 = vmul.f32 %v1633_v34, %v4982_v28  ;;  %v1669_v49 = vld [vmem:[%s5215_s7] sm:$0xf] }
 0x317   :  { %v1674_v38 = vrot.slane %v1669_v49, %v4774_v16  ;;  %v1682_v28 = vrot.slane %v1669_v49, %v4833_v6  ;;  %v1678_v21 = vrot.slane %v1669_v49, %v4782_v18  ;;  %v1686_v47 = vrot.slane %v1669_v49, %v4856_v22 }
 0x318   :  { %2649 = vmatpush1.bf16.msra.mxu0 %v4132_v8  ;;  %2690 = vmatpush1.bf16.msra.mxu1 %v4135_v14  ;;  %v1623_v60 = vadd.f32 %v1622_v62, %v1620_v11 }
 0x319   :  { %2650 = vmatprep.subr.bf16.mxu0 %v4140_v41  ;;  %2691 = vmatprep.subr.bf16.mxu1 %v4143_v45 }
 0x31a   :  { %v1626_v35 = vadd.f32 %v1625_v43, %v1623_v60 }
 0x31c   :  { %2651 = vmatpush1.bf16.msra.mxu0 %v4138_v39  ;;  %2692 = vmatpush1.bf16.msra.mxu1 %v4141_v30  ;;  %v1629_v33 = vadd.f32 %v1628_v55, %v1626_v35 }
 0x31d   :  { %2652 = vmatprep.subr.bf16.mxu0 %v4146_v52  ;;  %2693 = vmatprep.subr.bf16.mxu1 %v4149_v51 }
 0x31e   :  { %v1632_v27 = vadd.f32 %v1631_v19, %v1629_v33 }
 0x320   :  { %2653 = vmatpush1.bf16.msra.mxu0 %v4144_v42  ;;  %2694 = vmatpush1.bf16.msra.mxu1 %v4147_v48  ;;  %v1635_v29 = vadd.f32 %v1634_v15, %v1632_v27 }
 0x321   :  { %2654 = vmatprep.subr.bf16.mxu0 %v4152_v7  ;;  %2695 = vmatprep.subr.bf16.mxu1 %v4155_v25  ;;  %v2003_v25 = vld [vmem:[%s5217_s9] sm:$0xf] }
 0x322   :  { %v2431_v31 = vpack.c.bf16 %v1635_v29, %v1635_v29  ;;  %v2008_v60 = vrot.slane %v2003_v25, %v4774_v16  ;;  %v2016_v43 = vrot.slane %v2003_v25, %v4833_v6  ;;  %v2012_v13 = vrot.slane %v2003_v25, %v4782_v18 }
 0x324   :  { %2655 = vmatpush1.bf16.msra.mxu0 %v4150_v37  ;;  %2696 = vmatpush1.bf16.msra.mxu1 %v4153_v44  ;;  %v2020_v37 = vrot.slane %v2003_v25, %v4856_v22 }
 0x325   :  { %2656 = vmatprep.subr.bf16.mxu0 %v4158_v40  ;;  %2697 = vmatprep.subr.bf16.mxu1 %v4161_v12 }
 0x328   :  { %2657 = vmatpush1.bf16.msra.mxu0 %v4156_v61  ;;  %2698 = vmatpush1.bf16.msra.mxu1 %v4159_v53 }
 0x329   :  { %2658 = vmatprep.subr.bf16.mxu0 %v4164_v58  ;;  %2699 = vmatprep.subr.bf16.mxu1 %v4167_v57 }
 0x32c   :  { %2659 = vmatpush1.bf16.msra.mxu0 %v4162_v46  ;;  %2700 = vmatpush1.bf16.msra.mxu1 %v4165_v4 }
 0x32d   :  { %2660 = vmatprep.subr.bf16.mxu0 %v4170_v2  ;;  %2701 = vmatprep.subr.bf16.mxu1 %v4173_v1 }
 0x330   :  { %2661 = vmatpush1.bf16.msra.mxu0 %v4168_v54  ;;  %2702 = vmatpush1.bf16.msra.mxu1 %v4171_v0 }
 0x333   :  { %2679 = vmatmul.mubr.bf16.vlgmr.msra.gmra.mrb[12].mxu0 %v2431_v31  ;;  %2720 = vmatmul.mubr.bf16.vlgmr.msra.gmra.mrb[16].mxu1 %v2431_v31 }
 0x367   :  { %v1885_v10 = vpop.f32.mrb[4].mxu0  ;;  %v1926_v20 = vpop.f32.mrb[8].mxu1 }
 0x368   :  { %v1886_v5 = vadd.f32 %v1885_v10, %v1674_v38  ;;  %v1927_v9 = vadd.f32 %v1926_v20, %v1682_v28  ;;  %v1887_v56 = vpop.f32.mrb[5].mxu0  ;;  %v1928_v26 = vpop.f32.mrb[9].mxu1 }
 0x369   :  { %v1888_v24 = vadd.f32 %v1887_v56, %v1678_v21  ;;  %v1929_v32 = vadd.f32 %v1928_v26, %v1686_v47  ;;  %v1889_v23 = vpop.f32.mrb[6].mxu0  ;;  %v1930_v8 = vpop.f32.mrb[10].mxu1 }
 0x36a   :  { %v5068_v14 = vmax.f32 %v1886_v5, 0.0  ;;  %v5070_v41 = vmax.f32 %v1927_v9, 0.0  ;;  %v1890_v45 = vpop.f32.mrb[7].mxu0  ;;  %v1931_v36 = vpop.f32.mrb[11].mxu1 }
 0x36b   :  { %v5072_v63 = vmax.f32 %v1888_v24, 0.0  ;;  %v5074_v3 = vmax.f32 %v1929_v32, 0.0  ;;  %v2464_v45 = vld [vmem:[%s5219_s11] sm:$0xf] }
 0x36c   :  { %v2732_v17 = vmul.f32 %v5068_v14, %v5068_v14  ;;  %v2734_v30 = vmul.f32 %v5070_v41, %v5070_v41  ;;  %v2469_v36 = vrot.slane %v2464_v45, %v4774_v16 }
 0x36d   :  { %v2733_v39 = vmul.f32 %v5072_v63, %v5072_v63  ;;  %v2735_v51 = vmul.f32 %v5074_v3, %v5074_v3 }
 0x36e   :  { %v2736_v52 = vsel %vm1158_vm1, %v2732_v17, 0.0  ;;  %v2739_v50 = vsel %vm1158_vm1, %v2734_v30, 0.0  ;;  %v2477_v17 = vrot.slane %v2464_v45, %v4833_v6  ;;  %v2481_v30 = vrot.slane %v2464_v45, %v4856_v22  ;;  %v4177_v6 = vld [vmem:[#allocation14 + $0x10] ss:$8 sps:$4 sm:$0xff]  }
 0x36f   :  { %v2737_v11 = vsel %vm1158_vm1, %v2733_v39, 0.0  ;;  %v2741_v48 = vsel %vm1158_vm1, %v2735_v51, 0.0  ;;  %v2473_v39 = vrot.slane %v2464_v45, %v4782_v18  ;;  %v4176_v51 = vld [vmem:[#allocation14 + $0x4] ss:$8 sps:$4 sm:$0xff]  }
 0x370   :  { %v2738_v62 = vadd.f32 %v2737_v11, %v2736_v52  ;;  %v4174_v52 = vld [vmem:[#allocation14] ss:$8 sps:$4 sm:$0xff]   ;;  %3300 = vmatprep.subr.bf16.mxu0 %v4176_v51  ;;  %v4185_v51 = vld [vmem:[#allocation14 + $0x34] ss:$8 sps:$4 sm:$0xff]  }
 0x371   :  { %3301 = vmatpush1.bf16.msra.mxu0 %v4174_v52 }
 0x372   :  { %v2740_v42 = vadd.f32 %v2739_v50, %v2738_v62  ;;  %v4179_v50 = vld [vmem:[#allocation14 + $0x14] ss:$8 sps:$4 sm:$0xff]  }
 0x373   :  { %3302 = vmatprep.subr.bf16.mxu0 %v4179_v50  ;;  %v4186_v50 = vld [vmem:[#allocation14 + $0x40] ss:$8 sps:$4 sm:$0xff]  }
 0x374   :  { %v2742_v7 = vadd.f32 %v2741_v48, %v2740_v42 }
 0x375   :  { %3303 = vmatpush1.bf16.msra.mxu0 %v4177_v6  ;;  %v4203_v6 = vld [vmem:[#allocation14 + $0x94] ss:$8 sps:$4 sm:$0xff]  }
 0x376   :  { %2743 = vadd.xlane.f32.xlu0 %v2742_v7 }
 0x3e6   :  { %v2379_v44 = vpop.f32.mrb[8].mxu0  ;;  %v2420_v40 = vpop.f32.mrb[12].mxu1 }
 0x3e7   :  { %v2380_v12 = vadd.f32 %v2379_v44, %v2008_v60  ;;  %v2421_v35 = vadd.f32 %v2420_v40, %v2016_v43  ;;  %v2381_v55 = vpop.f32.mrb[9].mxu0  ;;  %v2422_v59 = vpop.f32.mrb[13].mxu1 }
 0x3e8   :  { %v2382_v61 = vadd.f32 %v2381_v55, %v2012_v13  ;;  %v2423_v53 = vadd.f32 %v2422_v59, %v2020_v37  ;;  %v2383_v58 = vpop.f32.mrb[10].mxu0  ;;  %v2424_v57 = vpop.f32.mrb[14].mxu1 }
 0x3e9   :  { %v5095_v33 = vmax.f32 %v2380_v12, 0.0  ;;  %v5097_v19 = vmax.f32 %v2421_v35, 0.0  ;;  %v2384_v34 = vpop.f32.mrb[11].mxu0  ;;  %v2425_v46 = vpop.f32.mrb[15].mxu1  ;;  %v4182_v35 = vld [vmem:[#allocation14 + $0x24] ss:$8 sps:$4 sm:$0xff]  }
 0x3ea   :  { %v5099_v4 = vmax.f32 %v2382_v61, 0.0  ;;  %v5101_v2 = vmax.f32 %v2423_v53, 0.0  ;;  %3304 = vmatprep.subr.bf16.mxu0 %v4182_v35  ;;  %v4204_v35 = vld [vmem:[#allocation14 + $0xa0] ss:$8 sps:$4 sm:$0xff]  }
 0x3eb   :  { %v2774_v1 = vmul.f32 %v5095_v33, %v5095_v33  ;;  %v2746_v27 = vmul.f32 %v5095_v33, %v5068_v14  ;;  %v2776_v54 = vmul.f32 %v5097_v19, %v5097_v19  ;;  %v2748_v29 = vmul.f32 %v5097_v19, %v5070_v41 }
 0x3ec   :  { %v2775_v15 = vmul.f32 %v5099_v4, %v5099_v4  ;;  %v2747_v0 = vmul.f32 %v5099_v4, %v5072_v63  ;;  %v2777_v38 = vmul.f32 %v5101_v2, %v5101_v2  ;;  %v2749_v21 = vmul.f32 %v5101_v2, %v5074_v3 }
 0x3ed   :  { %v2778_v31 = vsel %vm1158_vm1, %v2774_v1, 0.0  ;;  %v2750_v49 = vsel %vm1158_vm1, %v2746_v27, 0.0  ;;  %v2781_v5 = vsel %vm1158_vm1, %v2776_v54, 0.0  ;;  %v2753_v9 = vsel %vm1158_vm1, %v2748_v29, 0.0  ;;  %v4180_v1 = vld [vmem:[#allocation14 + $0x20] ss:$8 sps:$4 sm:$0xff]  }
 0x3ee   :  { %v2779_v28 = vsel %vm1158_vm1, %v2775_v15, 0.0  ;;  %v2751_v47 = vsel %vm1158_vm1, %v2747_v0, 0.0  ;;  %v2783_v24 = vsel %vm1158_vm1, %v2777_v38, 0.0  ;;  %v2755_v32 = vsel %vm1158_vm1, %v2749_v21, 0.0  ;;  %3305 = vmatpush1.bf16.msra.mxu0 %v4180_v1  ;;  %v4218_v1 = vld [vmem:[#allocation14 + $0xe4] ss:$8 sps:$4 sm:$0xff]  }
 0x3ef   :  { %v2780_v10 = vadd.f32 %v2779_v28, %v2778_v31  ;;  %v2752_v20 = vadd.f32 %v2751_v47, %v2750_v49  ;;  %3306 = vmatprep.subr.bf16.mxu0 %v4185_v51 }
 0x3f1   :  { %v2782_v56 = vadd.f32 %v2781_v5, %v2780_v10  ;;  %v2754_v26 = vadd.f32 %v2753_v9, %v2752_v20 }
 0x3f3   :  { %v2784_v23 = vadd.f32 %v2783_v24, %v2782_v56  ;;  %v2756_v8 = vadd.f32 %v2755_v32, %v2754_v26 }
 0x3f5   :  { %2785 = vadd.xlane.f32.xlu0 %v2784_v23  ;;  %2757 = vadd.xlane.f32.xlu1 %v2756_v8 }
 0x406   :  { %v2680_v11 = vpop.f32.mrb[12].mxu0  ;;  %v2721_v62 = vpop.f32.mrb[16].mxu1 }
 0x407   :  { %v2681_v42 = vadd.f32 %v2680_v11, %v2469_v36  ;;  %v2722_v48 = vadd.f32 %v2721_v62, %v2477_v17  ;;  %v2682_v7 = vpop.f32.mrb[13].mxu0  ;;  %v2723_v25 = vpop.f32.mrb[17].mxu1  ;;  %v4183_v11 = vld [vmem:[#allocation14 + $0x30] ss:$8 sps:$4 sm:$0xff]   ;;  %v4188_v62 = vld [vmem:[#allocation14 + $0x44] ss:$8 sps:$4 sm:$0xff]  }
 0x408   :  { %v2683_v60 = vadd.f32 %v2682_v7, %v2473_v39  ;;  %v2724_v43 = vadd.f32 %v2723_v25, %v2481_v30  ;;  %v2684_v13 = vpop.f32.mrb[14].mxu0  ;;  %v2725_v37 = vpop.f32.mrb[18].mxu1  ;;  %3307 = vmatpush1.bf16.msra.mxu0 %v4183_v11  ;;  %v4194_v7 = vld [vmem:[#allocation14 + $0x64] ss:$8 sps:$4 sm:$0xff]   ;;  %v4192_v25 = vld [vmem:[#allocation14 + $0x60] ss:$8 sps:$4 sm:$0xff]  }
 0x409   :  { %v5134_v44 = vmax.f32 %v2681_v42, 0.0  ;;  %v5136_v40 = vmax.f32 %v2722_v48, 0.0  ;;  %v2685_v22 = vpop.f32.mrb[15].mxu0  ;;  %v2726_v12 = vpop.f32.mrb[19].mxu1  ;;  %3308 = vmatprep.subr.bf16.mxu0 %v4188_v62  ;;  %v4191_v42 = vld [vmem:[#allocation14 + $0x54] ss:$8 sps:$4 sm:$0xff]  }
 0x40a   :  { %v5138_v55 = vmax.f32 %v2683_v60, 0.0  ;;  %v5140_v59 = vmax.f32 %v2724_v43, 0.0  ;;  %v4189_v48 = vld [vmem:[#allocation14 + $0x50] ss:$8 sps:$4 sm:$0xff]   ;;  %v4197_v60 = vld [vmem:[#allocation14 + $0x74] ss:$8 sps:$4 sm:$0xff]  }
 0x40b   :  { %v2788_v61 = vmul.f32 %v5134_v44, %v5095_v33  ;;  %v2760_v53 = vmul.f32 %v5134_v44, %v5068_v14  ;;  %v2790_v57 = vmul.f32 %v5136_v40, %v5097_v19  ;;  %v2762_v46 = vmul.f32 %v5136_v40, %v5070_v41  ;;  %v4195_v43 = vld [vmem:[#allocation14 + $0x70] ss:$8 sps:$4 sm:$0xff]   ;;  %v4200_v13 = vld [vmem:[#allocation14 + $0x84] ss:$8 sps:$4 sm:$0xff]   ;;  %v4198_v37 = vld [vmem:[#allocation14 + $0x80] ss:$8 sps:$4 sm:$0xff]  }
 0x40c   :  { %v2789_v58 = vmul.f32 %v5138_v55, %v5099_v4  ;;  %v2761_v34 = vmul.f32 %v5138_v55, %v5072_v63  ;;  %v2791_v54 = vmul.f32 %v5140_v59, %v5101_v2  ;;  %v2763_v29 = vmul.f32 %v5140_v59, %v5074_v3  ;;  %3309 = vmatpush1.bf16.msra.mxu0 %v4186_v50  ;;  %v4201_v22 = vld [vmem:[#allocation14 + $0x90] ss:$8 sps:$4 sm:$0xff]   ;;  %v4206_v12 = vld [vmem:[#allocation14 + $0xa4] ss:$8 sps:$4 sm:$0xff]  }
 0x40d   :  { %v2792_v27 = vsel %vm1158_vm1, %v2788_v61, 0.0  ;;  %v2764_v15 = vsel %vm1158_vm1, %v2760_v53, 0.0  ;;  %v2802_v28 = vmul.f32 %v5134_v44, %v5134_v44  ;;  %v2803_v21 = vmul.f32 %v5138_v55, %v5138_v55  ;;  %3310 = vmatprep.subr.bf16.mxu0 %v4191_v42  ;;  %v4209_v61 = vld [vmem:[#allocation14 + $0xb4] ss:$8 sps:$4 sm:$0xff]   ;;  %v4207_v53 = vld [vmem:[#allocation14 + $0xb0] ss:$8 sps:$4 sm:$0xff]  }
 0x40e   :  { %v2793_v0 = vsel %vm1158_vm1, %v2789_v58, 0.0  ;;  %v2765_v31 = vsel %vm1158_vm1, %v2761_v34, 0.0  ;;  %v2795_v47 = vsel %vm1158_vm1, %v2790_v57, 0.0  ;;  %v2767_v10 = vsel %vm1158_vm1, %v2762_v46, 0.0  ;;  %v4210_v58 = vld [vmem:[#allocation14 + $0xc0] ss:$8 sps:$4 sm:$0xff]  }
 0x40f   :  { %v2794_v49 = vadd.f32 %v2793_v0, %v2792_v27  ;;  %v2766_v38 = vadd.f32 %v2765_v31, %v2764_v15  ;;  %v2804_v20 = vmul.f32 %v5136_v40, %v5136_v40  ;;  %v2806_v56 = vsel %vm1158_vm1, %v2802_v28, 0.0  ;;  %v4212_v57 = vld [vmem:[#allocation14 + $0xc4] ss:$8 sps:$4 sm:$0xff]   ;;  %v4215_v34 = vld [vmem:[#allocation14 + $0xd4] ss:$8 sps:$4 sm:$0xff]  }
 0x410   :  { %v2807_v26 = vsel %vm1158_vm1, %v2803_v21, 0.0  ;;  %v2797_v24 = vsel %vm1158_vm1, %v2791_v54, 0.0  ;;  %v2769_v32 = vsel %vm1158_vm1, %v2763_v29, 0.0  ;;  %v2805_v23 = vmul.f32 %v5140_v59, %v5140_v59  ;;  %3311 = vmatpush1.bf16.msra.mxu0 %v4189_v48  ;;  %v4213_v46 = vld [vmem:[#allocation14 + $0xd0] ss:$8 sps:$4 sm:$0xff]   ;;  %v2744_v29 = vpop.xlane.xlu0 %2743 }
 0x411   :  { %v2796_v5 = vadd.f32 %v2795_v47, %v2794_v49  ;;  %v2768_v9 = vadd.f32 %v2767_v10, %v2766_v38  ;;  %v2808_v8 = vadd.f32 %v2807_v26, %v2806_v56  ;;  %v2809_v17 = vsel %vm1158_vm1, %v2804_v20, 0.0  ;;  %3312 = vmatprep.subr.bf16.mxu0 %v4194_v7  ;;  %v4216_v27 = vld [vmem:[#allocation14 + $0xe0] ss:$8 sps:$4 sm:$0xff]   ;;  %v4221_v15 = vld [vmem:[#allocation14 + $0xf4] ss:$8 sps:$4 sm:$0xff]  }
 0x412   :  { %v2811_v30 = vsel %vm1158_vm1, %v2805_v23, 0.0  ;;  %v4219_v54 = vld [vmem:[#allocation14 + $0xf0] ss:$8 sps:$4 sm:$0xff]   ;;  %v4224_v0 = vld [vmem:[#allocation14 + $0x104] ss:$8 sps:$4 sm:$0xff]  }
 0x413   :  { %v2798_v45 = vadd.f32 %v2797_v24, %v2796_v5  ;;  %v2770_v36 = vadd.f32 %v2769_v32, %v2768_v9  ;;  %v2810_v39 = vadd.f32 %v2809_v17, %v2808_v8  ;;  %v2745_v21 = vmul.f32 0.044194173, %v2744_v29 }
 0x414   :  { %3313 = vmatpush1.bf16.msra.mxu0 %v4192_v25 }
 0x415   :  { %2799 = vadd.xlane.f32.xlu0 %v2798_v45  ;;  %2771 = vadd.xlane.f32.xlu1 %v2770_v36  ;;  %v2812_v52 = vadd.f32 %v2811_v30, %v2810_v39 }
 0x416   :  { %3314 = vmatprep.subr.bf16.mxu0 %v4197_v60 }
 0x418   :  { %3315 = vmatpush1.bf16.msra.mxu0 %v4195_v43 }
 0x419   :  { %2813 = vadd.xlane.f32.xlu1 %v2812_v52  ;;  %3316 = vmatprep.subr.bf16.mxu0 %v4200_v13 }
 0x41c   :  { %3317 = vmatpush1.bf16.msra.mxu0 %v4198_v37 }
 0x41d   :  { %3318 = vmatprep.subr.bf16.mxu0 %v4203_v6 }
 0x420   :  { %3319 = vmatpush1.bf16.msra.mxu0 %v4201_v22 }
 0x421   :  { %3320 = vmatprep.subr.bf16.mxu0 %v4206_v12 }
 0x424   :  { %3321 = vmatpush1.bf16.msra.mxu0 %v4204_v35 }
 0x425   :  { %3322 = vmatprep.subr.bf16.mxu0 %v4209_v61 }
 0x428   :  { %3323 = vmatpush1.bf16.msra.mxu0 %v4207_v53 }
 0x429   :  { %3324 = vmatprep.subr.bf16.mxu0 %v4212_v57 }
 0x42c   :  { %3325 = vmatpush1.bf16.msra.mxu0 %v4210_v58 }
 0x42d   :  { %3326 = vmatprep.subr.bf16.mxu0 %v4215_v34 }
 0x430   :  { %3327 = vmatpush1.bf16.msra.mxu0 %v4213_v46 }
 0x431   :  { %3328 = vmatprep.subr.bf16.mxu0 %v4218_v1 }
 0x434   :  { %3329 = vmatpush1.bf16.msra.mxu0 %v4216_v27 }
 0x435   :  { %3330 = vmatprep.subr.bf16.mxu0 %v4221_v15 }
 0x438   :  { %3331 = vmatpush1.bf16.msra.mxu0 %v4219_v54 }
 0x439   :  { %3341 = vmatprep.subr.bf16.mxu0 %v4224_v0 }
 0x482   :  { %v2758_v31 = vpop.xlane.xlu1 %2757  ;;  %v2786_v49 = vpop.xlane.xlu0 %2785 }
 0x483   :  { %v2759_v38 = vmul.f32 0.044194173, %v2758_v31  ;;  %v2787_v28 = vmul.f32 0.044194173, %v2786_v49 }
 0x485   :  { %v2816_v20 = vmax.f32 %v2745_v21, %v2759_v38  ;;  %v2836_v5 = vmax.f32 %v2759_v38, %v2787_v28 }
 0x4a2   :  { %v2772_v47 = vpop.xlane.xlu1 %2771  ;;  %v2800_v10 = vpop.xlane.xlu0 %2799 }
 0x4a3   :  { %v2773_v9 = vmul.f32 0.044194173, %v2772_v47  ;;  %v2801_v56 = vmul.f32 0.044194173, %v2800_v10 }
 0x4a5   :  { %v2817_v26 = vmax.f32 %v2816_v20, %v2773_v9  ;;  %v2837_v24 = vmax.f32 %v2836_v5, %v2801_v56  ;;  %v2856_v52 = vmax.f32 %v2773_v9, %v2801_v56 }
 0x4a6   :  { %v2814_v32 = vpop.xlane.xlu1 %2813 }
 0x4a7   :  { %v2818_v23 = vsub.f32 %v2745_v21, %v2817_v26  ;;  %v2821_v8 = vsub.f32 %v2759_v38, %v2817_v26  ;;  %v2824_v45 = vsub.f32 %v2773_v9, %v2817_v26  ;;  %v2838_v36 = vsub.f32 %v2759_v38, %v2837_v24 }
 0x4a8   :  { %v2841_v17 = vsub.f32 %v2787_v28, %v2837_v24  ;;  %v2844_v39 = vsub.f32 %v2801_v56, %v2837_v24  ;;  %v2815_v30 = vmul.f32 0.044194173, %v2814_v32 }
 0x4a9   :  { %v2819_v51 = vmul.f32 1.442695, %v2818_v23  ;;  %v2822_v11 = vmul.f32 1.442695, %v2821_v8  ;;  %v2825_v62 = vmul.f32 1.442695, %v2824_v45 }
 0x4aa   :  { %v2839_v50 = vmul.f32 1.442695, %v2838_v36  ;;  %v2857_v42 = vmax.f32 %v2856_v52, %v2815_v30  ;;  %v2842_v48 = vmul.f32 1.442695, %v2841_v17  ;;  %v2845_v7 = vmul.f32 1.442695, %v2844_v39 }
 0x4ab   :  { %4324 = vpow2.f32 %v2819_v51 }
 0x4ac   :  { %4326 = vpow2.f32 %v2822_v11  ;;  %v2858_v25 = vsub.f32 %v2773_v9, %v2857_v42  ;;  %v2861_v60 = vsub.f32 %v2801_v56, %v2857_v42  ;;  %v2864_v43 = vsub.f32 %v2815_v30, %v2857_v42 }
 0x4ad   :  { %4328 = vpow2.f32 %v2825_v62 }
 0x4ae   :  { %4330 = vpow2.f32 %v2839_v50  ;;  %v2859_v13 = vmul.f32 1.442695, %v2858_v25  ;;  %v2862_v37 = vmul.f32 1.442695, %v2861_v60  ;;  %v2865_v6 = vmul.f32 1.442695, %v2864_v43 }
 0x4af   :  { %4332 = vpow2.f32 %v2842_v48 }
 0x4b0   :  { %4334 = vpow2.f32 %v2845_v7 }
 0x4b1   :  { %4336 = vpow2.f32 %v2859_v13 }
 0x4b2   :  { %4338 = vpow2.f32 %v2862_v37 }
 0x4b3   :  { %4340 = vpow2.f32 %v2865_v6  ;;  %v4222_v6 = vld [vmem:[#allocation14 + $0x100] ss:$8 sps:$4 sm:$0xff]  }
 0x4b5   :  { %v4325_v22 = vpop.eup %4324 }
 0x4b6   :  { %v4327_v12 = vpop.eup %4326 }
 0x4b7   :  { %v4329_v35 = vpop.eup %4328  ;;  %v2827_v61 = vadd.f32 %v4327_v12, %v4325_v22 }
 0x4b8   :  { %v4331_v53 = vpop.eup %4330 }
 0x4b9   :  { %v4333_v58 = vpop.eup %4332  ;;  %v2828_v57 = vadd.f32 %v4329_v35, %v2827_v61  ;;  %v4231_v61 = vld [vmem:[#allocation14 + $0x130] ss:$8 sps:$4 sm:$0xff]  }
 0x4ba   :  { %v4335_v34 = vpop.eup %4334  ;;  %v2847_v46 = vadd.f32 %v4333_v58, %v4331_v53 }
 0x4bb   :  { %v4337_v1 = vpop.eup %4336  ;;  %4342 = vrcp.f32 %v2828_v57  ;;  %v4239_v57 = vld [vmem:[#allocation14 + $0x154] ss:$8 sps:$4 sm:$0xff]  }
 0x4bc   :  { %v4339_v27 = vpop.eup %4338  ;;  %v2848_v15 = vadd.f32 %v4335_v34, %v2847_v46  ;;  %v4242_v46 = vld [vmem:[#allocation14 + $0x164] ss:$8 sps:$4 sm:$0xff]  }
 0x4bd   :  { %v2867_v54 = vadd.f32 %v4339_v27, %v4337_v1  ;;  %v4341_v0 = vpop.eup %4340 }
 0x4be   :  { %4344 = vrcp.f32 %v2848_v15  ;;  %v4243_v15 = vld [vmem:[#allocation14 + $0x170] ss:$8 sps:$4 sm:$0xff]  }
 0x4bf   :  { %v2868_v29 = vadd.f32 %v4341_v0, %v2867_v54  ;;  %v4248_v54 = vld [vmem:[#allocation14 + $0x184] ss:$8 sps:$4 sm:$0xff]  }
 0x4c1   :  { %4346 = vrcp.f32 %v2868_v29  ;;  %v4251_v29 = vld [vmem:[#allocation14 + $0x194] ss:$8 sps:$4 sm:$0xff]  }
 0x4c5   :  { %v4343_v31 = vpop.eup %4342 }
 0x4c6   :  { %v2830_v49 = vmul.f32 %v4343_v31, %v4325_v22  ;;  %v2832_v38 = vmul.f32 %v4343_v31, %v4327_v12  ;;  %v2834_v21 = vmul.f32 %v4343_v31, %v4329_v35  ;;  %v4227_v22 = vld [vmem:[#allocation14 + $0x114] ss:$8 sps:$4 sm:$0xff]   ;;  %v4230_v12 = vld [vmem:[#allocation14 + $0x124] ss:$8 sps:$4 sm:$0xff]   ;;  %v4249_v31 = vld [vmem:[#allocation14 + $0x190] ss:$8 sps:$4 sm:$0xff]  }
 0x4c7   :  { %v4233_v35 = vld [vmem:[#allocation14 + $0x134] ss:$8 sps:$4 sm:$0xff]  }
 0x4c8   :  { %v4345_v28 = vpop.eup %4344 }
 0x4c9   :  { %v2850_v47 = vmul.f32 %v4345_v28, %v4331_v53  ;;  %v2852_v10 = vmul.f32 %v4345_v28, %v4333_v58  ;;  %v2854_v20 = vmul.f32 %v4345_v28, %v4335_v34  ;;  %v4236_v53 = vld [vmem:[#allocation14 + $0x144] ss:$8 sps:$4 sm:$0xff]   ;;  %v4234_v58 = vld [vmem:[#allocation14 + $0x140] ss:$8 sps:$4 sm:$0xff]   ;;  %v4237_v34 = vld [vmem:[#allocation14 + $0x150] ss:$8 sps:$4 sm:$0xff]  }
 0x4ca   :  { %v4257_v28 = vld [vmem:[#allocation14 + $0x1b4] ss:$8 sps:$4 sm:$0xff]  }
 0x4cb   :  { %v4347_v5 = vpop.eup %4346  ;;  %v2851_v9 = vadd.f32 %v2850_v47, %v2830_v49  ;;  %v2853_v56 = vadd.f32 %v2852_v10, %v2832_v38  ;;  %v2855_v23 = vadd.f32 %v2854_v20, %v2834_v21  ;;  %v4254_v49 = vld [vmem:[#allocation14 + $0x1a4] ss:$8 sps:$4 sm:$0xff]   ;;  %v4252_v38 = vld [vmem:[#allocation14 + $0x1a0] ss:$8 sps:$4 sm:$0xff]   ;;  %v4255_v21 = vld [vmem:[#allocation14 + $0x1b0] ss:$8 sps:$4 sm:$0xff]  }
 0x4cc   :  { %v2870_v26 = vmul.f32 %v4347_v5, %v4337_v1  ;;  %v2872_v24 = vmul.f32 %v4347_v5, %v4339_v27  ;;  %v2874_v32 = vmul.f32 %v4347_v5, %v4341_v0  ;;  %v4240_v1 = vld [vmem:[#allocation14 + $0x160] ss:$8 sps:$4 sm:$0xff]   ;;  %v4245_v27 = vld [vmem:[#allocation14 + $0x174] ss:$8 sps:$4 sm:$0xff]   ;;  %v4260_v47 = vld [vmem:[#allocation14 + $0x1c4] ss:$8 sps:$4 sm:$0xff]  }
 0x4cd   :  { %v4246_v0 = vld [vmem:[#allocation14 + $0x180] ss:$8 sps:$4 sm:$0xff]   ;;  %v4263_v20 = vld [vmem:[#allocation14 + $0x1d4] ss:$8 sps:$4 sm:$0xff]   ;;  %v4261_v5 = vld [vmem:[#allocation14 + $0x1d0] ss:$8 sps:$4 sm:$0xff]  }
 0x4ce   :  { %v2871_v8 = vadd.f32 %v2870_v26, %v2851_v9  ;;  %v2873_v45 = vadd.f32 %v2872_v24, %v2853_v56  ;;  %v2875_v36 = vadd.f32 %v2874_v32, %v2855_v23  ;;  %v4258_v10 = vld [vmem:[#allocation14 + $0x1c0] ss:$8 sps:$4 sm:$0xff]   ;;  %v4266_v9 = vld [vmem:[#allocation14 + $0x1e4] ss:$8 sps:$4 sm:$0xff]   ;;  %v4269_v26 = vld [vmem:[#allocation14 + $0x1f4] ss:$8 sps:$4 sm:$0xff]  }
 0x4cf   :  { %v4264_v56 = vld [vmem:[#allocation14 + $0x1e0] ss:$8 sps:$4 sm:$0xff]   ;;  %v4267_v24 = vld [vmem:[#allocation14 + $0x1f0] ss:$8 sps:$4 sm:$0xff]  }
 0x4d0   :  { %v2877_v17 = vmul.f32 %v2871_v8, %v5072_v63  ;;  %v2881_v39 = vmul.f32 %v2873_v45, %v5099_v4  ;;  %v2876_v30 = vmul.f32 %v2871_v8, %v5068_v14  ;;  %v2880_v52 = vmul.f32 %v2873_v45, %v5095_v33 }
 0x4d1   :  { %v2879_v51 = vmul.f32 %v2871_v8, %v5074_v3  ;;  %v2883_v11 = vmul.f32 %v2873_v45, %v5101_v2  ;;  %v2889_v50 = vmul.f32 %v2875_v36, %v5138_v55  ;;  %v2878_v42 = vmul.f32 %v2871_v8, %v5070_v41  ;;  %v2968_v8 = vld [vmem:[%s5221_s13] sm:$0x3] }
 0x4d2   :  { %v2885_v62 = vadd.f32 %v2881_v39, %v2877_v17  ;;  %v2882_v48 = vmul.f32 %v2873_v45, %v5097_v19  ;;  %v2884_v7 = vadd.f32 %v2880_v52, %v2876_v30  ;;  %v2888_v63 = vmul.f32 %v2875_v36, %v5134_v44 }
 0x4d3   :  { %v2887_v25 = vadd.f32 %v2883_v11, %v2879_v51  ;;  %v2891_v4 = vmul.f32 %v2875_v36, %v5140_v59  ;;  %v2890_v33 = vmul.f32 %v2875_v36, %v5136_v40  ;;  %v4225_v59 = vld [vmem:[#allocation14 + $0x110] ss:$8 sps:$4 sm:$0xff]   ;;  %v4228_v40 = vld [vmem:[#allocation14 + $0x120] ss:$8 sps:$4 sm:$0xff]   ;;  %v2973_v45 = vrot.slane %v2968_v8, %v4774_v16 }
 0x4d4   :  { %v2893_v14 = vadd.f32 %v2889_v50, %v2885_v62  ;;  %v2886_v60 = vadd.f32 %v2882_v48, %v2878_v42  ;;  %v2892_v3 = vadd.f32 %v2888_v63, %v2884_v7  ;;  %v3384_v36 = vld [vmem:[%s5222_s14] sm:$0x3]  ;;  %v2977_v17 = vrot.slane %v2968_v8, %v4782_v18 }
 0x4d5   :  { %v2895_v43 = vadd.f32 %v2891_v4, %v2887_v25  ;;  %v3389_v52 = vrot.slane %v3384_v36, %v4774_v16  ;;  %v3393_v62 = vrot.slane %v3384_v36, %v4782_v18 }
 0x4d6   :  { %v2897_v2 = vmul.f32 0.33333334, %v2893_v14  ;;  %v5190_v13 = vadd.f32 %v2890_v33, %v2886_v60  ;;  %v2896_v55 = vmul.f32 0.33333334, %v2892_v3  ;;  %v3749_v33 = vld [vmem:[#allocation2] ss:$0 sm:$0xff] }
 0x4d7   :  { %v2899_v37 = vmul.f32 0.33333334, %v2895_v43 }
 0x4d8   :  { %v2901_v41 = vpack.c.bf16 %v2897_v2, %v2897_v2  ;;  %v2900_v19 = vpack.c.bf16 %v2896_v55, %v2896_v55  ;;  %v2898_v32 = vmul.f32 0.33333334, %v5190_v13 }
 0x4d9   :  { %v2903_v44 = vpack.c.bf16 %v2899_v37, %v2899_v37 }
 0x4da   :  { %3332 = vmatprep.mubr.bf16.mxu0 %v2901_v41  ;;  %v2902_v23 = vpack.c.bf16 %v2898_v32, %v2898_v32 }
 0x4db   :  { %3333 = vmatmul.mubr.bf16.vlgmr.msra.gmra.mrb[16].mxu0 %v2900_v19 }
 0x4dc   :  { %3342 = vmatpush1.bf16.msra.mxu0 %v4222_v6  ;;  %3373 = vmatprep.mubr.bf16.mxu0 %v2903_v44 }
 0x4dd   :  { %3343 = vmatprep.subr.bf16.mxu0 %v4227_v22 }
 0x4e0   :  { %3344 = vmatpush1.bf16.msra.mxu0 %v4225_v59 }
 0x4e1   :  { %3345 = vmatprep.subr.bf16.mxu0 %v4230_v12 }
 0x4e4   :  { %3346 = vmatpush1.bf16.msra.mxu0 %v4228_v40 }
 0x4e5   :  { %3347 = vmatprep.subr.bf16.mxu0 %v4233_v35 }
 0x4e8   :  { %3348 = vmatpush1.bf16.msra.mxu0 %v4231_v61 }
 0x4e9   :  { %3349 = vmatprep.subr.bf16.mxu0 %v4236_v53 }
 0x4ec   :  { %3350 = vmatpush1.bf16.msra.mxu0 %v4234_v58 }
 0x4ed   :  { %3351 = vmatprep.subr.bf16.mxu0 %v4239_v57 }
 0x4f0   :  { %3352 = vmatpush1.bf16.msra.mxu0 %v4237_v34 }
 0x4f1   :  { %3353 = vmatprep.subr.bf16.mxu0 %v4242_v46 }
 0x4f4   :  { %3354 = vmatpush1.bf16.msra.mxu0 %v4240_v1 }
 0x4f5   :  { %3355 = vmatprep.subr.bf16.mxu0 %v4245_v27 }
 0x4f8   :  { %3356 = vmatpush1.bf16.msra.mxu0 %v4243_v15 }
 0x4f9   :  { %3357 = vmatprep.subr.bf16.mxu0 %v4248_v54 }
 0x4fc   :  { %3358 = vmatpush1.bf16.msra.mxu0 %v4246_v0 }
 0x4fd   :  { %3359 = vmatprep.subr.bf16.mxu0 %v4251_v29 }
 0x500   :  { %3360 = vmatpush1.bf16.msra.mxu0 %v4249_v31 }
 0x501   :  { %3361 = vmatprep.subr.bf16.mxu0 %v4254_v49 }
 0x504   :  { %3362 = vmatpush1.bf16.msra.mxu0 %v4252_v38 }
 0x505   :  { %3363 = vmatprep.subr.bf16.mxu0 %v4257_v28 }
 0x508   :  { %3364 = vmatpush1.bf16.msra.mxu0 %v4255_v21 }
 0x509   :  { %3365 = vmatprep.subr.bf16.mxu0 %v4260_v47 }
 0x50c   :  { %3366 = vmatpush1.bf16.msra.mxu0 %v4258_v10 }
 0x50d   :  { %3367 = vmatprep.subr.bf16.mxu0 %v4263_v20 }
 0x510   :  { %3368 = vmatpush1.bf16.msra.mxu0 %v4261_v5 }
 0x511   :  { %3369 = vmatprep.subr.bf16.mxu0 %v4266_v9 }
 0x514   :  { %3370 = vmatpush1.bf16.msra.mxu0 %v4264_v56 }
 0x515   :  { %3371 = vmatprep.subr.bf16.mxu0 %v4269_v26 }
 0x518   :  { %3372 = vmatpush1.bf16.msra.mxu0 %v4267_v24 }
 0x51b   :  { %3374 = vmatmul.mubr.bf16.vlgmr.msra.gmra.mrb[16].mxu0 %v2902_v23 }
 0x5ee   :  { %v3375_v39 = vpop.f32.mrb[16].mxu0 }
 0x5ef   :  { %v3764_v30 = vadd.f32 %v3375_v39, %v2973_v45  ;;  %v3377_v51 = vpop.f32.mrb[17].mxu0 }
 0x5f0   :  { %v3765_v11 = vadd.f32 %v3377_v51, %v2977_v17  ;;  %v3379_v50 = vpop.f32.mrb[18].mxu0 }
 0x5f1   :  { %v3382_v42 = vmax.f32 %v3764_v30, 0.0  ;;  %v3380_v48 = vpop.f32.mrb[19].mxu0 }
 0x5f2   :  { %v3383_v7 = vmax.f32 %v3765_v11, 0.0 }
 0x5f3   :  { %v3396_v63 = vmul.f32 %v3389_v52, %v3382_v42 }
 0x5f4   :  { %v3397_v25 = vmul.f32 %v3393_v62, %v3383_v7 }
 0x5f5   :  { %v3398_v4 = vsel %vm1158_vm1, %v3396_v63, 0.0 }
 0x5f6   :  { %v3399_v14 = vsel %vm1158_vm1, %v3397_v25, 0.0 }
 0x5f7   :  { %v3400_v60 = vadd.f32 %v3399_v14, %v3398_v4 }
 0x5f9   :  { %3401 = vadd.xlane.f32.xlu0 %v3400_v60 }
 0x686   :  { %v3402_v3 = vpop.xlane.xlu0 %3401 }
 0x687   :  { %v3410_v43 = vadd.f32 %v3749_v33, %v3402_v3 }
 0x689   :  { %v3411_v16 = vsub.f32 0.0, %v3410_v43 }
 0x68b   :  { %v3412_v2 = vmul.f32 1.442695, %v3411_v16 }
 0x68d   :  { %4348 = vpow2.f32 %v3412_v2 }
 0x697   :  { %v4349_v13 = vpop.eup %4348 }
 0x698   :  { %v3414_v18 = vadd.f32 1.0, %v4349_v13 }
 0x69a   :  { %4350 = vrcp.f32 %v3414_v18 }
 0x6a4   :  { %v4351_v55 = vpop.eup %4350 }
 0x6a5   :  { %3418 = vst.msk [vmem:[%s5224_s16] sm:$0x3] %vm3417_vm2, %v4351_v55 }
 0x6a6   :  { %3423 = vsyncpa [#allocation4], 1 }
 0x6a7   :  { %3424 = vsyncpa [#allocation6], 1 }
 0x6a8   :  { %3425 = vsyncpa [#allocation9], 1 }
 0x6a9   :  { %3426 = vsyncpa [#allocation12], 1 }
 0x6aa   :  { %3427 = vsyncpa [#allocation15], 1 }

</bundles_post_ra>
